<compile_context>
chip_gen: v7x
topology: tpu7x:2x2x1
jax: 0.10.0
libtpu: 0.0.40
codegen_flags: <defaults>
</compile_context>

<pallas_src>
import jax
import jax.numpy as jnp
from jax.experimental import pallas as pl
from jax.experimental.pallas import tpu as pltpu  # noqa: F401  (kept for TPU lowering context)

BN_EPS = 1e-5
N_OUT = 2048 * 3          # 6144


def _bn_relu(h, gamma, beta):
    """Training-mode BatchNorm1d (biased batch var) fused with affine + ReLU.

    Two-pass variance (stable against cancellation); gamma/beta folded into
    one scale/shift FMA.
    """
    mu = jnp.mean(h, axis=0, keepdims=True)
    var = jnp.mean(jnp.square(h - mu), axis=0, keepdims=True)
    scale = gamma * jax.lax.rsqrt(var + BN_EPS)
    shift = beta - mu * scale
    return jnp.maximum(h * scale + shift, 0.0)


def decoder_kernel(x_ref, w2_ref, g2_ref, be2_ref,
                   w3_ref, g3_ref, be3_ref,
                   w4_ref, b4_ref, o_ref):
    """Fully fused: fc2 -> BN2 -> ReLU -> fc3 -> BN3 -> ReLU -> fc4 -> tanh.

    All operands resident in VMEM; fc2/fc3 biases dropped (cancelled by BN);
    w4/b4 columns pre-permuted so the output is already in (B, 2048*3)
    interleaved order (the PyTorch view+transpose becomes a free reshape).
    """
    x = x_ref[...].astype(jnp.bfloat16)
    h = jnp.dot(x, w2_ref[...], preferred_element_type=jnp.float32)
    h = _bn_relu(h, g2_ref[...], be2_ref[...])
    h = jnp.dot(h.astype(jnp.bfloat16), w3_ref[...],
                preferred_element_type=jnp.float32)
    h = _bn_relu(h, g3_ref[...], be3_ref[...])
    o = jnp.dot(h.astype(jnp.bfloat16), w4_ref[...],
                preferred_element_type=jnp.float32)
    o_ref[...] = jnp.tanh(o + b4_ref[...])


def decoder_forward(x, kparams):
    """x: (B, 1024) float32 -> (B, 2048, 3) float32."""
    B = x.shape[0]
    (w2, g2, be2, w3, g3, be3, w4p, b4p) = kparams

    flops = 2 * B * (1024 * 512 + 512 * 256 + 256 * N_OUT)
    bytes_accessed = int(
        sum(a.size * a.dtype.itemsize for a in kparams)   # bf16 weights dominate
        + x.size * x.dtype.itemsize
        + B * N_OUT * 4                                    # f32 output
    )

    out_flat = pl.pallas_call(
        decoder_kernel,
        out_shape=jax.ShapeDtypeStruct((B, N_OUT), jnp.float32),
        cost_estimate=pl.CostEstimate(
            flops=flops,
            transcendentals=B * N_OUT,
            bytes_accessed=bytes_accessed,
        ),
    )(x, w2, g2, be2, w3, g3, be3, w4p, b4p)

    # Interleave already baked into w4's column order -> free view.
    return out_flat.reshape(B, 2048, 3)


def _output_perm():
    """perm[n*3 + c] = c*2048 + n, so reshape(B,2048,3) == view(B,3,2048).T(1,2)."""
    return (jnp.arange(2048)[:, None] + 2048 * jnp.arange(3)[None, :]).reshape(-1)


def init_params(key):
    """Deterministic synthetic parameters matching the PyTorch module (f32)."""
    ks = jax.random.split(key, 10)

    def lin(kw, kb, fan_in, fan_out):
        bound = 1.0 / jnp.sqrt(fan_in)
        w = jax.random.uniform(kw, (fan_in, fan_out), jnp.float32, -bound, bound)
        b = jax.random.uniform(kb, (1, fan_out), jnp.float32, -bound, bound)
        return w, b

    w2, b2 = lin(ks[0], ks[1], 1024, 512)
    w3, b3 = lin(ks[2], ks[3], 512, 256)
    w4, b4 = lin(ks[4], ks[5], 256, N_OUT)

    g2 = 1.0 + 0.1 * jax.random.normal(ks[6], (1, 512), jnp.float32)
    be2 = 0.1 * jax.random.normal(ks[7], (1, 512), jnp.float32)
    g3 = 1.0 + 0.1 * jax.random.normal(ks[8], (1, 256), jnp.float32)
    be3 = 0.1 * jax.random.normal(ks[9], (1, 256), jnp.float32)

    return dict(w2=w2, b2=b2, g2=g2, be2=be2,
                w3=w3, b3=b3, g3=g3, be3=be3,
                w4=w4, b4=b4)


def prepare_kernel_params(p):
    """bf16 weights; drop b2/b3 (cancelled by training-mode BN); bake the
    view(B,3,2048).transpose(1,2) into w4/b4's column order."""
    perm = _output_perm()
    w4p = p["w4"][:, perm].astype(jnp.bfloat16)
    b4p = p["b4"][:, perm]
    return (p["w2"].astype(jnp.bfloat16), p["g2"], p["be2"],
            p["w3"].astype(jnp.bfloat16), p["g3"], p["be3"],
            w4p, b4p)


def decoder_reference_mirrored(x, p):
    """Pure-JAX reference mirroring the kernel's precision policy, but using
    the UNpermuted weights + the explicit view/transpose — so it also
    validates the baked-in output permutation."""
    h = jnp.dot(x.astype(jnp.bfloat16), p["w2"].astype(jnp.bfloat16),
                preferred_element_type=jnp.float32)
    h = _bn_relu(h, p["g2"], p["be2"])
    h = jnp.dot(h.astype(jnp.bfloat16), p["w3"].astype(jnp.bfloat16),
                preferred_element_type=jnp.float32)
    h = _bn_relu(h, p["g3"], p["be3"])
    o = jnp.tanh(jnp.dot(h.astype(jnp.bfloat16), p["w4"].astype(jnp.bfloat16),
                         preferred_element_type=jnp.float32) + p["b4"])
    return jnp.transpose(o.reshape(x.shape[0], 3, 2048), (0, 2, 1))


def decoder_reference_f32(x, p):
    """Faithful f32 re-implementation of the PyTorch forward (training-mode BN,
    biases included, explicit view/transpose)."""
    def bn(h, g, b):
        mu = h.mean(0, keepdims=True)
        var = h.var(0, keepdims=True)   # biased, matches PyTorch training mode
        return (h - mu) * jax.lax.rsqrt(var + BN_EPS) * g + b

    h = jnp.maximum(bn(x @ p["w2"] + p["b2"], p["g2"], p["be2"]), 0.0)
    h = jnp.maximum(bn(h @ p["w3"] + p["b3"], p["g3"], p["be3"]), 0.0)
    o = jnp.tanh(h @ p["w4"] + p["b4"])
    return jnp.transpose(o.reshape(x.shape[0], 3, 2048), (0, 2, 1))


if __name__ == "__main__":
    key = jax.random.PRNGKey(0)
    kx, kp = jax.random.split(key)

    B = 8  # batch on sublanes (multiple of 8)
    x = jax.random.normal(kx, (B, 1024), jnp.float32)

    params = init_params(kp)
    kparams = prepare_kernel_params(params)

    fwd = jax.jit(decoder_forward)
    out = jax.block_until_ready(fwd(x, kparams))
    assert out.shape == (B, 2048, 3), out.shape

    # Tight check: identical precision policy, unpermuted weights + explicit
    # transpose -> also proves the baked-in column permutation is correct.
    ref_mirror = decoder_reference_mirrored(x, params)
    err = float(jnp.max(jnp.abs(out - ref_mirror)))
    assert err < 2e-3, err

    # Loose sanity check against the faithful f32 PyTorch-equivalent math
    # (difference comes only from bf16 weight storage).
    ref_f32 = decoder_reference_f32(x, params)
    err_f32 = float(jnp.max(jnp.abs(out - ref_f32)))
    assert err_f32 < 1e-1, err_f32

    print("KERNEL_OK")
</pallas_src>

<mosaic_0001>
module attributes {stable_mosaic.version = 11 : i64} {
  func.func @decoder_kernel(%arg0: memref<8x1024xf32, #tpu.memory_space<vmem>>, %arg1: memref<1024x512xbf16, #tpu.memory_space<vmem>>, %arg2: memref<1x512xf32, #tpu.memory_space<vmem>>, %arg3: memref<1x512xf32, #tpu.memory_space<vmem>>, %arg4: memref<512x256xbf16, #tpu.memory_space<vmem>>, %arg5: memref<1x256xf32, #tpu.memory_space<vmem>>, %arg6: memref<1x256xf32, #tpu.memory_space<vmem>>, %arg7: memref<256x6144xbf16, #tpu.memory_space<vmem>>, %arg8: memref<1x6144xf32, #tpu.memory_space<vmem>>, %arg9: memref<8x6144xf32, #tpu.memory_space<vmem>>) attributes {dimension_semantics = [], scalar_prefetch = 0 : i64, scratch_operands = 0 : i64, tpu.core_type = #tpu.core_type<tc>} {
    %c0 = arith.constant 0 : index
    %c0_0 = arith.constant 0 : index
    %0 = vector.load %arg0[%c0, %c0_0] : memref<8x1024xf32, #tpu.memory_space<vmem>>, vector<8x1024xf32>
    %1 = arith.truncf %0 : vector<8x1024xf32> to vector<8x1024xbf16>
    %c0_1 = arith.constant 0 : index
    %c0_2 = arith.constant 0 : index
    %2 = vector.load %arg1[%c0_1, %c0_2] : memref<1024x512xbf16, #tpu.memory_space<vmem>>, vector<1024x512xbf16>
    %cst = arith.constant dense<0.000000e+00> : vector<8x512xf32>
    %3 = tpu.matmul %1, %2, %cst {dimension_numbers = #tpu.dot_dimension_numbers<[1], [0], [0], [1], [0, 0, 1, 1], [], []>} : vector<8x1024xbf16>, vector<1024x512xbf16>, vector<8x512xf32> -> vector<8x512xf32>
    %c0_3 = arith.constant 0 : index
    %c0_4 = arith.constant 0 : index
    %4 = vector.load %arg2[%c0_3, %c0_4] : memref<1x512xf32, #tpu.memory_space<vmem>>, vector<1x512xf32>
    %c0_5 = arith.constant 0 : index
    %c0_6 = arith.constant 0 : index
    %5 = vector.load %arg3[%c0_5, %c0_6] : memref<1x512xf32, #tpu.memory_space<vmem>>, vector<1x512xf32>
    %cst_7 = arith.constant dense<0.000000e+00> : vector<512xf32>
    %6 = vector.multi_reduction <add>, %3, %cst_7 [0] : vector<8x512xf32> to vector<512xf32>
    %7 = vector.shape_cast %6 : vector<512xf32> to vector<1x512xf32>
    %cst_8 = arith.constant 8.000000e+00 : f32
    %8 = vector.broadcast %cst_8 : f32 to vector<1x512xf32>
    %9 = arith.divf %7, %8 : vector<1x512xf32>
    %10 = vector.broadcast %9 : vector<1x512xf32> to vector<8x512xf32>
    %11 = arith.subf %3, %10 : vector<8x512xf32>
    %12 = arith.mulf %11, %11 : vector<8x512xf32>
    %cst_9 = arith.constant dense<0.000000e+00> : vector<512xf32>
    %13 = vector.multi_reduction <add>, %12, %cst_9 [0] : vector<8x512xf32> to vector<512xf32>
    %14 = vector.shape_cast %13 : vector<512xf32> to vector<1x512xf32>
    %cst_10 = arith.constant 8.000000e+00 : f32
    %15 = vector.broadcast %cst_10 : f32 to vector<1x512xf32>
    %16 = arith.divf %14, %15 : vector<1x512xf32>
    %cst_11 = arith.constant 9.99999974E-6 : f32
    %17 = vector.broadcast %cst_11 : f32 to vector<1x512xf32>
    %18 = arith.addf %16, %17 : vector<1x512xf32>
    %19 = math.rsqrt %18 : vector<1x512xf32>
    %20 = arith.mulf %4, %19 : vector<1x512xf32>
    %21 = arith.mulf %9, %20 : vector<1x512xf32>
    %22 = arith.subf %5, %21 : vector<1x512xf32>
    %23 = vector.broadcast %20 : vector<1x512xf32> to vector<8x512xf32>
    %24 = arith.mulf %3, %23 : vector<8x512xf32>
    %25 = vector.broadcast %22 : vector<1x512xf32> to vector<8x512xf32>
    %26 = arith.addf %24, %25 : vector<8x512xf32>
    %cst_12 = arith.constant 0.000000e+00 : f32
    %27 = vector.broadcast %cst_12 : f32 to vector<8x512xf32>
    %28 = arith.maximumf %26, %27 : vector<8x512xf32>
    %29 = arith.truncf %28 : vector<8x512xf32> to vector<8x512xbf16>
    %c0_13 = arith.constant 0 : index
    %c0_14 = arith.constant 0 : index
    %30 = vector.load %arg4[%c0_13, %c0_14] : memref<512x256xbf16, #tpu.memory_space<vmem>>, vector<512x256xbf16>
    %cst_15 = arith.constant dense<0.000000e+00> : vector<8x256xf32>
    %31 = tpu.matmul %29, %30, %cst_15 {dimension_numbers = #tpu.dot_dimension_numbers<[1], [0], [0], [1], [0, 0, 1, 1], [], []>} : vector<8x512xbf16>, vector<512x256xbf16>, vector<8x256xf32> -> vector<8x256xf32>
    %c0_16 = arith.constant 0 : index
    %c0_17 = arith.constant 0 : index
    %32 = vector.load %arg5[%c0_16, %c0_17] : memref<1x256xf32, #tpu.memory_space<vmem>>, vector<1x256xf32>
    %c0_18 = arith.constant 0 : index
    %c0_19 = arith.constant 0 : index
    %33 = vector.load %arg6[%c0_18, %c0_19] : memref<1x256xf32, #tpu.memory_space<vmem>>, vector<1x256xf32>
    %cst_20 = arith.constant dense<0.000000e+00> : vector<256xf32>
    %34 = vector.multi_reduction <add>, %31, %cst_20 [0] : vector<8x256xf32> to vector<256xf32>
    %35 = vector.shape_cast %34 : vector<256xf32> to vector<1x256xf32>
    %cst_21 = arith.constant 8.000000e+00 : f32
    %36 = vector.broadcast %cst_21 : f32 to vector<1x256xf32>
    %37 = arith.divf %35, %36 : vector<1x256xf32>
    %38 = vector.broadcast %37 : vector<1x256xf32> to vector<8x256xf32>
    %39 = arith.subf %31, %38 : vector<8x256xf32>
    %40 = arith.mulf %39, %39 : vector<8x256xf32>
    %cst_22 = arith.constant dense<0.000000e+00> : vector<256xf32>
    %41 = vector.multi_reduction <add>, %40, %cst_22 [0] : vector<8x256xf32> to vector<256xf32>
    %42 = vector.shape_cast %41 : vector<256xf32> to vector<1x256xf32>
    %cst_23 = arith.constant 8.000000e+00 : f32
    %43 = vector.broadcast %cst_23 : f32 to vector<1x256xf32>
    %44 = arith.divf %42, %43 : vector<1x256xf32>
    %cst_24 = arith.constant 9.99999974E-6 : f32
    %45 = vector.broadcast %cst_24 : f32 to vector<1x256xf32>
    %46 = arith.addf %44, %45 : vector<1x256xf32>
    %47 = math.rsqrt %46 : vector<1x256xf32>
    %48 = arith.mulf %32, %47 : vector<1x256xf32>
    %49 = arith.mulf %37, %48 : vector<1x256xf32>
    %50 = arith.subf %33, %49 : vector<1x256xf32>
    %51 = vector.broadcast %48 : vector<1x256xf32> to vector<8x256xf32>
    %52 = arith.mulf %31, %51 : vector<8x256xf32>
    %53 = vector.broadcast %50 : vector<1x256xf32> to vector<8x256xf32>
    %54 = arith.addf %52, %53 : vector<8x256xf32>
    %cst_25 = arith.constant 0.000000e+00 : f32
    %55 = vector.broadcast %cst_25 : f32 to vector<8x256xf32>
    %56 = arith.maximumf %54, %55 : vector<8x256xf32>
    %57 = arith.truncf %56 : vector<8x256xf32> to vector<8x256xbf16>
    %c0_26 = arith.constant 0 : index
    %c0_27 = arith.constant 0 : index
    %58 = vector.load %arg7[%c0_26, %c0_27] : memref<256x6144xbf16, #tpu.memory_space<vmem>>, vector<256x6144xbf16>
    %cst_28 = arith.constant dense<0.000000e+00> : vector<8x6144xf32>
    %59 = tpu.matmul %57, %58, %cst_28 {dimension_numbers = #tpu.dot_dimension_numbers<[1], [0], [0], [1], [0, 0, 1, 1], [], []>} : vector<8x256xbf16>, vector<256x6144xbf16>, vector<8x6144xf32> -> vector<8x6144xf32>
    %c0_29 = arith.constant 0 : index
    %c0_30 = arith.constant 0 : index
    %60 = vector.load %arg8[%c0_29, %c0_30] : memref<1x6144xf32, #tpu.memory_space<vmem>>, vector<1x6144xf32>
    %61 = vector.broadcast %60 : vector<1x6144xf32> to vector<8x6144xf32>
    %62 = arith.addf %59, %61 : vector<8x6144xf32>
    %63 = math.tanh %62 : vector<8x6144xf32>
    %c0_31 = arith.constant 0 : index
    %c0_32 = arith.constant 0 : index
    %64 = vector.load %arg9[%c0_31, %c0_32] : memref<8x6144xf32, #tpu.memory_space<vmem>>, vector<8x6144xf32>
    tpu.vector_store %arg9[%c0_31, %c0_32], %63 {strides = array<i32>} : memref<8x6144xf32, #tpu.memory_space<vmem>>, vector<8x6144xf32>,
    return
  }
}

</mosaic_0001>

<bundles_post_ra>
// kernel: decoder_forward.1
= control target key start
LH: loop header
LB: loop body
LE: loop exit
PB: predicated region body
PF: predicated region fallthrough
CT: control target
= control target key end

     0   :  { %14 = vsyncpa [#allocation3], 0  ;;  %s11261_s0 = inlined_call_operand.hbm [shape: f32[8,1024], index: 0, kind: input, shape index: {}]   ;;  %s11262_s1 = inlined_call_operand.hbm [shape: bf16[1024,512], index: 1, kind: input, shape index: {}]   ;;  %s11263_s2 = inlined_call_operand.hbm [shape: f32[1,512], index: 2, kind: input, shape index: {}]   ;;  %s11264_s3 = inlined_call_operand.hbm [shape: f32[1,512], index: 3, kind: input, shape index: {}]   ;;  %s11265_s4 = inlined_call_operand.hbm [shape: bf16[512,256], index: 4, kind: input, shape index: {}]   ;;  %s11266_s5 = inlined_call_operand.hbm [shape: f32[1,256], index: 5, kind: input, shape index: {}]   ;;  %s11267_s6 = inlined_call_operand.hbm [shape: f32[1,256], index: 6, kind: input, shape index: {}]   ;;  %s11268_s7 = inlined_call_operand.hbm [shape: bf16[256,6144], index: 7, kind: input, shape index: {}]   ;;  %s11269_s8 = inlined_call_operand.hbm [shape: f32[1,6144], index: 8, kind: input, shape index: {}]   ;;  %s11270_s9 = inlined_call_operand.vmem [shape: f32[8,6144], index: 9, kind: output, shape index: {}]  }
   0x1   :  { %15 = vsyncpa [#allocation5], 0 }
   0x2   :  { %16 = vsyncpa [#allocation8], 0 }
   0x3   :  { %17 = vsyncpa [#allocation11], 0 }
   0x4   :  { %18 = vsyncpa [#allocation14], 0  ;;  %s10673_s30 = smov [#allocation4]   ;;  %s10465_s13 = scalar_lea.hbm %s11262_s1, 32768 }
   0x5   :  { %s34_s10 = sshll.u32 %s10673_s30, 4  ;;  %p10466_p0 = scmp.ne.s32.totalorder %s11262_s1, %s10465_s13  ;;  %s35_s10 = int_to_ptr.vmem [resolvable:$true] %s34_s10 }
   0x6   :  { %p10469_p1 = scmp.lt.u32.totalorder %s10465_s13, %s11262_s1 }
   0x8   :  { %p10471_p2 = pnand %p10469_p1, %p10466_p0 }
   0xa   :  { %10474 = shalt.err (!%p10471_p2)
}
   0xb   :  { %s10475_s18 = scalar_lea.vmem %s35_s10, 32768  ;;  %p10480_p4 = scmp.lt.s32.totalorder %s35_s10, %s35_s10 }
   0xc   :  { %p10476_p3 = scmp.ne.s32.totalorder %s35_s10, %s10475_s18  ;;  %p10481_p5 = scmp.lt.s32.totalorder %s10475_s18, %s10475_s18 }
   0xe   :  { %p10482_p6 = por %p10481_p5, %p10480_p4 }
  0x10   :  { %p10483_p7 = pnand %p10482_p6, %p10476_p3 }
  0x12   :  { %10486 = shalt.err (!%p10483_p7)
}
  0x13   :  { %s10674_s19 = smov 256   ;;  %s10675_s20 = smov 16  }
  0x14   :  { %40 = dma.hbm_to_vmem [thread:$0]  %s11262_s1, 32768, %s35_s10, [#allocation5], %s10674_s19, %s10674_s19, %s10675_s20  }
  0x15   :  { %s10676_s23 = smov [#allocation7]   ;;  %s10677_s25 = smov [#allocation10]  }
  0x16   :  { %s57_s24 = sshll.u32 %s10676_s23, 4  ;;  %s79_s26 = sshll.u32 %s10677_s25, 4  ;;  %s58_s24 = int_to_ptr.vmem [resolvable:$true] %s57_s24  ;;  %s80_s26 = int_to_ptr.vmem [resolvable:$true] %s79_s26 }
  0x17   :  { %s10487_s29 = scalar_lea.hbm %s11264_s3, 64 }
  0x18   :  { %p10488_p8 = scmp.ne.s32.totalorder %s11264_s3, %s10487_s29  ;;  %p10491_p9 = scmp.lt.u32.totalorder %s10487_s29, %s11264_s3 }
  0x1a   :  { %p10493_p10 = pnand %p10491_p9, %p10488_p8 }
  0x1c   :  { %10496 = shalt.err (!%p10493_p10)
}
  0x1d   :  { %s10497_s1 = scalar_lea.vmem %s58_s24, 64  ;;  %p10502_p12 = scmp.lt.s32.totalorder %s58_s24, %s58_s24 }
  0x1e   :  { %p10498_p11 = scmp.ne.s32.totalorder %s58_s24, %s10497_s1  ;;  %p10503_p13 = scmp.lt.s32.totalorder %s10497_s1, %s10497_s1 }
  0x20   :  { %p10504_p0 = por %p10503_p13, %p10502_p12 }
  0x22   :  { %p10505_p1 = pnand %p10504_p0, %p10498_p11 }
  0x24   :  { %10508 = shalt.err (!%p10505_p1)
}
  0x25   :  { %60 = dma.hbm_to_vmem [thread:$0]  %s11264_s3, 64, %s58_s24, [#allocation8]  }
  0x26   :  { %s10509_s17 = scalar_lea.hbm %s11266_s5, 32 }
  0x27   :  { %p10510_p2 = scmp.ne.s32.totalorder %s11266_s5, %s10509_s17  ;;  %p10513_p3 = scmp.lt.u32.totalorder %s10509_s17, %s11266_s5 }
  0x29   :  { %p10515_p4 = pnand %p10513_p3, %p10510_p2 }
  0x2b   :  { %10518 = shalt.err (!%p10515_p4)
}
  0x2c   :  { %s10519_s22 = scalar_lea.vmem %s80_s26, 32  ;;  %p10524_p6 = scmp.lt.s32.totalorder %s80_s26, %s80_s26 }
  0x2d   :  { %p10520_p5 = scmp.ne.s32.totalorder %s80_s26, %s10519_s22  ;;  %p10525_p7 = scmp.lt.s32.totalorder %s10519_s22, %s10519_s22 }
  0x2f   :  { %p10526_p8 = por %p10525_p7, %p10524_p6 }
  0x31   :  { %p10527_p9 = pnand %p10526_p8, %p10520_p5 }
  0x33   :  { %10530 = shalt.err (!%p10527_p9)
}
  0x34   :  { %82 = dma.hbm_to_vmem [thread:$0]  %s11266_s5, 32, %s80_s26, [#allocation11]  }
  0x35   :  { %s10678_s24 = smov [#allocation13]   ;;  %s10531_s29 = scalar_lea.hbm %s11268_s7, 98304 }
  0x36   :  { %s98_s25 = sshll.u32 %s10678_s24, 4  ;;  %p10532_p10 = scmp.ne.s32.totalorder %s11268_s7, %s10531_s29  ;;  %s99_s25 = int_to_ptr.vmem [resolvable:$true] %s98_s25 }
  0x37   :  { %p10535_p11 = scmp.lt.u32.totalorder %s10531_s29, %s11268_s7 }
  0x39   :  { %p10537_p12 = pnand %p10535_p11, %p10532_p10 }
  0x3b   :  { %10540 = shalt.err (!%p10537_p12)
}
  0x3c   :  { %s10541_s1 = scalar_lea.vmem %s99_s25, 98304  ;;  %p10546_p0 = scmp.lt.s32.totalorder %s99_s25, %s99_s25 }
  0x3d   :  { %p10542_p13 = scmp.ne.s32.totalorder %s99_s25, %s10541_s1  ;;  %p10547_p1 = scmp.lt.s32.totalorder %s10541_s1, %s10541_s1 }
  0x3f   :  { %p10548_p2 = por %p10547_p1, %p10546_p0 }
  0x41   :  { %p10549_p3 = pnand %p10548_p2, %p10542_p13 }
  0x43   :  { %10552 = shalt.err (!%p10549_p3)
}
  0x44   :  { %s10679_s5 = smov 3072   ;;  %s10680_s26 = smov 192  }
  0x45   :  { %104 = dma.hbm_to_vmem [thread:$0]  %s11268_s7, 98304, %s99_s25, [#allocation14], %s10679_s5, %s10679_s5, %s10680_s26  }
  0x46   :  { %s10681_s15 = smov [#allocation2]   ;;  %s10682_s17 = smov [#allocation6]  }
  0x47   :  { %s25_s16 = sshll.u32 %s10681_s15, 4  ;;  %s47_s18 = sshll.u32 %s10682_s17, 4  ;;  %s26_s16 = int_to_ptr.vmem [resolvable:$true] %s25_s16  ;;  %s48_s18 = int_to_ptr.vmem [resolvable:$true] %s47_s18 }
  0x48   :  { %s10553_s21 = scalar_lea.hbm %s11261_s0, 1024 }
  0x49   :  { %p10554_p4 = scmp.ne.s32.totalorder %s11261_s0, %s10553_s21  ;;  %p10557_p5 = scmp.lt.u32.totalorder %s10553_s21, %s11261_s0 }
  0x4b   :  { %p10559_p6 = pnand %p10557_p5, %p10554_p4 }
  0x4d   :  { %10562 = shalt.err (!%p10559_p6)
}
  0x4e   :  { %s10563_s7 = scalar_lea.vmem %s26_s16, 1024  ;;  %p10568_p8 = scmp.lt.s32.totalorder %s26_s16, %s26_s16 }
  0x4f   :  { %p10564_p7 = scmp.ne.s32.totalorder %s26_s16, %s10563_s7  ;;  %p10569_p9 = scmp.lt.s32.totalorder %s10563_s7, %s10563_s7 }
  0x51   :  { %p10570_p10 = por %p10569_p9, %p10568_p8 }
  0x53   :  { %p10571_p11 = pnand %p10570_p10, %p10564_p7 }
  0x55   :  { %10574 = shalt.err (!%p10571_p11)
}
  0x56   :  { %28 = dma.hbm_to_vmem [thread:$0]  %s11261_s0, 1024, %s26_s16, [#allocation3]  }
  0x57   :  { %s10575_s30 = scalar_lea.hbm %s11263_s2, 64 }
  0x58   :  { %p10576_p12 = scmp.ne.s32.totalorder %s11263_s2, %s10575_s30  ;;  %p10579_p13 = scmp.lt.u32.totalorder %s10575_s30, %s11263_s2 }
  0x5a   :  { %p10581_p0 = pnand %p10579_p13, %p10576_p12 }
  0x5c   :  { %10584 = shalt.err (!%p10581_p0)
}
  0x5d   :  { %s10585_s5 = scalar_lea.vmem %s48_s18, 64  ;;  %p10590_p2 = scmp.lt.s32.totalorder %s48_s18, %s48_s18 }
  0x5e   :  { %p10586_p1 = scmp.ne.s32.totalorder %s48_s18, %s10585_s5  ;;  %p10591_p3 = scmp.lt.s32.totalorder %s10585_s5, %s10585_s5 }
  0x60   :  { %p10592_p4 = por %p10591_p3, %p10590_p2 }
  0x62   :  { %p10593_p5 = pnand %p10592_p4, %p10586_p1 }
  0x64   :  { %10596 = shalt.err (!%p10593_p5)
}
  0x65   :  { %50 = dma.hbm_to_vmem [thread:$0]  %s11263_s2, 64, %s48_s18, [#allocation5]  }
  0x66   :  { %s10683_s10 = smov [#allocation9]   ;;  %s10597_s17 = scalar_lea.hbm %s11265_s4, 8192 }
  0x67   :  { %s66_s14 = sshll.u32 %s10683_s10, 4  ;;  %p10598_p6 = scmp.ne.s32.totalorder %s11265_s4, %s10597_s17  ;;  %s67_s14 = int_to_ptr.vmem [resolvable:$true] %s66_s14 }
  0x68   :  { %p10601_p7 = scmp.lt.u32.totalorder %s10597_s17, %s11265_s4 }
  0x6a   :  { %p10603_p8 = pnand %p10601_p7, %p10598_p6 }
  0x6c   :  { %10606 = shalt.err (!%p10603_p8)
}
  0x6d   :  { %s10607_s3 = scalar_lea.vmem %s67_s14, 8192  ;;  %p10612_p10 = scmp.lt.s32.totalorder %s67_s14, %s67_s14 }
  0x6e   :  { %p10608_p9 = scmp.ne.s32.totalorder %s67_s14, %s10607_s3  ;;  %p10613_p11 = scmp.lt.s32.totalorder %s10607_s3, %s10607_s3 }
  0x70   :  { %p10614_p12 = por %p10613_p11, %p10612_p10 }
  0x72   :  { %p10615_p13 = pnand %p10614_p12, %p10608_p9 }
  0x74   :  { %10618 = shalt.err (!%p10615_p13)
}
  0x75   :  { %s10684_s2 = smov 128   ;;  %s10685_s18 = smov 8  }
  0x76   :  { %72 = dma.hbm_to_vmem [thread:$0]  %s11265_s4, 8192, %s67_s14, [#allocation8], %s10684_s2, %s10684_s2, %s10685_s18  }
  0x77   :  { %s10686_s7 = smov [#allocation12]   ;;  %s10687_s27 = smov [#allocation15]  }
  0x78   :  { %s89_s25 = sshll.u32 %s10686_s7, 4  ;;  %s111_s28 = sshll.u32 %s10687_s27, 4  ;;  %s90_s25 = int_to_ptr.vmem [resolvable:$true] %s89_s25  ;;  %s112_s28 = int_to_ptr.vmem [resolvable:$true] %s111_s28 }
  0x79   :  { %s10619_s11 = scalar_lea.hbm %s11267_s6, 32 }
  0x7a   :  { %p10620_p0 = scmp.ne.s32.totalorder %s11267_s6, %s10619_s11  ;;  %p10623_p1 = scmp.lt.u32.totalorder %s10619_s11, %s11267_s6 }
  0x7c   :  { %p10625_p2 = pnand %p10623_p1, %p10620_p0 }
  0x7e   :  { %10628 = shalt.err (!%p10625_p2)
}
  0x7f   :  { %s10629_s4 = scalar_lea.vmem %s90_s25, 32  ;;  %p10634_p4 = scmp.lt.s32.totalorder %s90_s25, %s90_s25 }
  0x80   :  { %p10630_p3 = scmp.ne.s32.totalorder %s90_s25, %s10629_s4  ;;  %p10635_p5 = scmp.lt.s32.totalorder %s10629_s4, %s10629_s4 }
  0x82   :  { %p10636_p6 = por %p10635_p5, %p10634_p4 }
  0x84   :  { %p10637_p7 = pnand %p10636_p6, %p10630_p3 }
  0x86   :  { %10640 = shalt.err (!%p10637_p7)
}
  0x87   :  { %92 = dma.hbm_to_vmem [thread:$0]  %s11267_s6, 32, %s90_s25, [#allocation11]  }
  0x88   :  { %s10641_s15 = scalar_lea.hbm %s11269_s8, 768 }
  0x89   :  { %p10642_p8 = scmp.ne.s32.totalorder %s11269_s8, %s10641_s15  ;;  %p10645_p9 = scmp.lt.u32.totalorder %s10641_s15, %s11269_s8 }
  0x8b   :  { %p10647_p10 = pnand %p10645_p9, %p10642_p8 }
  0x8d   :  { %10650 = shalt.err (!%p10647_p10)
}
  0x8e   :  { %s10651_s21 = scalar_lea.vmem %s112_s28, 768  ;;  %p10656_p12 = scmp.lt.s32.totalorder %s112_s28, %s112_s28 }
  0x8f   :  { %p10652_p11 = scmp.ne.s32.totalorder %s112_s28, %s10651_s21  ;;  %p10657_p13 = scmp.lt.s32.totalorder %s10651_s21, %s10651_s21 }
  0x91   :  { %p10658_p0 = por %p10657_p13, %p10656_p12 }
  0x93   :  { %p10659_p1 = pnand %p10658_p0, %p10652_p11 }
  0x95   :  { %10662 = shalt.err (!%p10659_p1)
}
  0x96   :  { %114 = dma.hbm_to_vmem [thread:$0]  %s11269_s8, 768, %s112_s28, [#allocation14]  }
  0x97   :  { %10663 = dma.done.wait [#allocation3], 1024  }
  0x98   :  { %10664 = vsyncadd [#allocation3], 4294966272 }
  0x99   :  { %10665 = dma.done.wait [#allocation5], 32832  }
  0x9a   :  { %10666 = vsyncadd [#allocation5], 4294934464 }
  0x9b   :  { %10667 = dma.done.wait [#allocation8], 8256  }
  0x9c   :  { %10668 = vsyncadd [#allocation8], 4294959040 }
  0x9d   :  { %10669 = dma.done.wait [#allocation11], 64  }
  0x9e   :  { %10670 = vsyncadd [#allocation11], 4294967232 }
  0x9f   :  { %10671 = dma.done.wait [#allocation14], 99072  }
  0xa0   :  { %10672 = vsyncadd [#allocation14], 4294868224  ;;  %v9874_v0 = vld [vmem:[#allocation4 + $0x4] ss:$16 sps:$4 sm:$0xff]   ;;  %v9876_v1 = vld [vmem:[#allocation4 + $0xc] ss:$16 sps:$4 sm:$0xff]  }
  0xa1   :  { %1694 = vmatprep.subr.bf16.mxu0 %v9874_v0  ;;  %v9878_v2 = vld [vmem:[#allocation4] ss:$16 sps:$4 sm:$0xff]   ;;  %v9879_v3 = vld [vmem:[#allocation4 + $0x8] ss:$16 sps:$4 sm:$0xff]   ;;  %1858 = vmatprep.subr.bf16.mxu1 %v9876_v1  ;;  %v9880_v4 = vld [vmem:[#allocation4 + $0x24] ss:$16 sps:$4 sm:$0xff]  }
  0xa2   :  { %1695 = vmatpush1.bf16.msra.mxu0 %v9878_v2  ;;  %1859 = vmatpush1.bf16.msra.mxu1 %v9879_v3  ;;  %v9882_v5 = vld [vmem:[#allocation4 + $0x2c] ss:$16 sps:$4 sm:$0xff]   ;;  %v9884_v6 = vld [vmem:[#allocation4 + $0x20] ss:$16 sps:$4 sm:$0xff]   ;;  %v9885_v7 = vld [vmem:[#allocation4 + $0x28] ss:$16 sps:$4 sm:$0xff]  }
  0xa3   :  { %1696 = vmatprep.subr.bf16.mxu0 %v9880_v4  ;;  %1860 = vmatprep.subr.bf16.mxu1 %v9882_v5  ;;  %v9886_v8 = vld [vmem:[#allocation4 + $0x44] ss:$16 sps:$4 sm:$0xff]   ;;  %v9888_v9 = vld [vmem:[#allocation4 + $0x4c] ss:$16 sps:$4 sm:$0xff]   ;;  %v9890_v10 = vld [vmem:[#allocation4 + $0x40] ss:$16 sps:$4 sm:$0xff]  }
  0xa4   :  { %v9891_v11 = vld [vmem:[#allocation4 + $0x48] ss:$16 sps:$4 sm:$0xff]   ;;  %v9892_v12 = vld [vmem:[#allocation4 + $0x64] ss:$16 sps:$4 sm:$0xff]   ;;  %v9894_v13 = vld [vmem:[#allocation4 + $0x6c] ss:$16 sps:$4 sm:$0xff]  }
  0xa5   :  { %v9896_v14 = vld [vmem:[#allocation4 + $0x60] ss:$16 sps:$4 sm:$0xff]   ;;  %v9897_v15 = vld [vmem:[#allocation4 + $0x68] ss:$16 sps:$4 sm:$0xff]   ;;  %v9898_v16 = vld [vmem:[#allocation4 + $0x84] ss:$16 sps:$4 sm:$0xff]  }
  0xa6   :  { %1697 = vmatpush1.bf16.msra.mxu0 %v9884_v6  ;;  %1861 = vmatpush1.bf16.msra.mxu1 %v9885_v7  ;;  %v9900_v17 = vld [vmem:[#allocation4 + $0x8c] ss:$16 sps:$4 sm:$0xff]   ;;  %v9902_v18 = vld [vmem:[#allocation4 + $0x80] ss:$16 sps:$4 sm:$0xff]   ;;  %v9903_v19 = vld [vmem:[#allocation4 + $0x88] ss:$16 sps:$4 sm:$0xff]  }
  0xa7   :  { %1698 = vmatprep.subr.bf16.mxu0 %v9886_v8  ;;  %1862 = vmatprep.subr.bf16.mxu1 %v9888_v9  ;;  %v9904_v20 = vld [vmem:[#allocation4 + $0xa4] ss:$16 sps:$4 sm:$0xff]   ;;  %v9906_v21 = vld [vmem:[#allocation4 + $0xac] ss:$16 sps:$4 sm:$0xff]   ;;  %v9908_v22 = vld [vmem:[#allocation4 + $0xa0] ss:$16 sps:$4 sm:$0xff]  }
  0xa8   :  { %v9909_v23 = vld [vmem:[#allocation4 + $0xa8] ss:$16 sps:$4 sm:$0xff]   ;;  %v9910_v24 = vld [vmem:[#allocation4 + $0xc4] ss:$16 sps:$4 sm:$0xff]   ;;  %v9912_v25 = vld [vmem:[#allocation4 + $0xcc] ss:$16 sps:$4 sm:$0xff]  }
  0xa9   :  { %v9914_v26 = vld [vmem:[#allocation4 + $0xc0] ss:$16 sps:$4 sm:$0xff]   ;;  %v9915_v27 = vld [vmem:[#allocation4 + $0xc8] ss:$16 sps:$4 sm:$0xff]   ;;  %v9916_v28 = vld [vmem:[#allocation4 + $0xe4] ss:$16 sps:$4 sm:$0xff]  }
  0xaa   :  { %1699 = vmatpush1.bf16.msra.mxu0 %v9890_v10  ;;  %1863 = vmatpush1.bf16.msra.mxu1 %v9891_v11  ;;  %v9918_v29 = vld [vmem:[#allocation4 + $0xec] ss:$16 sps:$4 sm:$0xff]   ;;  %v9920_v30 = vld [vmem:[#allocation4 + $0xe0] ss:$16 sps:$4 sm:$0xff]   ;;  %v9921_v31 = vld [vmem:[#allocation4 + $0xe8] ss:$16 sps:$4 sm:$0xff]  }
  0xab   :  { %1700 = vmatprep.subr.bf16.mxu0 %v9892_v12  ;;  %1864 = vmatprep.subr.bf16.mxu1 %v9894_v13  ;;  %v9922_v32 = vld [vmem:[#allocation4 + $0x104] ss:$16 sps:$4 sm:$0xff]   ;;  %v9924_v33 = vld [vmem:[#allocation4 + $0x10c] ss:$16 sps:$4 sm:$0xff]   ;;  %v9926_v34 = vld [vmem:[#allocation4 + $0x100] ss:$16 sps:$4 sm:$0xff]  }
  0xac   :  { %v9927_v35 = vld [vmem:[#allocation4 + $0x108] ss:$16 sps:$4 sm:$0xff]   ;;  %v9928_v36 = vld [vmem:[#allocation4 + $0x124] ss:$16 sps:$4 sm:$0xff]   ;;  %v9930_v37 = vld [vmem:[#allocation4 + $0x12c] ss:$16 sps:$4 sm:$0xff]  }
  0xad   :  { %v9932_v38 = vld [vmem:[#allocation4 + $0x120] ss:$16 sps:$4 sm:$0xff]   ;;  %v9933_v39 = vld [vmem:[#allocation4 + $0x128] ss:$16 sps:$4 sm:$0xff]   ;;  %v9934_v40 = vld [vmem:[#allocation4 + $0x144] ss:$16 sps:$4 sm:$0xff]  }
  0xae   :  { %1701 = vmatpush1.bf16.msra.mxu0 %v9896_v14  ;;  %1865 = vmatpush1.bf16.msra.mxu1 %v9897_v15  ;;  %v9936_v41 = vld [vmem:[#allocation4 + $0x14c] ss:$16 sps:$4 sm:$0xff]   ;;  %v9938_v42 = vld [vmem:[#allocation4 + $0x140] ss:$16 sps:$4 sm:$0xff]   ;;  %v9939_v43 = vld [vmem:[#allocation4 + $0x148] ss:$16 sps:$4 sm:$0xff]  }
  0xaf   :  { %1702 = vmatprep.subr.bf16.mxu0 %v9898_v16  ;;  %1866 = vmatprep.subr.bf16.mxu1 %v9900_v17  ;;  %v9940_v44 = vld [vmem:[#allocation4 + $0x164] ss:$16 sps:$4 sm:$0xff]   ;;  %v9942_v45 = vld [vmem:[#allocation4 + $0x16c] ss:$16 sps:$4 sm:$0xff]   ;;  %v9944_v47 = vld [vmem:[#allocation4 + $0x160] ss:$16 sps:$4 sm:$0xff]  }
  0xb0   :  { %v143_v46 = vld [vmem:[#allocation2 + $0x8] sm:$0xff]  ;;  %v9946_v50 = vld [vmem:[#allocation4 + $0x184] ss:$16 sps:$4 sm:$0xff]   ;;  %v9950_v52 = vld [vmem:[#allocation4 + $0x180] ss:$16 sps:$4 sm:$0xff]  }
  0xb1   :  { %v151_v48 = vpack.c.bf16 %v143_v46, %v143_v46  ;;  %v9945_v49 = vld [vmem:[#allocation4 + $0x168] ss:$16 sps:$4 sm:$0xff]   ;;  %v9948_v51 = vld [vmem:[#allocation4 + $0x18c] ss:$16 sps:$4 sm:$0xff]   ;;  %v9952_v54 = vld [vmem:[#allocation4 + $0x1a4] ss:$16 sps:$4 sm:$0xff]  }
  0xb2   :  { %1703 = vmatpush1.bf16.msra.mxu0 %v9902_v18  ;;  %1867 = vmatpush1.bf16.msra.mxu1 %v9903_v19  ;;  %v9951_v53 = vld [vmem:[#allocation4 + $0x188] ss:$16 sps:$4 sm:$0xff]   ;;  %v9954_v55 = vld [vmem:[#allocation4 + $0x1ac] ss:$16 sps:$4 sm:$0xff]   ;;  %v9956_v56 = vld [vmem:[#allocation4 + $0x1a0] ss:$16 sps:$4 sm:$0xff]  }
  0xb3   :  { %1704 = vmatprep.subr.bf16.mxu0 %v9904_v20  ;;  %1868 = vmatprep.subr.bf16.mxu1 %v9906_v21  ;;  %v9957_v57 = vld [vmem:[#allocation4 + $0x1a8] ss:$16 sps:$4 sm:$0xff]   ;;  %v9958_v58 = vld [vmem:[#allocation4 + $0x1c4] ss:$16 sps:$4 sm:$0xff]   ;;  %v9960_v59 = vld [vmem:[#allocation4 + $0x1cc] ss:$16 sps:$4 sm:$0xff]  }
  0xb4   :  { %1726 = vmatprep.mubr.bf16.mxu0 %v151_v48  ;;  %1890 = vmatprep.mubr.bf16.mxu1 %v151_v48  ;;  %v9962_v60 = vld [vmem:[#allocation4 + $0x1c0] ss:$16 sps:$4 sm:$0xff]   ;;  %v9963_v61 = vld [vmem:[#allocation4 + $0x1c8] ss:$16 sps:$4 sm:$0xff]   ;;  %v9964_v62 = vld [vmem:[#allocation4 + $0x1e4] ss:$16 sps:$4 sm:$0xff]  }
  0xb5   :  { %v9966_v63 = vld [vmem:[#allocation4 + $0x1ec] ss:$16 sps:$4 sm:$0xff]   ;;  %v9968_v0 = vld [vmem:[#allocation4 + $0x1e0] ss:$16 sps:$4 sm:$0xff]   ;;  %v9969_v1 = vld [vmem:[#allocation4 + $0x1e8] ss:$16 sps:$4 sm:$0xff]  }
  0xb6   :  { %1705 = vmatpush1.bf16.msra.mxu0 %v9908_v22  ;;  %1869 = vmatpush1.bf16.msra.mxu1 %v9909_v23  ;;  %v142_v2 = vld [vmem:[#allocation2] sm:$0xff]  ;;  %v9975_v4 = vld [vmem:[#allocation4 + $0x20c] ss:$16 sps:$4 sm:$0xff]   ;;  %v9973_v7 = vld [vmem:[#allocation4 + $0x208] ss:$16 sps:$4 sm:$0xff]  }
  0xb7   :  { %1706 = vmatprep.subr.bf16.mxu0 %v9910_v24  ;;  %1870 = vmatprep.subr.bf16.mxu1 %v9912_v25  ;;  %v9972_v3 = vld [vmem:[#allocation4 + $0x204] ss:$16 sps:$4 sm:$0xff]   ;;  %v150_v5 = vpack.c.bf16 %v142_v2, %v142_v2  ;;  %v9970_v6 = vld [vmem:[#allocation4 + $0x200] ss:$16 sps:$4 sm:$0xff]   ;;  %v9981_v9 = vld [vmem:[#allocation4 + $0x22c] ss:$16 sps:$4 sm:$0xff]  }
  0xb8   :  { %v9978_v8 = vld [vmem:[#allocation4 + $0x224] ss:$16 sps:$4 sm:$0xff]   ;;  %v9976_v10 = vld [vmem:[#allocation4 + $0x220] ss:$16 sps:$4 sm:$0xff]   ;;  %v9979_v11 = vld [vmem:[#allocation4 + $0x228] ss:$16 sps:$4 sm:$0xff]  }
  0xb9   :  { %v9984_v12 = vld [vmem:[#allocation4 + $0x244] ss:$16 sps:$4 sm:$0xff]   ;;  %v9987_v13 = vld [vmem:[#allocation4 + $0x24c] ss:$16 sps:$4 sm:$0xff]   ;;  %v9982_v14 = vld [vmem:[#allocation4 + $0x240] ss:$16 sps:$4 sm:$0xff]  }
  0xba   :  { %1707 = vmatpush1.bf16.msra.mxu0 %v9914_v26  ;;  %1871 = vmatpush1.bf16.msra.mxu1 %v9915_v27  ;;  %v9985_v15 = vld [vmem:[#allocation4 + $0x248] ss:$16 sps:$4 sm:$0xff]   ;;  %v9990_v16 = vld [vmem:[#allocation4 + $0x264] ss:$16 sps:$4 sm:$0xff]   ;;  %v9993_v17 = vld [vmem:[#allocation4 + $0x26c] ss:$16 sps:$4 sm:$0xff]  }
  0xbb   :  { %1708 = vmatprep.subr.bf16.mxu0 %v9916_v28  ;;  %1872 = vmatprep.subr.bf16.mxu1 %v9918_v29  ;;  %v9988_v18 = vld [vmem:[#allocation4 + $0x260] ss:$16 sps:$4 sm:$0xff]   ;;  %v9991_v19 = vld [vmem:[#allocation4 + $0x268] ss:$16 sps:$4 sm:$0xff]   ;;  %v9996_v20 = vld [vmem:[#allocation4 + $0x284] ss:$16 sps:$4 sm:$0xff]  }
  0xbc   :  { %v9999_v21 = vld [vmem:[#allocation4 + $0x28c] ss:$16 sps:$4 sm:$0xff]   ;;  %v9994_v22 = vld [vmem:[#allocation4 + $0x280] ss:$16 sps:$4 sm:$0xff]   ;;  %v9997_v23 = vld [vmem:[#allocation4 + $0x288] ss:$16 sps:$4 sm:$0xff]  }
  0xbd   :  { %v10002_v24 = vld [vmem:[#allocation4 + $0x2a4] ss:$16 sps:$4 sm:$0xff]   ;;  %v10005_v25 = vld [vmem:[#allocation4 + $0x2ac] ss:$16 sps:$4 sm:$0xff]   ;;  %v10000_v26 = vld [vmem:[#allocation4 + $0x2a0] ss:$16 sps:$4 sm:$0xff]  }
  0xbe   :  { %1709 = vmatpush1.bf16.msra.mxu0 %v9920_v30  ;;  %1873 = vmatpush1.bf16.msra.mxu1 %v9921_v31  ;;  %v10003_v27 = vld [vmem:[#allocation4 + $0x2a8] ss:$16 sps:$4 sm:$0xff]   ;;  %v10008_v28 = vld [vmem:[#allocation4 + $0x2c4] ss:$16 sps:$4 sm:$0xff]   ;;  %v10011_v29 = vld [vmem:[#allocation4 + $0x2cc] ss:$16 sps:$4 sm:$0xff]  }
  0xbf   :  { %1710 = vmatprep.subr.bf16.mxu0 %v9922_v32  ;;  %1874 = vmatprep.subr.bf16.mxu1 %v9924_v33  ;;  %v145_v30 = vld [vmem:[#allocation2 + $0x18] sm:$0xff]  ;;  %v10006_v31 = vld [vmem:[#allocation4 + $0x2c0] ss:$16 sps:$4 sm:$0xff]   ;;  %v10032_v46 = vld [vmem:[#allocation4 + $0x344] ss:$16 sps:$4 sm:$0xff]  }
  0xc0   :  { %v153_v32 = vpack.c.bf16 %v145_v30, %v145_v30  ;;  %v10009_v33 = vld [vmem:[#allocation4 + $0x2c8] ss:$16 sps:$4 sm:$0xff]   ;;  %v10030_v48 = vld [vmem:[#allocation4 + $0x340] ss:$16 sps:$4 sm:$0xff]   ;;  %v10062_v2 = vld [vmem:[#allocation4 + $0x3e4] ss:$16 sps:$4 sm:$0xff]  }
  0xc1   :  { %v10098_v30 = vld [vmem:[#allocation4 + $0x4a4] ss:$16 sps:$4 sm:$0xff]  }
  0xc2   :  { %1711 = vmatpush1.bf16.msra.mxu0 %v9926_v34  ;;  %1875 = vmatpush1.bf16.msra.mxu1 %v9927_v35  ;;  %v10014_v34 = vld [vmem:[#allocation4 + $0x2e4] ss:$16 sps:$4 sm:$0xff]   ;;  %v10017_v35 = vld [vmem:[#allocation4 + $0x2ec] ss:$16 sps:$4 sm:$0xff]  }
  0xc3   :  { %1712 = vmatprep.subr.bf16.mxu0 %v9928_v36  ;;  %1876 = vmatprep.subr.bf16.mxu1 %v9930_v37  ;;  %v10012_v36 = vld [vmem:[#allocation4 + $0x2e0] ss:$16 sps:$4 sm:$0xff]   ;;  %v10015_v37 = vld [vmem:[#allocation4 + $0x2e8] ss:$16 sps:$4 sm:$0xff]  }
  0xc6   :  { %1713 = vmatpush1.bf16.msra.mxu0 %v9932_v38  ;;  %1877 = vmatpush1.bf16.msra.mxu1 %v9933_v39  ;;  %v10020_v38 = vld [vmem:[#allocation4 + $0x304] ss:$16 sps:$4 sm:$0xff]   ;;  %v10023_v39 = vld [vmem:[#allocation4 + $0x30c] ss:$16 sps:$4 sm:$0xff]  }
  0xc7   :  { %1714 = vmatprep.subr.bf16.mxu0 %v9934_v40  ;;  %1878 = vmatprep.subr.bf16.mxu1 %v9936_v41  ;;  %v10018_v40 = vld [vmem:[#allocation4 + $0x300] ss:$16 sps:$4 sm:$0xff]   ;;  %v10021_v41 = vld [vmem:[#allocation4 + $0x308] ss:$16 sps:$4 sm:$0xff]  }
  0xca   :  { %1715 = vmatpush1.bf16.msra.mxu0 %v9938_v42  ;;  %1879 = vmatpush1.bf16.msra.mxu1 %v9939_v43  ;;  %v10026_v42 = vld [vmem:[#allocation4 + $0x324] ss:$16 sps:$4 sm:$0xff]   ;;  %v10029_v43 = vld [vmem:[#allocation4 + $0x32c] ss:$16 sps:$4 sm:$0xff]  }
  0xcb   :  { %1716 = vmatprep.subr.bf16.mxu0 %v9940_v44  ;;  %1880 = vmatprep.subr.bf16.mxu1 %v9942_v45  ;;  %v10024_v44 = vld [vmem:[#allocation4 + $0x320] ss:$16 sps:$4 sm:$0xff]   ;;  %v10027_v45 = vld [vmem:[#allocation4 + $0x328] ss:$16 sps:$4 sm:$0xff]  }
  0xce   :  { %1717 = vmatpush1.bf16.msra.mxu0 %v9944_v47  ;;  %1881 = vmatpush1.bf16.msra.mxu1 %v9945_v49  ;;  %v10035_v47 = vld [vmem:[#allocation4 + $0x34c] ss:$16 sps:$4 sm:$0xff]   ;;  %v10033_v49 = vld [vmem:[#allocation4 + $0x348] ss:$16 sps:$4 sm:$0xff]  }
  0xcf   :  { %1718 = vmatprep.subr.bf16.mxu0 %v9946_v50  ;;  %1882 = vmatprep.subr.bf16.mxu1 %v9948_v51  ;;  %v10038_v50 = vld [vmem:[#allocation4 + $0x364] ss:$16 sps:$4 sm:$0xff]   ;;  %v10041_v51 = vld [vmem:[#allocation4 + $0x36c] ss:$16 sps:$4 sm:$0xff]  }
  0xd2   :  { %1719 = vmatpush1.bf16.msra.mxu0 %v9950_v52  ;;  %1883 = vmatpush1.bf16.msra.mxu1 %v9951_v53  ;;  %v10036_v52 = vld [vmem:[#allocation4 + $0x360] ss:$16 sps:$4 sm:$0xff]   ;;  %v10039_v53 = vld [vmem:[#allocation4 + $0x368] ss:$16 sps:$4 sm:$0xff]  }
  0xd3   :  { %1720 = vmatprep.subr.bf16.mxu0 %v9952_v54  ;;  %1884 = vmatprep.subr.bf16.mxu1 %v9954_v55  ;;  %v10044_v54 = vld [vmem:[#allocation4 + $0x384] ss:$16 sps:$4 sm:$0xff]   ;;  %v10047_v55 = vld [vmem:[#allocation4 + $0x38c] ss:$16 sps:$4 sm:$0xff]  }
  0xd6   :  { %1721 = vmatpush1.bf16.msra.mxu0 %v9956_v56  ;;  %1885 = vmatpush1.bf16.msra.mxu1 %v9957_v57  ;;  %v10042_v56 = vld [vmem:[#allocation4 + $0x380] ss:$16 sps:$4 sm:$0xff]   ;;  %v10045_v57 = vld [vmem:[#allocation4 + $0x388] ss:$16 sps:$4 sm:$0xff]  }
  0xd7   :  { %1722 = vmatprep.subr.bf16.mxu0 %v9958_v58  ;;  %1886 = vmatprep.subr.bf16.mxu1 %v9960_v59  ;;  %v10050_v58 = vld [vmem:[#allocation4 + $0x3a4] ss:$16 sps:$4 sm:$0xff]   ;;  %v10053_v59 = vld [vmem:[#allocation4 + $0x3ac] ss:$16 sps:$4 sm:$0xff]  }
  0xda   :  { %1723 = vmatpush1.bf16.msra.mxu0 %v9962_v60  ;;  %1887 = vmatpush1.bf16.msra.mxu1 %v9963_v61  ;;  %v10048_v60 = vld [vmem:[#allocation4 + $0x3a0] ss:$16 sps:$4 sm:$0xff]   ;;  %v10051_v61 = vld [vmem:[#allocation4 + $0x3a8] ss:$16 sps:$4 sm:$0xff]  }
  0xdb   :  { %1724 = vmatprep.subr.bf16.mxu0 %v9964_v62  ;;  %1888 = vmatprep.subr.bf16.mxu1 %v9966_v63  ;;  %v10056_v62 = vld [vmem:[#allocation4 + $0x3c4] ss:$16 sps:$4 sm:$0xff]   ;;  %v10059_v63 = vld [vmem:[#allocation4 + $0x3cc] ss:$16 sps:$4 sm:$0xff]  }
  0xde   :  { %1725 = vmatpush1.bf16.msra.mxu0 %v9968_v0  ;;  %1889 = vmatpush1.bf16.msra.mxu1 %v9969_v1  ;;  %v10054_v0 = vld [vmem:[#allocation4 + $0x3c0] ss:$16 sps:$4 sm:$0xff]   ;;  %v10057_v1 = vld [vmem:[#allocation4 + $0x3c8] ss:$16 sps:$4 sm:$0xff]  }
  0xdf   :  { %1735 = vmatprep.subr.bf16.mxu0 %v9972_v3  ;;  %1899 = vmatprep.subr.bf16.mxu1 %v9975_v4  ;;  %v10065_v3 = vld [vmem:[#allocation4 + $0x3ec] ss:$16 sps:$4 sm:$0xff]   ;;  %v10060_v4 = vld [vmem:[#allocation4 + $0x3e0] ss:$16 sps:$4 sm:$0xff]  }
  0xe1   :  { %1727 = vmatmul.mubr.bf16.vlgmr.msra.gmra.mrb[0].mxu0 %v150_v5  ;;  %1891 = vmatmul.mubr.bf16.vlgmr.msra.gmra.mrb[0].mxu1 %v150_v5  ;;  %v10063_v5 = vld [vmem:[#allocation4 + $0x3e8] ss:$16 sps:$4 sm:$0xff]  }
  0xe2   :  { %1736 = vmatpush1.bf16.msra.mxu0 %v9970_v6  ;;  %1900 = vmatpush1.bf16.msra.mxu1 %v9973_v7  ;;  %v10068_v6 = vld [vmem:[#allocation4 + $0x404] ss:$16 sps:$4 sm:$0xff]  }
  0xe3   :  { %1737 = vmatprep.subr.bf16.mxu0 %v9978_v8  ;;  %1901 = vmatprep.subr.bf16.mxu1 %v9981_v9  ;;  %v144_v7 = vld [vmem:[#allocation2 + $0x10] sm:$0xff]  ;;  %v10071_v8 = vld [vmem:[#allocation4 + $0x40c] ss:$16 sps:$4 sm:$0xff]  }
  0xe4   :  { %1767 = vmatprep.mubr.bf16.mxu0 %v153_v32  ;;  %1931 = vmatprep.mubr.bf16.mxu1 %v153_v32  ;;  %v10066_v9 = vld [vmem:[#allocation4 + $0x400] ss:$16 sps:$4 sm:$0xff]  }
  0xe5   :  { %v10096_v32 = vld [vmem:[#allocation4 + $0x4a0] ss:$16 sps:$4 sm:$0xff]  }
  0xe6   :  { %1738 = vmatpush1.bf16.msra.mxu0 %v9976_v10  ;;  %1902 = vmatpush1.bf16.msra.mxu1 %v9979_v11  ;;  %v10069_v10 = vld [vmem:[#allocation4 + $0x408] ss:$16 sps:$4 sm:$0xff]   ;;  %v152_v11 = vpack.c.bf16 %v144_v7, %v144_v7  ;;  %v10161_v7 = vld [vmem:[#allocation4 + $0x5ec] ss:$16 sps:$4 sm:$0xff]  }
  0xe7   :  { %1739 = vmatprep.subr.bf16.mxu0 %v9984_v12  ;;  %1903 = vmatprep.subr.bf16.mxu1 %v9987_v13  ;;  %v10074_v12 = vld [vmem:[#allocation4 + $0x424] ss:$16 sps:$4 sm:$0xff]   ;;  %v10077_v13 = vld [vmem:[#allocation4 + $0x42c] ss:$16 sps:$4 sm:$0xff]  }
  0xea   :  { %1740 = vmatpush1.bf16.msra.mxu0 %v9982_v14  ;;  %1904 = vmatpush1.bf16.msra.mxu1 %v9985_v15  ;;  %v147_v14 = vld [vmem:[#allocation2 + $0x28] sm:$0xff] }
  0xeb   :  { %1741 = vmatprep.subr.bf16.mxu0 %v9990_v16  ;;  %1905 = vmatprep.subr.bf16.mxu1 %v9993_v17  ;;  %v155_v15 = vpack.c.bf16 %v147_v14, %v147_v14  ;;  %v10072_v16 = vld [vmem:[#allocation4 + $0x420] ss:$16 sps:$4 sm:$0xff]   ;;  %v10075_v17 = vld [vmem:[#allocation4 + $0x428] ss:$16 sps:$4 sm:$0xff]  }
  0xec   :  { %v10162_v14 = vld [vmem:[#allocation4 + $0x600] ss:$16 sps:$4 sm:$0xff]  }
  0xee   :  { %1742 = vmatpush1.bf16.msra.mxu0 %v9988_v18  ;;  %1906 = vmatpush1.bf16.msra.mxu1 %v9991_v19  ;;  %v10080_v18 = vld [vmem:[#allocation4 + $0x444] ss:$16 sps:$4 sm:$0xff]   ;;  %v10083_v19 = vld [vmem:[#allocation4 + $0x44c] ss:$16 sps:$4 sm:$0xff]  }
  0xef   :  { %1743 = vmatprep.subr.bf16.mxu0 %v9996_v20  ;;  %1907 = vmatprep.subr.bf16.mxu1 %v9999_v21  ;;  %v10078_v20 = vld [vmem:[#allocation4 + $0x440] ss:$16 sps:$4 sm:$0xff]   ;;  %v10081_v21 = vld [vmem:[#allocation4 + $0x448] ss:$16 sps:$4 sm:$0xff]  }
  0xf2   :  { %1744 = vmatpush1.bf16.msra.mxu0 %v9994_v22  ;;  %1908 = vmatpush1.bf16.msra.mxu1 %v9997_v23  ;;  %v10086_v22 = vld [vmem:[#allocation4 + $0x464] ss:$16 sps:$4 sm:$0xff]   ;;  %v10089_v23 = vld [vmem:[#allocation4 + $0x46c] ss:$16 sps:$4 sm:$0xff]  }
  0xf3   :  { %1745 = vmatprep.subr.bf16.mxu0 %v10002_v24  ;;  %1909 = vmatprep.subr.bf16.mxu1 %v10005_v25  ;;  %v10084_v24 = vld [vmem:[#allocation4 + $0x460] ss:$16 sps:$4 sm:$0xff]   ;;  %v10087_v25 = vld [vmem:[#allocation4 + $0x468] ss:$16 sps:$4 sm:$0xff]  }
  0xf6   :  { %1746 = vmatpush1.bf16.msra.mxu0 %v10000_v26  ;;  %1910 = vmatpush1.bf16.msra.mxu1 %v10003_v27  ;;  %v10092_v26 = vld [vmem:[#allocation4 + $0x484] ss:$16 sps:$4 sm:$0xff]   ;;  %v10095_v27 = vld [vmem:[#allocation4 + $0x48c] ss:$16 sps:$4 sm:$0xff]  }
  0xf7   :  { %1747 = vmatprep.subr.bf16.mxu0 %v10008_v28  ;;  %1911 = vmatprep.subr.bf16.mxu1 %v10011_v29  ;;  %v10090_v28 = vld [vmem:[#allocation4 + $0x480] ss:$16 sps:$4 sm:$0xff]   ;;  %v10093_v29 = vld [vmem:[#allocation4 + $0x488] ss:$16 sps:$4 sm:$0xff]  }
  0xfa   :  { %1748 = vmatpush1.bf16.msra.mxu0 %v10006_v31  ;;  %1912 = vmatpush1.bf16.msra.mxu1 %v10009_v33  ;;  %v10101_v31 = vld [vmem:[#allocation4 + $0x4ac] ss:$16 sps:$4 sm:$0xff]   ;;  %v10099_v33 = vld [vmem:[#allocation4 + $0x4a8] ss:$16 sps:$4 sm:$0xff]  }
  0xfb   :  { %1749 = vmatprep.subr.bf16.mxu0 %v10014_v34  ;;  %1913 = vmatprep.subr.bf16.mxu1 %v10017_v35  ;;  %v10104_v34 = vld [vmem:[#allocation4 + $0x4c4] ss:$16 sps:$4 sm:$0xff]   ;;  %v10107_v35 = vld [vmem:[#allocation4 + $0x4cc] ss:$16 sps:$4 sm:$0xff]  }
  0xfe   :  { %1750 = vmatpush1.bf16.msra.mxu0 %v10012_v36  ;;  %1914 = vmatpush1.bf16.msra.mxu1 %v10015_v37  ;;  %v10102_v36 = vld [vmem:[#allocation4 + $0x4c0] ss:$16 sps:$4 sm:$0xff]   ;;  %v10105_v37 = vld [vmem:[#allocation4 + $0x4c8] ss:$16 sps:$4 sm:$0xff]  }
  0xff   :  { %1751 = vmatprep.subr.bf16.mxu0 %v10020_v38  ;;  %1915 = vmatprep.subr.bf16.mxu1 %v10023_v39  ;;  %v10110_v38 = vld [vmem:[#allocation4 + $0x4e4] ss:$16 sps:$4 sm:$0xff]   ;;  %v10113_v39 = vld [vmem:[#allocation4 + $0x4ec] ss:$16 sps:$4 sm:$0xff]  }
 0x102   :  { %1752 = vmatpush1.bf16.msra.mxu0 %v10018_v40  ;;  %1916 = vmatpush1.bf16.msra.mxu1 %v10021_v41  ;;  %v10108_v40 = vld [vmem:[#allocation4 + $0x4e0] ss:$16 sps:$4 sm:$0xff]   ;;  %v10111_v41 = vld [vmem:[#allocation4 + $0x4e8] ss:$16 sps:$4 sm:$0xff]  }
 0x103   :  { %1753 = vmatprep.subr.bf16.mxu0 %v10026_v42  ;;  %1917 = vmatprep.subr.bf16.mxu1 %v10029_v43  ;;  %v10116_v42 = vld [vmem:[#allocation4 + $0x504] ss:$16 sps:$4 sm:$0xff]   ;;  %v10119_v43 = vld [vmem:[#allocation4 + $0x50c] ss:$16 sps:$4 sm:$0xff]  }
 0x106   :  { %1754 = vmatpush1.bf16.msra.mxu0 %v10024_v44  ;;  %1918 = vmatpush1.bf16.msra.mxu1 %v10027_v45  ;;  %v10114_v44 = vld [vmem:[#allocation4 + $0x500] ss:$16 sps:$4 sm:$0xff]   ;;  %v10117_v45 = vld [vmem:[#allocation4 + $0x508] ss:$16 sps:$4 sm:$0xff]  }
 0x107   :  { %1755 = vmatprep.subr.bf16.mxu0 %v10032_v46  ;;  %1919 = vmatprep.subr.bf16.mxu1 %v10035_v47  ;;  %v10122_v46 = vld [vmem:[#allocation4 + $0x524] ss:$16 sps:$4 sm:$0xff]   ;;  %v10125_v47 = vld [vmem:[#allocation4 + $0x52c] ss:$16 sps:$4 sm:$0xff]  }
 0x10a   :  { %1756 = vmatpush1.bf16.msra.mxu0 %v10030_v48  ;;  %1920 = vmatpush1.bf16.msra.mxu1 %v10033_v49  ;;  %v10120_v48 = vld [vmem:[#allocation4 + $0x520] ss:$16 sps:$4 sm:$0xff]   ;;  %v10123_v49 = vld [vmem:[#allocation4 + $0x528] ss:$16 sps:$4 sm:$0xff]  }
 0x10b   :  { %1757 = vmatprep.subr.bf16.mxu0 %v10038_v50  ;;  %1921 = vmatprep.subr.bf16.mxu1 %v10041_v51  ;;  %v10128_v50 = vld [vmem:[#allocation4 + $0x544] ss:$16 sps:$4 sm:$0xff]   ;;  %v10131_v51 = vld [vmem:[#allocation4 + $0x54c] ss:$16 sps:$4 sm:$0xff]  }
 0x10e   :  { %1758 = vmatpush1.bf16.msra.mxu0 %v10036_v52  ;;  %1922 = vmatpush1.bf16.msra.mxu1 %v10039_v53  ;;  %v10126_v52 = vld [vmem:[#allocation4 + $0x540] ss:$16 sps:$4 sm:$0xff]   ;;  %v10129_v53 = vld [vmem:[#allocation4 + $0x548] ss:$16 sps:$4 sm:$0xff]  }
 0x10f   :  { %1759 = vmatprep.subr.bf16.mxu0 %v10044_v54  ;;  %1923 = vmatprep.subr.bf16.mxu1 %v10047_v55  ;;  %v10134_v54 = vld [vmem:[#allocation4 + $0x564] ss:$16 sps:$4 sm:$0xff]   ;;  %v10137_v55 = vld [vmem:[#allocation4 + $0x56c] ss:$16 sps:$4 sm:$0xff]  }
 0x112   :  { %1760 = vmatpush1.bf16.msra.mxu0 %v10042_v56  ;;  %1924 = vmatpush1.bf16.msra.mxu1 %v10045_v57  ;;  %v10132_v56 = vld [vmem:[#allocation4 + $0x560] ss:$16 sps:$4 sm:$0xff]   ;;  %v10135_v57 = vld [vmem:[#allocation4 + $0x568] ss:$16 sps:$4 sm:$0xff]  }
 0x113   :  { %1761 = vmatprep.subr.bf16.mxu0 %v10050_v58  ;;  %1925 = vmatprep.subr.bf16.mxu1 %v10053_v59  ;;  %v10140_v58 = vld [vmem:[#allocation4 + $0x584] ss:$16 sps:$4 sm:$0xff]   ;;  %v10143_v59 = vld [vmem:[#allocation4 + $0x58c] ss:$16 sps:$4 sm:$0xff]  }
 0x116   :  { %1762 = vmatpush1.bf16.msra.mxu0 %v10048_v60  ;;  %1926 = vmatpush1.bf16.msra.mxu1 %v10051_v61  ;;  %v10138_v60 = vld [vmem:[#allocation4 + $0x580] ss:$16 sps:$4 sm:$0xff]   ;;  %v10141_v61 = vld [vmem:[#allocation4 + $0x588] ss:$16 sps:$4 sm:$0xff]  }
 0x117   :  { %1763 = vmatprep.subr.bf16.mxu0 %v10056_v62  ;;  %1927 = vmatprep.subr.bf16.mxu1 %v10059_v63  ;;  %v10146_v62 = vld [vmem:[#allocation4 + $0x5a4] ss:$16 sps:$4 sm:$0xff]   ;;  %v10149_v63 = vld [vmem:[#allocation4 + $0x5ac] ss:$16 sps:$4 sm:$0xff]  }
 0x11a   :  { %1764 = vmatpush1.bf16.msra.mxu0 %v10054_v0  ;;  %1928 = vmatpush1.bf16.msra.mxu1 %v10057_v1  ;;  %v10144_v0 = vld [vmem:[#allocation4 + $0x5a0] ss:$16 sps:$4 sm:$0xff]   ;;  %v10147_v1 = vld [vmem:[#allocation4 + $0x5a8] ss:$16 sps:$4 sm:$0xff]  }
 0x11b   :  { %1765 = vmatprep.subr.bf16.mxu0 %v10062_v2  ;;  %1929 = vmatprep.subr.bf16.mxu1 %v10065_v3  ;;  %v10152_v2 = vld [vmem:[#allocation4 + $0x5c4] ss:$16 sps:$4 sm:$0xff]   ;;  %v10155_v3 = vld [vmem:[#allocation4 + $0x5cc] ss:$16 sps:$4 sm:$0xff]  }
 0x11e   :  { %1766 = vmatpush1.bf16.msra.mxu0 %v10060_v4  ;;  %1930 = vmatpush1.bf16.msra.mxu1 %v10063_v5  ;;  %v10150_v4 = vld [vmem:[#allocation4 + $0x5c0] ss:$16 sps:$4 sm:$0xff]   ;;  %v10153_v5 = vld [vmem:[#allocation4 + $0x5c8] ss:$16 sps:$4 sm:$0xff]  }
 0x11f   :  { %1776 = vmatprep.subr.bf16.mxu0 %v10068_v6  ;;  %1940 = vmatprep.subr.bf16.mxu1 %v10071_v8  ;;  %v10158_v6 = vld [vmem:[#allocation4 + $0x5e4] ss:$16 sps:$4 sm:$0xff]   ;;  %v10156_v8 = vld [vmem:[#allocation4 + $0x5e0] ss:$16 sps:$4 sm:$0xff]  }
 0x121   :  { %1768 = vmatmul.mubr.bf16.vlgmr.msra.gmra.mrb[0].mxu0 %v152_v11  ;;  %1932 = vmatmul.mubr.bf16.vlgmr.msra.gmra.mrb[0].mxu1 %v152_v11  ;;  %v10164_v11 = vld [vmem:[#allocation4 + $0x604] ss:$16 sps:$4 sm:$0xff]  }
 0x122   :  { %1777 = vmatpush1.bf16.msra.mxu0 %v10066_v9  ;;  %1941 = vmatpush1.bf16.msra.mxu1 %v10069_v10  ;;  %v10159_v9 = vld [vmem:[#allocation4 + $0x5e8] ss:$16 sps:$4 sm:$0xff]   ;;  %v146_v10 = vld [vmem:[#allocation2 + $0x20] sm:$0xff] }
 0x123   :  { %1778 = vmatprep.subr.bf16.mxu0 %v10074_v12  ;;  %1942 = vmatprep.subr.bf16.mxu1 %v10077_v13  ;;  %v10167_v12 = vld [vmem:[#allocation4 + $0x60c] ss:$16 sps:$4 sm:$0xff]  }
 0x124   :  { %1808 = vmatprep.mubr.bf16.mxu0 %v155_v15  ;;  %1972 = vmatprep.mubr.bf16.mxu1 %v155_v15  ;;  %v149_v13 = vld [vmem:[#allocation2 + $0x38] sm:$0xff] }
 0x125   :  { %v10165_v15 = vld [vmem:[#allocation4 + $0x608] ss:$16 sps:$4 sm:$0xff]  }
 0x126   :  { %1779 = vmatpush1.bf16.msra.mxu0 %v10072_v16  ;;  %1943 = vmatpush1.bf16.msra.mxu1 %v10075_v17  ;;  %v154_v16 = vpack.c.bf16 %v146_v10, %v146_v10  ;;  %v10170_v17 = vld [vmem:[#allocation4 + $0x624] ss:$16 sps:$4 sm:$0xff]  }
 0x127   :  { %1780 = vmatprep.subr.bf16.mxu0 %v10080_v18  ;;  %1944 = vmatprep.subr.bf16.mxu1 %v10083_v19  ;;  %v10173_v18 = vld [vmem:[#allocation4 + $0x62c] ss:$16 sps:$4 sm:$0xff]   ;;  %v157_v19 = vpack.c.bf16 %v149_v13, %v149_v13  ;;  %v10254_v10 = vld [vmem:[#allocation4 + $0x7e4] ss:$16 sps:$4 sm:$0xff]   ;;  %v10255_v13 = vld [vmem:[#allocation4 + $0x7e8] ss:$16 sps:$4 sm:$0xff]  }
 0x12a   :  { %1781 = vmatpush1.bf16.msra.mxu0 %v10078_v20  ;;  %1945 = vmatpush1.bf16.msra.mxu1 %v10081_v21  ;;  %v10168_v20 = vld [vmem:[#allocation4 + $0x620] ss:$16 sps:$4 sm:$0xff]   ;;  %v10171_v21 = vld [vmem:[#allocation4 + $0x628] ss:$16 sps:$4 sm:$0xff]  }
 0x12b   :  { %1782 = vmatprep.subr.bf16.mxu0 %v10086_v22  ;;  %1946 = vmatprep.subr.bf16.mxu1 %v10089_v23  ;;  %v10176_v22 = vld [vmem:[#allocation4 + $0x644] ss:$16 sps:$4 sm:$0xff]   ;;  %v10179_v23 = vld [vmem:[#allocation4 + $0x64c] ss:$16 sps:$4 sm:$0xff]  }
 0x12e   :  { %1783 = vmatpush1.bf16.msra.mxu0 %v10084_v24  ;;  %1947 = vmatpush1.bf16.msra.mxu1 %v10087_v25  ;;  %v10174_v24 = vld [vmem:[#allocation4 + $0x640] ss:$16 sps:$4 sm:$0xff]   ;;  %v10177_v25 = vld [vmem:[#allocation4 + $0x648] ss:$16 sps:$4 sm:$0xff]  }
 0x12f   :  { %1784 = vmatprep.subr.bf16.mxu0 %v10092_v26  ;;  %1948 = vmatprep.subr.bf16.mxu1 %v10095_v27  ;;  %v10182_v26 = vld [vmem:[#allocation4 + $0x664] ss:$16 sps:$4 sm:$0xff]   ;;  %v10185_v27 = vld [vmem:[#allocation4 + $0x66c] ss:$16 sps:$4 sm:$0xff]  }
 0x132   :  { %1785 = vmatpush1.bf16.msra.mxu0 %v10090_v28  ;;  %1949 = vmatpush1.bf16.msra.mxu1 %v10093_v29  ;;  %v10180_v28 = vld [vmem:[#allocation4 + $0x660] ss:$16 sps:$4 sm:$0xff]   ;;  %v10183_v29 = vld [vmem:[#allocation4 + $0x668] ss:$16 sps:$4 sm:$0xff]  }
 0x133   :  { %1786 = vmatprep.subr.bf16.mxu0 %v10098_v30  ;;  %1950 = vmatprep.subr.bf16.mxu1 %v10101_v31  ;;  %v10188_v30 = vld [vmem:[#allocation4 + $0x684] ss:$16 sps:$4 sm:$0xff]   ;;  %v10191_v31 = vld [vmem:[#allocation4 + $0x68c] ss:$16 sps:$4 sm:$0xff]  }
 0x136   :  { %1787 = vmatpush1.bf16.msra.mxu0 %v10096_v32  ;;  %1951 = vmatpush1.bf16.msra.mxu1 %v10099_v33  ;;  %v10186_v32 = vld [vmem:[#allocation4 + $0x680] ss:$16 sps:$4 sm:$0xff]   ;;  %v10189_v33 = vld [vmem:[#allocation4 + $0x688] ss:$16 sps:$4 sm:$0xff]  }
 0x137   :  { %1788 = vmatprep.subr.bf16.mxu0 %v10104_v34  ;;  %1952 = vmatprep.subr.bf16.mxu1 %v10107_v35  ;;  %v10194_v34 = vld [vmem:[#allocation4 + $0x6a4] ss:$16 sps:$4 sm:$0xff]   ;;  %v10197_v35 = vld [vmem:[#allocation4 + $0x6ac] ss:$16 sps:$4 sm:$0xff]  }
 0x13a   :  { %1789 = vmatpush1.bf16.msra.mxu0 %v10102_v36  ;;  %1953 = vmatpush1.bf16.msra.mxu1 %v10105_v37  ;;  %v10192_v36 = vld [vmem:[#allocation4 + $0x6a0] ss:$16 sps:$4 sm:$0xff]   ;;  %v10195_v37 = vld [vmem:[#allocation4 + $0x6a8] ss:$16 sps:$4 sm:$0xff]  }
 0x13b   :  { %1790 = vmatprep.subr.bf16.mxu0 %v10110_v38  ;;  %1954 = vmatprep.subr.bf16.mxu1 %v10113_v39  ;;  %v10200_v38 = vld [vmem:[#allocation4 + $0x6c4] ss:$16 sps:$4 sm:$0xff]   ;;  %v10203_v39 = vld [vmem:[#allocation4 + $0x6cc] ss:$16 sps:$4 sm:$0xff]  }
 0x13e   :  { %1791 = vmatpush1.bf16.msra.mxu0 %v10108_v40  ;;  %1955 = vmatpush1.bf16.msra.mxu1 %v10111_v41  ;;  %v10198_v40 = vld [vmem:[#allocation4 + $0x6c0] ss:$16 sps:$4 sm:$0xff]   ;;  %v10201_v41 = vld [vmem:[#allocation4 + $0x6c8] ss:$16 sps:$4 sm:$0xff]  }
 0x13f   :  { %1792 = vmatprep.subr.bf16.mxu0 %v10116_v42  ;;  %1956 = vmatprep.subr.bf16.mxu1 %v10119_v43  ;;  %v10206_v42 = vld [vmem:[#allocation4 + $0x6e4] ss:$16 sps:$4 sm:$0xff]   ;;  %v10209_v43 = vld [vmem:[#allocation4 + $0x6ec] ss:$16 sps:$4 sm:$0xff]  }
 0x142   :  { %1793 = vmatpush1.bf16.msra.mxu0 %v10114_v44  ;;  %1957 = vmatpush1.bf16.msra.mxu1 %v10117_v45  ;;  %v10204_v44 = vld [vmem:[#allocation4 + $0x6e0] ss:$16 sps:$4 sm:$0xff]   ;;  %v10207_v45 = vld [vmem:[#allocation4 + $0x6e8] ss:$16 sps:$4 sm:$0xff]  }
 0x143   :  { %1794 = vmatprep.subr.bf16.mxu0 %v10122_v46  ;;  %1958 = vmatprep.subr.bf16.mxu1 %v10125_v47  ;;  %v10212_v46 = vld [vmem:[#allocation4 + $0x704] ss:$16 sps:$4 sm:$0xff]   ;;  %v10215_v47 = vld [vmem:[#allocation4 + $0x70c] ss:$16 sps:$4 sm:$0xff]  }
 0x146   :  { %1795 = vmatpush1.bf16.msra.mxu0 %v10120_v48  ;;  %1959 = vmatpush1.bf16.msra.mxu1 %v10123_v49  ;;  %v10210_v48 = vld [vmem:[#allocation4 + $0x700] ss:$16 sps:$4 sm:$0xff]   ;;  %v10213_v49 = vld [vmem:[#allocation4 + $0x708] ss:$16 sps:$4 sm:$0xff]  }
 0x147   :  { %1796 = vmatprep.subr.bf16.mxu0 %v10128_v50  ;;  %1960 = vmatprep.subr.bf16.mxu1 %v10131_v51  ;;  %v10218_v50 = vld [vmem:[#allocation4 + $0x724] ss:$16 sps:$4 sm:$0xff]   ;;  %v10221_v51 = vld [vmem:[#allocation4 + $0x72c] ss:$16 sps:$4 sm:$0xff]  }
 0x14a   :  { %1797 = vmatpush1.bf16.msra.mxu0 %v10126_v52  ;;  %1961 = vmatpush1.bf16.msra.mxu1 %v10129_v53  ;;  %v10216_v52 = vld [vmem:[#allocation4 + $0x720] ss:$16 sps:$4 sm:$0xff]   ;;  %v10219_v53 = vld [vmem:[#allocation4 + $0x728] ss:$16 sps:$4 sm:$0xff]  }
 0x14b   :  { %1798 = vmatprep.subr.bf16.mxu0 %v10134_v54  ;;  %1962 = vmatprep.subr.bf16.mxu1 %v10137_v55  ;;  %v10224_v54 = vld [vmem:[#allocation4 + $0x744] ss:$16 sps:$4 sm:$0xff]   ;;  %v10227_v55 = vld [vmem:[#allocation4 + $0x74c] ss:$16 sps:$4 sm:$0xff]  }
 0x14e   :  { %1799 = vmatpush1.bf16.msra.mxu0 %v10132_v56  ;;  %1963 = vmatpush1.bf16.msra.mxu1 %v10135_v57  ;;  %v10222_v56 = vld [vmem:[#allocation4 + $0x740] ss:$16 sps:$4 sm:$0xff]   ;;  %v10225_v57 = vld [vmem:[#allocation4 + $0x748] ss:$16 sps:$4 sm:$0xff]  }
 0x14f   :  { %1800 = vmatprep.subr.bf16.mxu0 %v10140_v58  ;;  %1964 = vmatprep.subr.bf16.mxu1 %v10143_v59  ;;  %v10230_v58 = vld [vmem:[#allocation4 + $0x764] ss:$16 sps:$4 sm:$0xff]   ;;  %v10233_v59 = vld [vmem:[#allocation4 + $0x76c] ss:$16 sps:$4 sm:$0xff]  }
 0x152   :  { %1801 = vmatpush1.bf16.msra.mxu0 %v10138_v60  ;;  %1965 = vmatpush1.bf16.msra.mxu1 %v10141_v61  ;;  %v10228_v60 = vld [vmem:[#allocation4 + $0x760] ss:$16 sps:$4 sm:$0xff]   ;;  %v10231_v61 = vld [vmem:[#allocation4 + $0x768] ss:$16 sps:$4 sm:$0xff]  }
 0x153   :  { %1802 = vmatprep.subr.bf16.mxu0 %v10146_v62  ;;  %1966 = vmatprep.subr.bf16.mxu1 %v10149_v63  ;;  %v10236_v62 = vld [vmem:[#allocation4 + $0x784] ss:$16 sps:$4 sm:$0xff]   ;;  %v10239_v63 = vld [vmem:[#allocation4 + $0x78c] ss:$16 sps:$4 sm:$0xff]  }
 0x156   :  { %1803 = vmatpush1.bf16.msra.mxu0 %v10144_v0  ;;  %1967 = vmatpush1.bf16.msra.mxu1 %v10147_v1  ;;  %v10234_v0 = vld [vmem:[#allocation4 + $0x780] ss:$16 sps:$4 sm:$0xff]   ;;  %v10237_v1 = vld [vmem:[#allocation4 + $0x788] ss:$16 sps:$4 sm:$0xff]  }
 0x157   :  { %1804 = vmatprep.subr.bf16.mxu0 %v10152_v2  ;;  %1968 = vmatprep.subr.bf16.mxu1 %v10155_v3  ;;  %v10242_v2 = vld [vmem:[#allocation4 + $0x7a4] ss:$16 sps:$4 sm:$0xff]   ;;  %v10245_v3 = vld [vmem:[#allocation4 + $0x7ac] ss:$16 sps:$4 sm:$0xff]  }
 0x15a   :  { %1805 = vmatpush1.bf16.msra.mxu0 %v10150_v4  ;;  %1969 = vmatpush1.bf16.msra.mxu1 %v10153_v5  ;;  %v10240_v4 = vld [vmem:[#allocation4 + $0x7a0] ss:$16 sps:$4 sm:$0xff]   ;;  %v10243_v5 = vld [vmem:[#allocation4 + $0x7a8] ss:$16 sps:$4 sm:$0xff]  }
 0x15b   :  { %1806 = vmatprep.subr.bf16.mxu0 %v10158_v6  ;;  %1970 = vmatprep.subr.bf16.mxu1 %v10161_v7  ;;  %v10248_v6 = vld [vmem:[#allocation4 + $0x7c4] ss:$16 sps:$4 sm:$0xff]   ;;  %v10251_v7 = vld [vmem:[#allocation4 + $0x7cc] ss:$16 sps:$4 sm:$0xff]  }
 0x15e   :  { %1807 = vmatpush1.bf16.msra.mxu0 %v10156_v8  ;;  %1971 = vmatpush1.bf16.msra.mxu1 %v10159_v9  ;;  %v10246_v8 = vld [vmem:[#allocation4 + $0x7c0] ss:$16 sps:$4 sm:$0xff]   ;;  %v10249_v9 = vld [vmem:[#allocation4 + $0x7c8] ss:$16 sps:$4 sm:$0xff]  }
 0x15f   :  { %1817 = vmatprep.subr.bf16.mxu0 %v10164_v11  ;;  %1981 = vmatprep.subr.bf16.mxu1 %v10167_v12  ;;  %v10257_v11 = vld [vmem:[#allocation4 + $0x7ec] ss:$16 sps:$4 sm:$0xff]   ;;  %v10252_v12 = vld [vmem:[#allocation4 + $0x7e0] ss:$16 sps:$4 sm:$0xff]  }
 0x161   :  { %1809 = vmatmul.mubr.bf16.vlgmr.msra.gmra.mrb[0].mxu0 %v154_v16  ;;  %1973 = vmatmul.mubr.bf16.vlgmr.msra.gmra.mrb[0].mxu1 %v154_v16  ;;  %v10260_v16 = vld [vmem:[#allocation9 + $0x4] ss:$8 sps:$4 sm:$0xff]  }
 0x162   :  { %1818 = vmatpush1.bf16.msra.mxu0 %v10162_v14  ;;  %1982 = vmatpush1.bf16.msra.mxu1 %v10165_v15  ;;  %v148_v14 = vld [vmem:[#allocation2 + $0x30] sm:$0xff] }
 0x163   :  { %1819 = vmatprep.subr.bf16.mxu0 %v10170_v17  ;;  %1983 = vmatprep.subr.bf16.mxu1 %v10173_v18  ;;  %v156_v15 = vpack.c.bf16 %v148_v14, %v148_v14  ;;  %v10258_v17 = vld [vmem:[#allocation9] ss:$8 sps:$4 sm:$0xff]   ;;  %v10263_v18 = vld [vmem:[#allocation9 + $0x14] ss:$8 sps:$4 sm:$0xff]  }
 0x164   :  { %1849 = vmatprep.mubr.bf16.mxu0 %v157_v19  ;;  %2013 = vmatprep.mubr.bf16.mxu1 %v157_v19  ;;  %v10261_v19 = vld [vmem:[#allocation9 + $0x10] ss:$8 sps:$4 sm:$0xff]  }
 0x166   :  { %1820 = vmatpush1.bf16.msra.mxu0 %v10168_v20  ;;  %1984 = vmatpush1.bf16.msra.mxu1 %v10171_v21  ;;  %v10266_v20 = vld [vmem:[#allocation9 + $0x24] ss:$8 sps:$4 sm:$0xff]   ;;  %v10264_v21 = vld [vmem:[#allocation9 + $0x20] ss:$8 sps:$4 sm:$0xff]  }
 0x167   :  { %1821 = vmatprep.subr.bf16.mxu0 %v10176_v22  ;;  %1985 = vmatprep.subr.bf16.mxu1 %v10179_v23  ;;  %v10269_v22 = vld [vmem:[#allocation9 + $0x34] ss:$8 sps:$4 sm:$0xff]   ;;  %v10267_v23 = vld [vmem:[#allocation9 + $0x30] ss:$8 sps:$4 sm:$0xff]  }
 0x16a   :  { %1822 = vmatpush1.bf16.msra.mxu0 %v10174_v24  ;;  %1986 = vmatpush1.bf16.msra.mxu1 %v10177_v25  ;;  %v10272_v24 = vld [vmem:[#allocation9 + $0x44] ss:$8 sps:$4 sm:$0xff]   ;;  %v10270_v25 = vld [vmem:[#allocation9 + $0x40] ss:$8 sps:$4 sm:$0xff]  }
 0x16b   :  { %1823 = vmatprep.subr.bf16.mxu0 %v10182_v26  ;;  %1987 = vmatprep.subr.bf16.mxu1 %v10185_v27  ;;  %v10275_v26 = vld [vmem:[#allocation9 + $0x54] ss:$8 sps:$4 sm:$0xff]   ;;  %v10273_v27 = vld [vmem:[#allocation9 + $0x50] ss:$8 sps:$4 sm:$0xff]  }
 0x16e   :  { %1824 = vmatpush1.bf16.msra.mxu0 %v10180_v28  ;;  %1988 = vmatpush1.bf16.msra.mxu1 %v10183_v29  ;;  %v10278_v28 = vld [vmem:[#allocation9 + $0x64] ss:$8 sps:$4 sm:$0xff]   ;;  %v10276_v29 = vld [vmem:[#allocation9 + $0x60] ss:$8 sps:$4 sm:$0xff]  }
 0x16f   :  { %1825 = vmatprep.subr.bf16.mxu0 %v10188_v30  ;;  %1989 = vmatprep.subr.bf16.mxu1 %v10191_v31  ;;  %v10281_v30 = vld [vmem:[#allocation9 + $0x74] ss:$8 sps:$4 sm:$0xff]   ;;  %v10279_v31 = vld [vmem:[#allocation9 + $0x70] ss:$8 sps:$4 sm:$0xff]  }
 0x172   :  { %1826 = vmatpush1.bf16.msra.mxu0 %v10186_v32  ;;  %1990 = vmatpush1.bf16.msra.mxu1 %v10189_v33  ;;  %v10284_v32 = vld [vmem:[#allocation9 + $0x84] ss:$8 sps:$4 sm:$0xff]   ;;  %v10282_v33 = vld [vmem:[#allocation9 + $0x80] ss:$8 sps:$4 sm:$0xff]  }
 0x173   :  { %1827 = vmatprep.subr.bf16.mxu0 %v10194_v34  ;;  %1991 = vmatprep.subr.bf16.mxu1 %v10197_v35  ;;  %v10287_v34 = vld [vmem:[#allocation9 + $0x94] ss:$8 sps:$4 sm:$0xff]   ;;  %v10285_v35 = vld [vmem:[#allocation9 + $0x90] ss:$8 sps:$4 sm:$0xff]  }
 0x176   :  { %1828 = vmatpush1.bf16.msra.mxu0 %v10192_v36  ;;  %1992 = vmatpush1.bf16.msra.mxu1 %v10195_v37  ;;  %v10290_v36 = vld [vmem:[#allocation9 + $0xa4] ss:$8 sps:$4 sm:$0xff]   ;;  %v10288_v37 = vld [vmem:[#allocation9 + $0xa0] ss:$8 sps:$4 sm:$0xff]  }
 0x177   :  { %1829 = vmatprep.subr.bf16.mxu0 %v10200_v38  ;;  %1993 = vmatprep.subr.bf16.mxu1 %v10203_v39  ;;  %v10293_v38 = vld [vmem:[#allocation9 + $0xb4] ss:$8 sps:$4 sm:$0xff]   ;;  %v10291_v39 = vld [vmem:[#allocation9 + $0xb0] ss:$8 sps:$4 sm:$0xff]  }
 0x17a   :  { %1830 = vmatpush1.bf16.msra.mxu0 %v10198_v40  ;;  %1994 = vmatpush1.bf16.msra.mxu1 %v10201_v41  ;;  %v10296_v40 = vld [vmem:[#allocation9 + $0xc4] ss:$8 sps:$4 sm:$0xff]   ;;  %v10294_v41 = vld [vmem:[#allocation9 + $0xc0] ss:$8 sps:$4 sm:$0xff]  }
 0x17b   :  { %1831 = vmatprep.subr.bf16.mxu0 %v10206_v42  ;;  %1995 = vmatprep.subr.bf16.mxu1 %v10209_v43  ;;  %v10299_v42 = vld [vmem:[#allocation9 + $0xd4] ss:$8 sps:$4 sm:$0xff]   ;;  %v10297_v43 = vld [vmem:[#allocation9 + $0xd0] ss:$8 sps:$4 sm:$0xff]  }
 0x17e   :  { %1832 = vmatpush1.bf16.msra.mxu0 %v10204_v44  ;;  %1996 = vmatpush1.bf16.msra.mxu1 %v10207_v45  ;;  %v10302_v44 = vld [vmem:[#allocation9 + $0xe4] ss:$8 sps:$4 sm:$0xff]   ;;  %v10300_v45 = vld [vmem:[#allocation9 + $0xe0] ss:$8 sps:$4 sm:$0xff]  }
 0x17f   :  { %1833 = vmatprep.subr.bf16.mxu0 %v10212_v46  ;;  %1997 = vmatprep.subr.bf16.mxu1 %v10215_v47  ;;  %v10305_v46 = vld [vmem:[#allocation9 + $0xf4] ss:$8 sps:$4 sm:$0xff]   ;;  %v10303_v47 = vld [vmem:[#allocation9 + $0xf0] ss:$8 sps:$4 sm:$0xff]  }
 0x182   :  { %1834 = vmatpush1.bf16.msra.mxu0 %v10210_v48  ;;  %1998 = vmatpush1.bf16.msra.mxu1 %v10213_v49  ;;  %v10308_v48 = vld [vmem:[#allocation9 + $0x104] ss:$8 sps:$4 sm:$0xff]  }
 0x183   :  { %1835 = vmatprep.subr.bf16.mxu0 %v10218_v50  ;;  %1999 = vmatprep.subr.bf16.mxu1 %v10221_v51 }
 0x186   :  { %1836 = vmatpush1.bf16.msra.mxu0 %v10216_v52  ;;  %2000 = vmatpush1.bf16.msra.mxu1 %v10219_v53 }
 0x187   :  { %1837 = vmatprep.subr.bf16.mxu0 %v10224_v54  ;;  %2001 = vmatprep.subr.bf16.mxu1 %v10227_v55 }
 0x18a   :  { %1838 = vmatpush1.bf16.msra.mxu0 %v10222_v56  ;;  %2002 = vmatpush1.bf16.msra.mxu1 %v10225_v57 }
 0x18b   :  { %1839 = vmatprep.subr.bf16.mxu0 %v10230_v58  ;;  %2003 = vmatprep.subr.bf16.mxu1 %v10233_v59 }
 0x18e   :  { %1840 = vmatpush1.bf16.msra.mxu0 %v10228_v60  ;;  %2004 = vmatpush1.bf16.msra.mxu1 %v10231_v61 }
 0x18f   :  { %1841 = vmatprep.subr.bf16.mxu0 %v10236_v62  ;;  %2005 = vmatprep.subr.bf16.mxu1 %v10239_v63 }
 0x192   :  { %1842 = vmatpush1.bf16.msra.mxu0 %v10234_v0  ;;  %2006 = vmatpush1.bf16.msra.mxu1 %v10237_v1 }
 0x193   :  { %1843 = vmatprep.subr.bf16.mxu0 %v10242_v2  ;;  %2007 = vmatprep.subr.bf16.mxu1 %v10245_v3 }
 0x196   :  { %1844 = vmatpush1.bf16.msra.mxu0 %v10240_v4  ;;  %2008 = vmatpush1.bf16.msra.mxu1 %v10243_v5 }
 0x197   :  { %1845 = vmatprep.subr.bf16.mxu0 %v10248_v6  ;;  %2009 = vmatprep.subr.bf16.mxu1 %v10251_v7 }
 0x19a   :  { %1846 = vmatpush1.bf16.msra.mxu0 %v10246_v8  ;;  %2010 = vmatpush1.bf16.msra.mxu1 %v10249_v9 }
 0x19b   :  { %1847 = vmatprep.subr.bf16.mxu0 %v10254_v10  ;;  %2011 = vmatprep.subr.bf16.mxu1 %v10257_v11 }
 0x19e   :  { %1848 = vmatpush1.bf16.msra.mxu0 %v10252_v12  ;;  %2012 = vmatpush1.bf16.msra.mxu1 %v10255_v13 }
 0x19f   :  { %2603 = vmatprep.subr.bf16.mxu0 %v10260_v16 }
 0x1a1   :  { %1850 = vmatmul.mubr.bf16.vlgmr.msra.gmra.mrb[0].mxu0 %v156_v15  ;;  %2014 = vmatmul.mubr.bf16.vlgmr.msra.gmra.mrb[0].mxu1 %v156_v15 }
 0x1a2   :  { %2604 = vmatpush1.bf16.msra.mxu0 %v10258_v17 }
 0x1a3   :  { %2605 = vmatprep.subr.bf16.mxu0 %v10263_v18 }
 0x1a6   :  { %2606 = vmatpush1.bf16.msra.mxu0 %v10261_v19 }
 0x1a7   :  { %2607 = vmatprep.subr.bf16.mxu0 %v10266_v20 }
 0x1aa   :  { %2608 = vmatpush1.bf16.msra.mxu0 %v10264_v21 }
 0x1ab   :  { %2609 = vmatprep.subr.bf16.mxu0 %v10269_v22 }
 0x1ae   :  { %2610 = vmatpush1.bf16.msra.mxu0 %v10267_v23 }
 0x1af   :  { %2611 = vmatprep.subr.bf16.mxu0 %v10272_v24 }
 0x1b2   :  { %2612 = vmatpush1.bf16.msra.mxu0 %v10270_v25 }
 0x1b3   :  { %2613 = vmatprep.subr.bf16.mxu0 %v10275_v26 }
 0x1b6   :  { %2614 = vmatpush1.bf16.msra.mxu0 %v10273_v27 }
 0x1b7   :  { %2615 = vmatprep.subr.bf16.mxu0 %v10278_v28 }
 0x1ba   :  { %2616 = vmatpush1.bf16.msra.mxu0 %v10276_v29 }
 0x1bb   :  { %2617 = vmatprep.subr.bf16.mxu0 %v10281_v30 }
 0x1be   :  { %2618 = vmatpush1.bf16.msra.mxu0 %v10279_v31 }
 0x1bf   :  { %2619 = vmatprep.subr.bf16.mxu0 %v10284_v32 }
 0x1c2   :  { %2620 = vmatpush1.bf16.msra.mxu0 %v10282_v33 }
 0x1c3   :  { %2621 = vmatprep.subr.bf16.mxu0 %v10287_v34 }
 0x1c6   :  { %2622 = vmatpush1.bf16.msra.mxu0 %v10285_v35 }
 0x1c7   :  { %2623 = vmatprep.subr.bf16.mxu0 %v10290_v36 }
 0x1ca   :  { %2624 = vmatpush1.bf16.msra.mxu0 %v10288_v37 }
 0x1cb   :  { %2625 = vmatprep.subr.bf16.mxu0 %v10293_v38 }
 0x1ce   :  { %2626 = vmatpush1.bf16.msra.mxu0 %v10291_v39 }
 0x1cf   :  { %2627 = vmatprep.subr.bf16.mxu0 %v10296_v40 }
 0x1d2   :  { %2628 = vmatpush1.bf16.msra.mxu0 %v10294_v41 }
 0x1d3   :  { %2629 = vmatprep.subr.bf16.mxu0 %v10299_v42 }
 0x1d6   :  { %2630 = vmatpush1.bf16.msra.mxu0 %v10297_v43 }
 0x1d7   :  { %2631 = vmatprep.subr.bf16.mxu0 %v10302_v44 }
 0x1da   :  { %2632 = vmatpush1.bf16.msra.mxu0 %v10300_v45 }
 0x1db   :  { %2633 = vmatprep.subr.bf16.mxu0 %v10305_v46 }
 0x1de   :  { %2634 = vmatpush1.bf16.msra.mxu0 %v10303_v47 }
 0x1df   :  { %2644 = vmatprep.subr.bf16.mxu0 %v10308_v48 }
 0x274   :  { %v10847_v49 = vpop.f32.mrb[0].mxu0  ;;  %v10849_v50 = vpop.f32.mrb[0].mxu1 }
 0x275   :  { %v2024_v51 = vrot.slane %v10847_v49, 4  ;;  %v2036_v52 = vrot.slane %v10849_v50, 4  ;;  %v10853_v53 = vpop.f32.mrb[1].mxu0  ;;  %v10855_v54 = vpop.f32.mrb[1].mxu1 }
 0x276   :  { %v2030_v55 = vrot.slane %v10853_v53, 4  ;;  %v2042_v56 = vrot.slane %v10855_v54, 4  ;;  %v1855_v57 = vpop.f32.mrb[2].mxu0  ;;  %v2019_v58 = vpop.f32.mrb[2].mxu1 }
 0x277   :  { %v2025_v59 = vadd.f32 %v2024_v51, %v10847_v49  ;;  %v2037_v60 = vadd.f32 %v2036_v52, %v10849_v50  ;;  %v1856_v61 = vpop.f32.mrb[3].mxu0  ;;  %v2020_v62 = vpop.f32.mrb[3].mxu1 }
 0x278   :  { %v2031_v63 = vadd.f32 %v2030_v55, %v10853_v53  ;;  %v2043_v0 = vadd.f32 %v2042_v56, %v10855_v54 }
 0x279   :  { %v2026_v1 = vrot.slane %v2025_v59, 2  ;;  %v2038_v2 = vrot.slane %v2037_v60, 2 }
 0x27a   :  { %v2032_v3 = vrot.slane %v2031_v63, 2  ;;  %v2044_v4 = vrot.slane %v2043_v0, 2 }
 0x27b   :  { %v2027_v5 = vadd.f32 %v2026_v1, %v2025_v59  ;;  %v2039_v6 = vadd.f32 %v2038_v2, %v2037_v60  ;;  %v10688_v1 = vmov 1966171168  }
 0x27c   :  { %v2033_v7 = vadd.f32 %v2032_v3, %v2031_v63  ;;  %v2045_v8 = vadd.f32 %v2044_v4, %v2043_v0  ;;  %v2104_v2 = vunpack.c.l.s4 %v10688_v1  ;;  %v2106_v3 = vlaneseq  ;;  %v10318_v1 = vld [vmem:[#allocation9 + $0x140] ss:$8 sps:$4 sm:$0xff]  }
 0x27d   :  { %v2028_v9 = vrot.slane %v2027_v5, 1  ;;  %v2040_v10 = vrot.slane %v2039_v6, 1 }
 0x27e   :  { %v2034_v11 = vrot.slane %v2033_v7, 1  ;;  %v2046_v12 = vrot.slane %v2045_v8, 1  ;;  %v2105_v4 = vunpack.c.0.s8 %v2104_v2  ;;  %v10323_v2 = vld [vmem:[#allocation9 + $0x154] ss:$8 sps:$4 sm:$0xff]  }
 0x27f   :  { %v2029_v13 = vadd.f32 %v2028_v9, %v2027_v5  ;;  %v2041_v14 = vadd.f32 %v2040_v10, %v2039_v6  ;;  %v10879_v5 = vshrl.u32 %v2106_v3, 7  ;;  %v10321_v3 = vld [vmem:[#allocation9 + $0x150] ss:$8 sps:$4 sm:$0xff]  }
 0x280   :  { %v2035_v15 = vadd.f32 %v2034_v11, %v2033_v7  ;;  %v2047_v16 = vadd.f32 %v2046_v12, %v2045_v8 }
 0x281   :  { %v10863_v17 = vmul.f32 0.125, %v2029_v13  ;;  %v10865_v18 = vmul.f32 0.125, %v2041_v14  ;;  %v10882_v8 = vsub.s32 %v2105_v4, %v10879_v5  ;;  %v10326_v4 = vld [vmem:[#allocation9 + $0x164] ss:$8 sps:$4 sm:$0xff]  }
 0x282   :  { %v10867_v19 = vmul.f32 0.125, %v2035_v15  ;;  %v10869_v20 = vmul.f32 0.125, %v2047_v16  ;;  %v2022_v16 = vld [vmem:[#allocation6] sm:$0xf] }
 0x283   :  { %v2053_v21 = vsub.f32 %v10847_v49, %v10863_v17  ;;  %v2055_v22 = vsub.f32 %v10849_v50, %v10865_v18 }
 0x284   :  { %v2054_v23 = vsub.f32 %v10853_v53, %v10867_v19  ;;  %v2056_v24 = vsub.f32 %v10855_v54, %v10869_v20 }
 0x285   :  { %v2057_v25 = vmul.f32 %v2053_v21, %v2053_v21  ;;  %v2059_v26 = vmul.f32 %v2055_v22, %v2055_v22  ;;  %v10887_v21 = vsub.s32 2, %v10879_v5 }
 0x286   :  { %v2058_v27 = vmul.f32 %v2054_v23, %v2054_v23  ;;  %v2060_v28 = vmul.f32 %v2056_v24, %v2056_v24  ;;  %v10891_v23 = vsub.s32 3, %v10879_v5  ;;  %v10894_v24 = vsub.s32 0, %v10879_v5 }
 0x287   :  { %v2061_v29 = vrot.slane %v2057_v25, 4  ;;  %v2073_v30 = vrot.slane %v2059_v26, 4 }
 0x288   :  { %v2067_v31 = vrot.slane %v2058_v27, 4  ;;  %v2079_v32 = vrot.slane %v2060_v28, 4 }
 0x289   :  { %v2062_v33 = vadd.f32 %v2061_v29, %v2057_v25  ;;  %v2074_v34 = vadd.f32 %v2073_v30, %v2059_v26  ;;  %v10897_v25 = vsub.s32 1, %v10879_v5 }
 0x28a   :  { %v2068_v35 = vadd.f32 %v2067_v31, %v2058_v27  ;;  %v2080_v36 = vadd.f32 %v2079_v32, %v2060_v28 }
 0x28b   :  { %v2063_v37 = vrot.slane %v2062_v33, 2  ;;  %v2075_v38 = vrot.slane %v2074_v34, 2 }
 0x28c   :  { %v2069_v39 = vrot.slane %v2068_v35, 2  ;;  %v2081_v40 = vrot.slane %v2080_v36, 2 }
 0x28d   :  { %v2064_v41 = vadd.f32 %v2063_v37, %v2062_v33  ;;  %v2076_v42 = vadd.f32 %v2075_v38, %v2074_v34 }
 0x28e   :  { %v2070_v43 = vadd.f32 %v2069_v39, %v2068_v35  ;;  %v2082_v44 = vadd.f32 %v2081_v40, %v2080_v36 }
 0x28f   :  { %v2065_v45 = vrot.slane %v2064_v41, 1  ;;  %v2077_v46 = vrot.slane %v2076_v42, 1 }
 0x290   :  { %v2071_v47 = vrot.slane %v2070_v43, 1  ;;  %v2083_v48 = vrot.slane %v2082_v44, 1 }
 0x291   :  { %v2066_v51 = vadd.f32 %v2065_v45, %v2064_v41  ;;  %v2078_v52 = vadd.f32 %v2077_v46, %v2076_v42 }
 0x292   :  { %v2072_v55 = vadd.f32 %v2071_v47, %v2070_v43  ;;  %v2084_v56 = vadd.f32 %v2083_v48, %v2082_v44 }
 0x293   :  { %v2085_v57 = vmul.f32 0.125, %v2066_v51  ;;  %v2087_v58 = vmul.f32 0.125, %v2078_v52 }
 0x294   :  { %v2086_v59 = vmul.f32 0.125, %v2072_v55  ;;  %v2088_v60 = vmul.f32 0.125, %v2084_v56  ;;  %v10306_v55 = vld [vmem:[#allocation9 + $0x100] ss:$8 sps:$4 sm:$0xff]  }
 0x295   :  { %v2089_v61 = vadd.f32 1e-05, %v2085_v57  ;;  %v2091_v62 = vadd.f32 1e-05, %v2087_v58  ;;  %v10311_v57 = vld [vmem:[#allocation9 + $0x114] ss:$8 sps:$4 sm:$0xff]  }
 0x296   :  { %v2090_v63 = vadd.f32 1e-05, %v2086_v59  ;;  %v2092_v0 = vadd.f32 1e-05, %v2088_v60  ;;  %v10309_v59 = vld [vmem:[#allocation9 + $0x110] ss:$8 sps:$4 sm:$0xff]  }
 0x297   :  { %10354 = vrsqrt.f32 %v2089_v61  ;;  %v10314_v60 = vld [vmem:[#allocation9 + $0x124] ss:$8 sps:$4 sm:$0xff]   ;;  %v10312_v61 = vld [vmem:[#allocation9 + $0x120] ss:$8 sps:$4 sm:$0xff]  }
 0x298   :  { %10356 = vrsqrt.f32 %v2091_v62  ;;  %v10317_v62 = vld [vmem:[#allocation9 + $0x134] ss:$8 sps:$4 sm:$0xff]  }
 0x299   :  { %10358 = vrsqrt.f32 %v2090_v63  ;;  %v10315_v63 = vld [vmem:[#allocation9 + $0x130] ss:$8 sps:$4 sm:$0xff]  }
 0x29a   :  { %10360 = vrsqrt.f32 %v2092_v0  ;;  %v10320_v0 = vld [vmem:[#allocation9 + $0x144] ss:$8 sps:$4 sm:$0xff]  }
 0x2a1   :  { %v10355_v6 = vpop.eup %10354 }
 0x2a2   :  { %v10357_v7 = vpop.eup %10356 }
 0x2a3   :  { %v10359_v9 = vpop.eup %10358 }
 0x2a4   :  { %v10361_v10 = vpop.eup %10360  ;;  %v2101_v11 = vcombine.low %v10355_v6, %v10359_v9  ;;  %v10324_v6 = vld [vmem:[#allocation9 + $0x160] ss:$8 sps:$4 sm:$0xff]   ;;  %v10327_v9 = vld [vmem:[#allocation9 + $0x170] ss:$8 sps:$4 sm:$0xff]  }
 0x2a5   :  { %v2102_v12 = vcombine.low %v10357_v7, %v10361_v10  ;;  %v10329_v7 = vld [vmem:[#allocation9 + $0x174] ss:$8 sps:$4 sm:$0xff]   ;;  %v10332_v10 = vld [vmem:[#allocation9 + $0x184] ss:$8 sps:$4 sm:$0xff]  }
 0x2a6   :  { %v2109_v13 = vrot.slane %v2101_v11, %v10882_v8  ;;  %v10330_v11 = vld [vmem:[#allocation9 + $0x180] ss:$8 sps:$4 sm:$0xff]  }
 0x2a7   :  { %v2116_v14 = vrot.slane %v2102_v12, %v10882_v8  ;;  %v10335_v12 = vld [vmem:[#allocation9 + $0x194] ss:$8 sps:$4 sm:$0xff]  }
 0x2a9   :  { %v2117_v15 = vcombine.low %v2109_v13, %v2116_v14  ;;  %v10333_v13 = vld [vmem:[#allocation9 + $0x190] ss:$8 sps:$4 sm:$0xff]   ;;  %v10338_v14 = vld [vmem:[#allocation9 + $0x1a4] ss:$8 sps:$4 sm:$0xff]  }
 0x2ab   :  { %v2124_v22 = vrot.slane %v2117_v15, %v10882_v8  ;;  %v10336_v15 = vld [vmem:[#allocation9 + $0x1a0] ss:$8 sps:$4 sm:$0xff]  }
 0x2ad   :  { %v2126_v26 = vmul.f32 %v2124_v22, %v2022_v16  ;;  %v10341_v16 = vld [vmem:[#allocation9 + $0x1b4] ss:$8 sps:$4 sm:$0xff]   ;;  %v10339_v22 = vld [vmem:[#allocation9 + $0x1b0] ss:$8 sps:$4 sm:$0xff]  }
 0x2af   :  { %v2139_v27 = vrot.slane %v2126_v26, %v10887_v21  ;;  %v2143_v28 = vrot.slane %v2126_v26, %v10891_v23  ;;  %v2131_v29 = vrot.slane %v2126_v26, %v10894_v24  ;;  %v2135_v30 = vrot.slane %v2126_v26, %v10897_v25  ;;  %v10344_v26 = vld [vmem:[#allocation9 + $0x1c4] ss:$8 sps:$4 sm:$0xff]  }
 0x2b1   :  { %v2150_v31 = vmul.f32 %v2139_v27, %v10865_v18  ;;  %v2151_v32 = vmul.f32 %v2143_v28, %v10869_v20  ;;  %v2185_v33 = vmul.f32 %v2143_v28, %v10855_v54  ;;  %v2148_v34 = vmul.f32 %v2131_v29, %v10863_v17  ;;  %v2023_v20 = vld [vmem:[#allocation7] sm:$0xf] }
 0x2b2   :  { %v2149_v35 = vmul.f32 %v2135_v30, %v10867_v19  ;;  %v2183_v36 = vmul.f32 %v2135_v30, %v10853_v53  ;;  %v2182_v37 = vmul.f32 %v2131_v29, %v10847_v49  ;;  %v2184_v38 = vmul.f32 %v2139_v27, %v10849_v50  ;;  %v10342_v27 = vld [vmem:[#allocation9 + $0x1c0] ss:$8 sps:$4 sm:$0xff]   ;;  %v10347_v28 = vld [vmem:[#allocation9 + $0x1d4] ss:$8 sps:$4 sm:$0xff]   ;;  %v10345_v29 = vld [vmem:[#allocation9 + $0x1d0] ss:$8 sps:$4 sm:$0xff]  }
 0x2b3   :  { %v2157_v39 = vcombine.low %v2150_v31, %v2151_v32  ;;  %v10350_v30 = vld [vmem:[#allocation9 + $0x1e4] ss:$8 sps:$4 sm:$0xff]   ;;  %v10348_v31 = vld [vmem:[#allocation9 + $0x1e0] ss:$8 sps:$4 sm:$0xff]   ;;  %v10353_v32 = vld [vmem:[#allocation9 + $0x1f4] ss:$8 sps:$4 sm:$0xff]  }
 0x2b4   :  { %v2156_v40 = vcombine.low %v2148_v34, %v2149_v35 }
 0x2b5   :  { %v2171_v41 = vrot.slane %v2157_v39, %v10882_v8 }
 0x2b6   :  { %v2164_v18 = vrot.slane %v2156_v40, %v10882_v8  ;;  %v2819_v40 = vld [vmem:[#allocation13 + $0xd0] sm:$0xff] }
 0x2b8   :  { %v2172_v42 = vcombine.low %v2164_v18, %v2171_v41 }
 0x2ba   :  { %v2179_v54 = vrot.slane %v2172_v42, %v10882_v8 }
 0x2bc   :  { %v2181_v43 = vsub.f32 %v2023_v20, %v2179_v54  ;;  %v2841_v20 = vld [vmem:[#allocation13 + $0x180] sm:$0xff] }
 0x2bd   :  { %v2865_v54 = vld [vmem:[#allocation13 + $0x240] sm:$0xff] }
 0x2be   :  { %v2194_v17 = vrot.slane %v2181_v43, %v10897_v25  ;;  %v2190_v19 = vrot.slane %v2181_v43, %v10894_v24  ;;  %v2202_v53 = vrot.slane %v2181_v43, %v10891_v23  ;;  %v2198_v49 = vrot.slane %v2181_v43, %v10887_v21  ;;  %v2843_v43 = vld [vmem:[#allocation13 + $0x190] sm:$0xff] }
 0x2c0   :  { %v2208_v50 = vadd.f32 %v2194_v17, %v2183_v36  ;;  %v2207_v44 = vadd.f32 %v2190_v19, %v2182_v37  ;;  %v2210_v45 = vadd.f32 %v2202_v53, %v2185_v33  ;;  %v10918_v46 = vadd.f32 %v2198_v49, %v2184_v38  ;;  %v10351_v33 = vld [vmem:[#allocation9 + $0x1f0] ss:$8 sps:$4 sm:$0xff]   ;;  %v2793_v36 = vld [vmem:[#allocation13] sm:$0xff] }
 0x2c1   :  { %v2817_v37 = vld [vmem:[#allocation13 + $0xc0] sm:$0xff]  ;;  %v2795_v38 = vld [vmem:[#allocation13 + $0x10] sm:$0xff]  ;;  %v9111_v17 = vcombine.high %v2841_v20, %v2865_v54  ;;  %v9110_v53 = vcombine.low %v2841_v20, %v2865_v54 }
 0x2c2   :  { %v2212_v47 = vmax.f32 %v2208_v50, 0.0  ;;  %v2211_v48 = vmax.f32 %v2207_v44, 0.0  ;;  %v2214_v51 = vmax.f32 %v2210_v45, 0.0  ;;  %v2213_v34 = vmax.f32 %v10918_v46, 0.0  ;;  %v2867_v19 = vld [vmem:[#allocation13 + $0x250] sm:$0xff]  ;;  %v2889_v44 = vld [vmem:[#allocation13 + $0x300] sm:$0xff] }
 0x2c3   :  { %v9063_v39 = vcombine.high %v2793_v36, %v2817_v37  ;;  %v9062_v41 = vcombine.low %v2793_v36, %v2817_v37  ;;  %v9066_v18 = vcombine.low %v2795_v38, %v2819_v40  ;;  %v9067_v42 = vcombine.high %v2795_v38, %v2819_v40  ;;  %v2913_v45 = vld [vmem:[#allocation13 + $0x3c0] sm:$0xff]  ;;  %v2891_v46 = vld [vmem:[#allocation13 + $0x310] sm:$0xff] }
 0x2c4   :  { %v2216_v52 = vpack.c.bf16 %v2212_v47, %v2212_v47  ;;  %v2215_v56 = vpack.c.bf16 %v2211_v48, %v2211_v48  ;;  %v2218_v58 = vpack.c.bf16 %v2214_v51, %v2214_v51  ;;  %v2217_v35 = vpack.c.bf16 %v2213_v34, %v2213_v34  ;;  %v2915_v48 = vld [vmem:[#allocation13 + $0x3d0] sm:$0xff]  ;;  %v3129_v34 = vld [vmem:[#allocation13 + $0xa80] sm:$0xff] }
 0x2c5   :  { %7653 = vmatprep.subr.bf16.mxu1 %v9063_v39  ;;  %v9114_v49 = vcombine.low %v2843_v43, %v2867_v19  ;;  %v9115_v50 = vcombine.high %v2843_v43, %v2867_v19  ;;  %v9159_v47 = vcombine.high %v2889_v44, %v2913_v45  ;;  %v9158_v51 = vcombine.low %v2889_v44, %v2913_v45  ;;  %v3131_v36 = vld [vmem:[#allocation13 + $0xa90] sm:$0xff] }
 0x2c6   :  { %2635 = vmatprep.mubr.bf16.mxu0 %v2216_v52  ;;  %7654 = vmatpush1.bf16.msra.mxu1 %v9062_v41  ;;  %v9162_v52 = vcombine.low %v2891_v46, %v2915_v48  ;;  %v3155_v38 = vld [vmem:[#allocation13 + $0xb50] sm:$0xff] }
 0x2c7   :  { %2636 = vmatmul.mubr.bf16.vlgmr.msra.gmra.mrb[4].mxu0 %v2215_v56  ;;  %7655 = vmatprep.subr.bf16.mxu1 %v9111_v17  ;;  %v2937_v56 = vld [vmem:[#allocation13 + $0x480] sm:$0xff]  ;;  %v9402_v40 = vcombine.low %v3131_v36, %v3155_v38  ;;  %v9403_v41 = vcombine.high %v3131_v36, %v3155_v38  ;;  %v3179_v20 = vld [vmem:[#allocation13 + $0xc10] sm:$0xff] }
 0x2c8   :  { %2645 = vmatpush1.bf16.msra.mxu0 %v10306_v55  ;;  %2676 = vmatprep.mubr.bf16.mxu0 %v2218_v58  ;;  %v9163_v55 = vcombine.high %v2891_v46, %v2915_v48  ;;  %v2939_v58 = vld [vmem:[#allocation13 + $0x490] sm:$0xff] }
 0x2c9   :  { %2646 = vmatprep.subr.bf16.mxu0 %v10311_v57  ;;  %v2961_v57 = vld [vmem:[#allocation13 + $0x540] sm:$0xff]  ;;  %v3203_v43 = vld [vmem:[#allocation13 + $0xcd0] sm:$0xff] }
 0x2ca   :  { %7656 = vmatpush1.bf16.msra.mxu1 %v9110_v53  ;;  %v9450_v19 = vcombine.low %v3179_v20, %v3203_v43  ;;  %v9451_v53 = vcombine.high %v3179_v20, %v3203_v43  ;;  %v3227_v44 = vld [vmem:[#allocation13 + $0xd90] sm:$0xff] }
 0x2cb   :  { %7657 = vmatprep.subr.bf16.mxu1 %v9159_v47  ;;  %v3251_v46 = vld [vmem:[#allocation13 + $0xe50] sm:$0xff] }
 0x2cc   :  { %2647 = vmatpush1.bf16.msra.mxu0 %v10309_v59  ;;  %v9207_v59 = vcombine.high %v2937_v56, %v2961_v57  ;;  %v9498_v48 = vcombine.low %v3227_v44, %v3251_v46  ;;  %v3491_v36 = vld [vmem:[#allocation13 + $0x15d0] sm:$0xff] }
 0x2cd   :  { %2648 = vmatprep.subr.bf16.mxu0 %v10314_v60  ;;  %v2963_v60 = vld [vmem:[#allocation13 + $0x550] sm:$0xff] }
 0x2ce   :  { %7658 = vmatpush1.bf16.msra.mxu1 %v9158_v51  ;;  %v9499_v51 = vcombine.high %v3227_v44, %v3251_v46  ;;  %v3539_v20 = vld [vmem:[#allocation13 + $0x1750] sm:$0xff]  ;;  %v10929_v44 = vld [vmem:[#allocation13 + $0xe0] sm:$0xff] }
 0x2cf   :  { %7659 = vmatprep.subr.bf16.mxu1 %v9207_v59 }
 0x2d0   :  { %2649 = vmatpush1.bf16.msra.mxu0 %v10312_v61  ;;  %v9206_v61 = vcombine.low %v2937_v56, %v2961_v57  ;;  %v3275_v56 = vld [vmem:[#allocation13 + $0xf10] sm:$0xff] }
 0x2d1   :  { %2650 = vmatprep.subr.bf16.mxu0 %v10317_v62  ;;  %v9210_v62 = vcombine.low %v2939_v58, %v2963_v60 }
 0x2d2   :  { %7660 = vmatpush1.bf16.msra.mxu1 %v9206_v61 }
 0x2d4   :  { %2651 = vmatpush1.bf16.msra.mxu0 %v10315_v63  ;;  %v9211_v63 = vcombine.high %v2939_v58, %v2963_v60  ;;  %v3299_v58 = vld [vmem:[#allocation13 + $0xfd0] sm:$0xff] }
 0x2d5   :  { %2652 = vmatprep.subr.bf16.mxu0 %v10320_v0  ;;  %v2985_v0 = vld [vmem:[#allocation13 + $0x600] sm:$0xff]  ;;  %v9546_v60 = vcombine.low %v3275_v56, %v3299_v58  ;;  %v9547_v61 = vcombine.high %v3275_v56, %v3299_v58 }
 0x2d8   :  { %2653 = vmatpush1.bf16.msra.mxu0 %v10318_v1  ;;  %v3009_v1 = vld [vmem:[#allocation13 + $0x6c0] sm:$0xff] }
 0x2d9   :  { %2654 = vmatprep.subr.bf16.mxu0 %v10323_v2  ;;  %v2987_v2 = vld [vmem:[#allocation13 + $0x610] sm:$0xff] }
 0x2dc   :  { %2655 = vmatpush1.bf16.msra.mxu0 %v10321_v3  ;;  %v9255_v3 = vcombine.high %v2985_v0, %v3009_v1 }
 0x2dd   :  { %2656 = vmatprep.subr.bf16.mxu0 %v10326_v4  ;;  %v3011_v4 = vld [vmem:[#allocation13 + $0x6d0] sm:$0xff] }
 0x2de   :  { %7661 = vmatprep.subr.bf16.mxu1 %v9255_v3 }
 0x2e0   :  { %2657 = vmatpush1.bf16.msra.mxu0 %v10324_v6  ;;  %v9254_v6 = vcombine.low %v2985_v0, %v3009_v1  ;;  %v3323_v0 = vld [vmem:[#allocation13 + $0x1090] sm:$0xff] }
 0x2e1   :  { %2658 = vmatprep.subr.bf16.mxu0 %v10329_v7  ;;  %v9258_v7 = vcombine.low %v2987_v2, %v3011_v4 }
 0x2e2   :  { %7662 = vmatpush1.bf16.msra.mxu1 %v9254_v6 }
 0x2e4   :  { %2659 = vmatpush1.bf16.msra.mxu0 %v10327_v9  ;;  %v9259_v9 = vcombine.high %v2987_v2, %v3011_v4  ;;  %v3347_v2 = vld [vmem:[#allocation13 + $0x1150] sm:$0xff] }
 0x2e5   :  { %2660 = vmatprep.subr.bf16.mxu0 %v10332_v10  ;;  %v3033_v10 = vld [vmem:[#allocation13 + $0x780] sm:$0xff]  ;;  %v9594_v4 = vcombine.low %v3323_v0, %v3347_v2  ;;  %v9595_v6 = vcombine.high %v3323_v0, %v3347_v2 }
 0x2e8   :  { %2661 = vmatpush1.bf16.msra.mxu0 %v10330_v11  ;;  %v3057_v11 = vld [vmem:[#allocation13 + $0x840] sm:$0xff] }
 0x2e9   :  { %2662 = vmatprep.subr.bf16.mxu0 %v10335_v12  ;;  %v3035_v12 = vld [vmem:[#allocation13 + $0x790] sm:$0xff] }
 0x2ec   :  { %2663 = vmatpush1.bf16.msra.mxu0 %v10333_v13  ;;  %v9303_v13 = vcombine.high %v3033_v10, %v3057_v11 }
 0x2ed   :  { %2664 = vmatprep.subr.bf16.mxu0 %v10338_v14  ;;  %v3059_v14 = vld [vmem:[#allocation13 + $0x850] sm:$0xff] }
 0x2ee   :  { %7663 = vmatprep.subr.bf16.mxu1 %v9303_v13 }
 0x2f0   :  { %2665 = vmatpush1.bf16.msra.mxu0 %v10336_v15  ;;  %v9302_v15 = vcombine.low %v3033_v10, %v3057_v11  ;;  %v3371_v10 = vld [vmem:[#allocation13 + $0x1210] sm:$0xff] }
 0x2f1   :  { %2666 = vmatprep.subr.bf16.mxu0 %v10341_v16  ;;  %v9306_v16 = vcombine.low %v3035_v12, %v3059_v14 }
 0x2f2   :  { %7664 = vmatpush1.bf16.msra.mxu1 %v9302_v15 }
 0x2f4   :  { %2667 = vmatpush1.bf16.msra.mxu0 %v10339_v22  ;;  %v9307_v22 = vcombine.high %v3035_v12, %v3059_v14  ;;  %v3395_v12 = vld [vmem:[#allocation13 + $0x12d0] sm:$0xff] }
 0x2f5   :  { %2668 = vmatprep.subr.bf16.mxu0 %v10344_v26  ;;  %v3081_v26 = vld [vmem:[#allocation13 + $0x900] sm:$0xff]  ;;  %v9642_v14 = vcombine.low %v3371_v10, %v3395_v12  ;;  %v9643_v15 = vcombine.high %v3371_v10, %v3395_v12 }
 0x2f8   :  { %2669 = vmatpush1.bf16.msra.mxu0 %v10342_v27  ;;  %v3105_v27 = vld [vmem:[#allocation13 + $0x9c0] sm:$0xff] }
 0x2f9   :  { %2670 = vmatprep.subr.bf16.mxu0 %v10347_v28  ;;  %v3083_v28 = vld [vmem:[#allocation13 + $0x910] sm:$0xff] }
 0x2fc   :  { %2671 = vmatpush1.bf16.msra.mxu0 %v10345_v29  ;;  %v9351_v29 = vcombine.high %v3081_v26, %v3105_v27 }
 0x2fd   :  { %2672 = vmatprep.subr.bf16.mxu0 %v10350_v30  ;;  %v3107_v30 = vld [vmem:[#allocation13 + $0x9d0] sm:$0xff] }
 0x2fe   :  { %7665 = vmatprep.subr.bf16.mxu1 %v9351_v29 }
 0x300   :  { %2673 = vmatpush1.bf16.msra.mxu0 %v10348_v31  ;;  %v9350_v31 = vcombine.low %v3081_v26, %v3105_v27  ;;  %v3419_v26 = vld [vmem:[#allocation13 + $0x1390] sm:$0xff] }
 0x301   :  { %2674 = vmatprep.subr.bf16.mxu0 %v10353_v32  ;;  %v9354_v32 = vcombine.low %v3083_v28, %v3107_v30 }
 0x302   :  { %7666 = vmatpush1.bf16.msra.mxu1 %v9350_v31 }
 0x304   :  { %2675 = vmatpush1.bf16.msra.mxu0 %v10351_v33  ;;  %v9355_v33 = vcombine.high %v3083_v28, %v3107_v30  ;;  %v3443_v28 = vld [vmem:[#allocation13 + $0x1450] sm:$0xff] }
 0x305   :  { %7735 = vmatprep.subr.bf16.mxu0 %v9067_v42  ;;  %v3201_v42 = vld [vmem:[#allocation13 + $0xcc0] sm:$0xff]  ;;  %v9690_v30 = vcombine.low %v3419_v26, %v3443_v28  ;;  %v9691_v31 = vcombine.high %v3419_v26, %v3443_v28 }
 0x307   :  { %2677 = vmatmul.mubr.bf16.vlgmr.msra.gmra.mrb[4].mxu0 %v2217_v35  ;;  %v3153_v35 = vld [vmem:[#allocation13 + $0xb40] sm:$0xff] }
 0x308   :  { %7736 = vmatpush1.bf16.msra.mxu0 %v9066_v18  ;;  %v9399_v37 = vcombine.high %v3129_v34, %v3153_v35  ;;  %v9398_v39 = vcombine.low %v3129_v34, %v3153_v35  ;;  %v3177_v18 = vld [vmem:[#allocation13 + $0xc00] sm:$0xff]  ;;  %v3467_v34 = vld [vmem:[#allocation13 + $0x1510] sm:$0xff] }
 0x309   :  { %7737 = vmatprep.subr.bf16.mxu0 %v9115_v50  ;;  %v9447_v54 = vcombine.high %v3177_v18, %v3201_v42  ;;  %v9446_v17 = vcombine.low %v3177_v18, %v3201_v42  ;;  %v3249_v50 = vld [vmem:[#allocation13 + $0xe40] sm:$0xff]  ;;  %v9738_v38 = vcombine.low %v3467_v34, %v3491_v36  ;;  %v3515_v18 = vld [vmem:[#allocation13 + $0x1690] sm:$0xff] }
 0x30a   :  { %7667 = vmatprep.subr.bf16.mxu1 %v9399_v37  ;;  %v9786_v43 = vcombine.low %v3515_v18, %v3539_v20 }
 0x30b   :  { %7668 = vmatpush1.bf16.msra.mxu1 %v9398_v39  ;;  %v9739_v39 = vcombine.high %v3467_v34, %v3491_v36 }
 0x30c   :  { %7738 = vmatpush1.bf16.msra.mxu0 %v9114_v49  ;;  %7669 = vmatprep.subr.bf16.mxu1 %v9447_v54  ;;  %v3225_v49 = vld [vmem:[#allocation13 + $0xd80] sm:$0xff] }
 0x30d   :  { %7739 = vmatprep.subr.bf16.mxu0 %v9163_v55  ;;  %v9495_v45 = vcombine.high %v3225_v49, %v3249_v50  ;;  %v9494_v47 = vcombine.low %v3225_v49, %v3249_v50  ;;  %v3297_v55 = vld [vmem:[#allocation13 + $0xfc0] sm:$0xff] }
 0x30e   :  { %v10925_v49 = vld [vmem:[#allocation13 + $0x20] sm:$0xff] }
 0x30f   :  { %7670 = vmatpush1.bf16.msra.mxu1 %v9446_v17  ;;  %v9787_v17 = vcombine.high %v3515_v18, %v3539_v20  ;;  %v9070_v46 = vcombine.low %v10925_v49, %v10929_v44 }
 0x310   :  { %7740 = vmatpush1.bf16.msra.mxu0 %v9162_v52  ;;  %7671 = vmatprep.subr.bf16.mxu1 %v9495_v45  ;;  %v3273_v52 = vld [vmem:[#allocation13 + $0xf00] sm:$0xff] }
 0x311   :  { %7741 = vmatprep.subr.bf16.mxu0 %v9211_v63  ;;  %v9543_v57 = vcombine.high %v3273_v52, %v3297_v55  ;;  %v9542_v59 = vcombine.low %v3273_v52, %v3297_v55  ;;  %v3345_v63 = vld [vmem:[#allocation13 + $0x1140] sm:$0xff] }
 0x313   :  { %7672 = vmatpush1.bf16.msra.mxu1 %v9494_v47  ;;  %v9071_v47 = vcombine.high %v10925_v49, %v10929_v44 }
 0x314   :  { %7742 = vmatpush1.bf16.msra.mxu0 %v9210_v62  ;;  %7673 = vmatprep.subr.bf16.mxu1 %v9543_v57  ;;  %v3321_v62 = vld [vmem:[#allocation13 + $0x1080] sm:$0xff] }
 0x315   :  { %7743 = vmatprep.subr.bf16.mxu0 %v9259_v9  ;;  %v9591_v1 = vcombine.high %v3321_v62, %v3345_v63  ;;  %v9590_v3 = vcombine.low %v3321_v62, %v3345_v63  ;;  %v3393_v9 = vld [vmem:[#allocation13 + $0x12c0] sm:$0xff] }
 0x317   :  { %7674 = vmatpush1.bf16.msra.mxu1 %v9542_v59 }
 0x318   :  { %7744 = vmatpush1.bf16.msra.mxu0 %v9258_v7  ;;  %7675 = vmatprep.subr.bf16.mxu1 %v9591_v1  ;;  %v3369_v7 = vld [vmem:[#allocation13 + $0x1200] sm:$0xff] }
 0x319   :  { %7745 = vmatprep.subr.bf16.mxu0 %v9307_v22  ;;  %v9639_v11 = vcombine.high %v3369_v7, %v3393_v9  ;;  %v9638_v13 = vcombine.low %v3369_v7, %v3393_v9  ;;  %v3441_v22 = vld [vmem:[#allocation13 + $0x1440] sm:$0xff] }
 0x31b   :  { %7676 = vmatpush1.bf16.msra.mxu1 %v9590_v3 }
 0x31c   :  { %7746 = vmatpush1.bf16.msra.mxu0 %v9306_v16  ;;  %7677 = vmatprep.subr.bf16.mxu1 %v9639_v11  ;;  %v3417_v16 = vld [vmem:[#allocation13 + $0x1380] sm:$0xff] }
 0x31d   :  { %7747 = vmatprep.subr.bf16.mxu0 %v9355_v33  ;;  %v9687_v27 = vcombine.high %v3417_v16, %v3441_v22  ;;  %v9686_v29 = vcombine.low %v3417_v16, %v3441_v22  ;;  %v3489_v33 = vld [vmem:[#allocation13 + $0x15c0] sm:$0xff] }
 0x31f   :  { %7678 = vmatpush1.bf16.msra.mxu1 %v9638_v13 }
 0x320   :  { %7748 = vmatpush1.bf16.msra.mxu0 %v9354_v32  ;;  %7679 = vmatprep.subr.bf16.mxu1 %v9687_v27  ;;  %v3465_v32 = vld [vmem:[#allocation13 + $0x1500] sm:$0xff] }
 0x321   :  { %7749 = vmatprep.subr.bf16.mxu0 %v9403_v41  ;;  %v9735_v35 = vcombine.high %v3465_v32, %v3489_v33  ;;  %v9734_v37 = vcombine.low %v3465_v32, %v3489_v33  ;;  %v3537_v41 = vld [vmem:[#allocation13 + $0x1740] sm:$0xff] }
 0x323   :  { %7680 = vmatpush1.bf16.msra.mxu1 %v9686_v29 }
 0x324   :  { %7750 = vmatpush1.bf16.msra.mxu0 %v9402_v40  ;;  %7681 = vmatprep.subr.bf16.mxu1 %v9735_v35  ;;  %v3513_v40 = vld [vmem:[#allocation13 + $0x1680] sm:$0xff] }
 0x325   :  { %7751 = vmatprep.subr.bf16.mxu0 %v9451_v53  ;;  %v9783_v42 = vcombine.high %v3513_v40, %v3537_v41  ;;  %v9782_v54 = vcombine.low %v3513_v40, %v3537_v41  ;;  %v10923_v53 = vld [vmem:[#allocation13 + $0xc8] sm:$0xff]  ;;  %v2685_v40 = vld [vmem:[#allocation10] sm:$0x3] }
 0x327   :  { %7682 = vmatpush1.bf16.msra.mxu1 %v9734_v37 }
 0x328   :  { %7752 = vmatpush1.bf16.msra.mxu0 %v9450_v19  ;;  %7683 = vmatprep.subr.bf16.mxu1 %v9783_v42  ;;  %v10921_v19 = vld [vmem:[#allocation13 + $0x8] sm:$0xff] }
 0x329   :  { %7753 = vmatprep.subr.bf16.mxu0 %v9499_v51  ;;  %v9065_v50 = vcombine.high %v10921_v19, %v10923_v53  ;;  %v9064_v45 = vcombine.low %v10921_v19, %v10923_v53 }
 0x32b   :  { %7684 = vmatpush1.bf16.msra.mxu1 %v9782_v54 }
 0x32c   :  { %7754 = vmatpush1.bf16.msra.mxu0 %v9498_v48  ;;  %7694 = vmatprep.subr.bf16.mxu1 %v9065_v50 }
 0x32d   :  { %7755 = vmatprep.subr.bf16.mxu0 %v9547_v61 }
 0x330   :  { %7756 = vmatpush1.bf16.msra.mxu0 %v9546_v60 }
 0x331   :  { %7757 = vmatprep.subr.bf16.mxu0 %v9595_v6 }
 0x334   :  { %7758 = vmatpush1.bf16.msra.mxu0 %v9594_v4 }
 0x335   :  { %7759 = vmatprep.subr.bf16.mxu0 %v9643_v15 }
 0x338   :  { %7760 = vmatpush1.bf16.msra.mxu0 %v9642_v14 }
 0x339   :  { %7761 = vmatprep.subr.bf16.mxu0 %v9691_v31 }
 0x33c   :  { %7762 = vmatpush1.bf16.msra.mxu0 %v9690_v30 }
 0x33d   :  { %7763 = vmatprep.subr.bf16.mxu0 %v9739_v39 }
 0x340   :  { %7764 = vmatpush1.bf16.msra.mxu0 %v9738_v38 }
 0x341   :  { %7765 = vmatprep.subr.bf16.mxu0 %v9787_v17 }
 0x344   :  { %7766 = vmatpush1.bf16.msra.mxu0 %v9786_v43 }
 0x345   :  { %7817 = vmatprep.subr.bf16.mxu0 %v9071_v47 }
 0x3da   :  { %v2678_v48 = vpop.f32.mrb[4].mxu0 }
 0x3db   :  { %v2687_v51 = vrot.slane %v2678_v48, 4  ;;  %v2680_v52 = vpop.f32.mrb[5].mxu0 }
 0x3dc   :  { %v2693_v55 = vrot.slane %v2680_v52, 4  ;;  %v2682_v56 = vpop.f32.mrb[6].mxu0 }
 0x3dd   :  { %v2688_v57 = vadd.f32 %v2687_v51, %v2678_v48  ;;  %v2683_v58 = vpop.f32.mrb[7].mxu0 }
 0x3de   :  { %v2694_v59 = vadd.f32 %v2693_v55, %v2680_v52  ;;  %v2686_v55 = vld [vmem:[#allocation12] sm:$0x3] }
 0x3df   :  { %v2689_v60 = vrot.slane %v2688_v57, 2 }
 0x3e0   :  { %v2695_v61 = vrot.slane %v2694_v59, 2 }
 0x3e1   :  { %v2690_v62 = vadd.f32 %v2689_v60, %v2688_v57 }
 0x3e2   :  { %v2696_v63 = vadd.f32 %v2695_v61, %v2694_v59 }
 0x3e3   :  { %v2691_v0 = vrot.slane %v2690_v62, 1 }
 0x3e4   :  { %v2697_v1 = vrot.slane %v2696_v63, 1 }
 0x3e5   :  { %v2692_v2 = vadd.f32 %v2691_v0, %v2690_v62  ;;  %v2842_v0 = vld [vmem:[#allocation13 + $0x188] sm:$0xff] }
 0x3e6   :  { %v2698_v3 = vadd.f32 %v2697_v1, %v2696_v63  ;;  %v2866_v1 = vld [vmem:[#allocation13 + $0x248] sm:$0xff] }
 0x3e7   :  { %v2699_v4 = vmul.f32 0.125, %v2692_v2  ;;  %v2845_v2 = vld [vmem:[#allocation13 + $0x1a0] sm:$0xff] }
 0x3e8   :  { %v2700_v6 = vmul.f32 0.125, %v2698_v3 }
 0x3e9   :  { %v2701_v7 = vsub.f32 %v2678_v48, %v2699_v4 }
 0x3ea   :  { %v2702_v9 = vsub.f32 %v2680_v52, %v2700_v6 }
 0x3eb   :  { %v2703_v10 = vmul.f32 %v2701_v7, %v2701_v7  ;;  %v2914_v7 = vld [vmem:[#allocation13 + $0x3c8] sm:$0xff] }
 0x3ec   :  { %v2704_v11 = vmul.f32 %v2702_v9, %v2702_v9  ;;  %v2893_v9 = vld [vmem:[#allocation13 + $0x320] sm:$0xff] }
 0x3ed   :  { %v2705_v12 = vrot.slane %v2703_v10, 4 }
 0x3ee   :  { %v2711_v13 = vrot.slane %v2704_v11, 4 }
 0x3ef   :  { %v2706_v14 = vadd.f32 %v2705_v12, %v2703_v10  ;;  %v2917_v10 = vld [vmem:[#allocation13 + $0x3e0] sm:$0xff] }
 0x3f0   :  { %v2712_v15 = vadd.f32 %v2711_v13, %v2704_v11  ;;  %v9112_v11 = vcombine.low %v2842_v0, %v2866_v1  ;;  %v9166_v53 = vcombine.low %v2893_v9, %v2917_v10 }
 0x3f1   :  { %v2707_v16 = vrot.slane %v2706_v14, 2 }
 0x3f2   :  { %v2713_v22 = vrot.slane %v2712_v15, 2 }
 0x3f3   :  { %v2708_v26 = vadd.f32 %v2707_v16, %v2706_v14  ;;  %v9167_v14 = vcombine.high %v2893_v9, %v2917_v10  ;;  %v2962_v16 = vld [vmem:[#allocation13 + $0x548] sm:$0xff]  ;;  %v3253_v9 = vld [vmem:[#allocation13 + $0xe60] sm:$0xff] }
 0x3f4   :  { %v2714_v27 = vadd.f32 %v2713_v22, %v2712_v15  ;;  %v2938_v15 = vld [vmem:[#allocation13 + $0x488] sm:$0xff]  ;;  %v2941_v22 = vld [vmem:[#allocation13 + $0x4a0] sm:$0xff] }
 0x3f5   :  { %v2709_v28 = vrot.slane %v2708_v26, 1  ;;  %v9209_v49 = vcombine.high %v2938_v15, %v2962_v16 }
 0x3f6   :  { %v2715_v29 = vrot.slane %v2714_v27, 1 }
 0x3f7   :  { %v2710_v30 = vadd.f32 %v2709_v28, %v2708_v26  ;;  %v2965_v26 = vld [vmem:[#allocation13 + $0x560] sm:$0xff] }
 0x3f8   :  { %v2716_v31 = vadd.f32 %v2715_v29, %v2714_v27  ;;  %v9215_v44 = vcombine.high %v2941_v22, %v2965_v26  ;;  %v2989_v27 = vld [vmem:[#allocation13 + $0x620] sm:$0xff]  ;;  %v9208_v29 = vcombine.low %v2938_v15, %v2962_v16  ;;  %v3298_v15 = vld [vmem:[#allocation13 + $0xfc8] sm:$0xff] }
 0x3f9   :  { %v2717_v32 = vmul.f32 0.125, %v2710_v30  ;;  %v3013_v28 = vld [vmem:[#allocation13 + $0x6e0] sm:$0xff]  ;;  %v9214_v30 = vcombine.low %v2941_v22, %v2965_v26 }
 0x3fa   :  { %v2718_v33 = vmul.f32 0.125, %v2716_v31  ;;  %v3277_v16 = vld [vmem:[#allocation13 + $0xf20] sm:$0xff] }
 0x3fb   :  { %v2719_v34 = vadd.f32 1e-05, %v2717_v32  ;;  %v9263_v32 = vcombine.high %v2989_v27, %v3013_v28  ;;  %v3301_v22 = vld [vmem:[#allocation13 + $0xfe0] sm:$0xff] }
 0x3fc   :  { %v2720_v35 = vadd.f32 1e-05, %v2718_v33  ;;  %v3034_v33 = vld [vmem:[#allocation13 + $0x788] sm:$0xff] }
 0x3fd   :  { %10362 = vrsqrt.f32 %v2719_v34  ;;  %v3058_v34 = vld [vmem:[#allocation13 + $0x848] sm:$0xff] }
 0x3fe   :  { %10364 = vrsqrt.f32 %v2720_v35  ;;  %v3037_v35 = vld [vmem:[#allocation13 + $0x7a0] sm:$0xff] }
 0x407   :  { %v10363_v36 = vpop.eup %10362 }
 0x408   :  { %v10365_v37 = vpop.eup %10364 }
 0x409   :  { %v2725_v38 = vcombine.low %v10363_v36, %v10365_v37  ;;  %v3061_v36 = vld [vmem:[#allocation13 + $0x860] sm:$0xff] }
 0x40b   :  { %v2732_v39 = vrot.slane %v2725_v38, %v10882_v8  ;;  %v9262_v38 = vcombine.low %v2989_v27, %v3013_v28  ;;  %v3349_v27 = vld [vmem:[#allocation13 + $0x1160] sm:$0xff] }
 0x40d   :  { %v2739_v41 = vrot.slane %v2732_v39, %v10882_v8  ;;  %v9305_v39 = vcombine.high %v3034_v33, %v3058_v34 }
 0x40f   :  { %v2741_v18 = vmul.f32 %v2739_v41, %v2685_v40  ;;  %v9311_v40 = vcombine.high %v3037_v35, %v3061_v36  ;;  %v3082_v41 = vld [vmem:[#allocation13 + $0x908] sm:$0xff] }
 0x411   :  { %v2746_v42 = vrot.slane %v2741_v18, %v10894_v24  ;;  %v2750_v20 = vrot.slane %v2741_v18, %v10897_v25  ;;  %v3106_v18 = vld [vmem:[#allocation13 + $0x9c8] sm:$0xff] }
 0x413   :  { %v2753_v54 = vmul.f32 %v2746_v42, %v2699_v4  ;;  %v2754_v43 = vmul.f32 %v2750_v20, %v2700_v6  ;;  %v2774_v17 = vmul.f32 %v2746_v42, %v2678_v48  ;;  %v2775_v50 = vmul.f32 %v2750_v20, %v2680_v52  ;;  %v2869_v48 = vld [vmem:[#allocation13 + $0x260] sm:$0xff]  ;;  %v2890_v4 = vld [vmem:[#allocation13 + $0x308] sm:$0xff] }
 0x414   :  { %v9119_v6 = vcombine.high %v2845_v2, %v2869_v48  ;;  %v9118_v12 = vcombine.low %v2845_v2, %v2869_v48  ;;  %v9161_v13 = vcombine.high %v2890_v4, %v2914_v7  ;;  %v9160_v19 = vcombine.low %v2890_v4, %v2914_v7  ;;  %v3085_v42 = vld [vmem:[#allocation13 + $0x920] sm:$0xff] }
 0x415   :  { %v2757_v47 = vcombine.low %v2753_v54, %v2754_v43  ;;  %v3109_v20 = vld [vmem:[#allocation13 + $0x9e0] sm:$0xff]  ;;  %v9304_v54 = vcombine.low %v3034_v33, %v3058_v34  ;;  %v9310_v43 = vcombine.low %v3037_v35, %v3061_v36  ;;  %v3394_v33 = vld [vmem:[#allocation13 + $0x12c8] sm:$0xff] }
 0x416   :  { %v3229_v7 = vld [vmem:[#allocation13 + $0xda0] sm:$0xff] }
 0x417   :  { %v2764_v51 = vrot.slane %v2757_v47, %v10882_v8  ;;  %v3130_v47 = vld [vmem:[#allocation13 + $0xa88] sm:$0xff]  ;;  %v3373_v34 = vld [vmem:[#allocation13 + $0x1220] sm:$0xff] }
 0x418   :  { %v3397_v35 = vld [vmem:[#allocation13 + $0x12e0] sm:$0xff] }
 0x419   :  { %v2771_v56 = vrot.slane %v2764_v51, %v10882_v8  ;;  %v9113_v8 = vcombine.high %v2842_v0, %v2866_v1  ;;  %v3154_v51 = vld [vmem:[#allocation13 + $0xb48] sm:$0xff]  ;;  %v3205_v0 = vld [vmem:[#allocation13 + $0xce0] sm:$0xff] }
 0x41a   :  { %v9400_v1 = vcombine.low %v3130_v47, %v3154_v51 }
 0x41b   :  { %v2773_v57 = vsub.f32 %v2686_v55, %v2771_v56  ;;  %v3133_v55 = vld [vmem:[#allocation13 + $0xaa0] sm:$0xff] }
 0x41c   :  { %v3157_v56 = vld [vmem:[#allocation13 + $0xb60] sm:$0xff] }
 0x41d   :  { %v2780_v58 = vrot.slane %v2773_v57, %v10894_v24  ;;  %v2784_v59 = vrot.slane %v2773_v57, %v10897_v25  ;;  %v9352_v57 = vcombine.low %v3082_v41, %v3106_v18  ;;  %v9406_v2 = vcombine.low %v3133_v55, %v3157_v56 }
 0x41f   :  { %v2787_v60 = vadd.f32 %v2780_v58, %v2774_v17  ;;  %v2788_v61 = vadd.f32 %v2784_v59, %v2775_v50  ;;  %v9353_v17 = vcombine.high %v3082_v41, %v3106_v18  ;;  %v9359_v50 = vcombine.high %v3085_v42, %v3109_v20  ;;  %v3442_v41 = vld [vmem:[#allocation13 + $0x1448] sm:$0xff]  ;;  %v3421_v18 = vld [vmem:[#allocation13 + $0x13a0] sm:$0xff] }
 0x420   :  { %v9358_v58 = vcombine.low %v3085_v42, %v3109_v20  ;;  %v9401_v59 = vcombine.high %v3130_v47, %v3154_v51  ;;  %v3445_v42 = vld [vmem:[#allocation13 + $0x1460] sm:$0xff]  ;;  %v3490_v47 = vld [vmem:[#allocation13 + $0x15c8] sm:$0xff] }
 0x421   :  { %v2789_v62 = vmax.f32 %v2787_v60, 0.0  ;;  %v2790_v63 = vmax.f32 %v2788_v61, 0.0  ;;  %v9407_v60 = vcombine.high %v3133_v55, %v3157_v56  ;;  %v3178_v61 = vld [vmem:[#allocation13 + $0xc08] sm:$0xff]  ;;  %v3469_v51 = vld [vmem:[#allocation13 + $0x1520] sm:$0xff] }
 0x422   :  { %v3493_v55 = vld [vmem:[#allocation13 + $0x15e0] sm:$0xff] }
 0x423   :  { %v10945_v52 = vpack.c.bf16 %v2789_v62, %v2789_v62  ;;  %v10947_v3 = vpack.c.bf16 %v2790_v63, %v2790_v63  ;;  %v3202_v62 = vld [vmem:[#allocation13 + $0xcc8] sm:$0xff]  ;;  %v3181_v63 = vld [vmem:[#allocation13 + $0xc20] sm:$0xff] }
 0x424   :  { %v9449_v48 = vcombine.high %v3178_v61, %v3202_v62  ;;  %v9455_v4 = vcombine.high %v3181_v63, %v3205_v0  ;;  %v9448_v10 = vcombine.low %v3178_v61, %v3202_v62  ;;  %v3538_v61 = vld [vmem:[#allocation13 + $0x1748] sm:$0xff]  ;;  %v3517_v62 = vld [vmem:[#allocation13 + $0x16a0] sm:$0xff] }
 0x425   :  { %7685 = vmatprep.mubr.bf16.mxu1 %v10947_v3  ;;  %7767 = vmatprep.mubr.bf16.mxu0 %v10947_v3 }
 0x426   :  { %7686 = vmatmul.mubr.bf16.vlgmr.msra.gmra.mrb[4].mxu1 %v10945_v52  ;;  %7768 = vmatmul.mubr.bf16.vlgmr.msra.gmra.mrb[8].mxu0 %v10945_v52 }
 0x427   :  { %7695 = vmatpush1.bf16.msra.mxu1 %v9064_v45  ;;  %7818 = vmatpush1.bf16.msra.mxu0 %v9070_v46  ;;  %v2986_v45 = vld [vmem:[#allocation13 + $0x608] sm:$0xff] }
 0x428   :  { %7726 = vmatprep.mubr.bf16.mxu1 %v10947_v3  ;;  %7849 = vmatprep.mubr.bf16.mxu0 %v10947_v3  ;;  %v3010_v46 = vld [vmem:[#allocation13 + $0x6c8] sm:$0xff] }
 0x429   :  { %7696 = vmatprep.subr.bf16.mxu1 %v9113_v8  ;;  %7819 = vmatprep.subr.bf16.mxu0 %v9119_v6  ;;  %v9257_v31 = vcombine.high %v2986_v45, %v3010_v46  ;;  %v9256_v37 = vcombine.low %v2986_v45, %v3010_v46  ;;  %v3226_v8 = vld [vmem:[#allocation13 + $0xd88] sm:$0xff]  ;;  %v3325_v46 = vld [vmem:[#allocation13 + $0x10a0] sm:$0xff] }
 0x42a   :  { %v3250_v6 = vld [vmem:[#allocation13 + $0xe48] sm:$0xff] }
 0x42b   :  { %7697 = vmatpush1.bf16.msra.mxu1 %v9112_v11  ;;  %7820 = vmatpush1.bf16.msra.mxu0 %v9118_v12  ;;  %v9454_v11 = vcombine.low %v3181_v63, %v3205_v0  ;;  %v9497_v12 = vcombine.high %v3226_v8, %v3250_v6  ;;  %v9496_v26 = vcombine.low %v3226_v8, %v3250_v6  ;;  %v3346_v45 = vld [vmem:[#allocation13 + $0x1148] sm:$0xff]  ;;  %v3541_v63 = vld [vmem:[#allocation13 + $0x1760] sm:$0xff]  ;;  %v2820_v8 = vld [vmem:[#allocation13 + $0xd8] sm:$0xff] }
 0x42c   :  { %7698 = vmatprep.subr.bf16.mxu1 %v9161_v13  ;;  %7821 = vmatprep.subr.bf16.mxu0 %v9167_v14  ;;  %v9503_v13 = vcombine.high %v3229_v7, %v3253_v9  ;;  %v3274_v14 = vld [vmem:[#allocation13 + $0xf08] sm:$0xff]  ;;  %v2799_v6 = vld [vmem:[#allocation13 + $0x30] sm:$0xff] }
 0x42d   :  { %v9544_v28 = vcombine.low %v3274_v14, %v3298_v15 }
 0x42f   :  { %7699 = vmatpush1.bf16.msra.mxu1 %v9160_v19  ;;  %7822 = vmatpush1.bf16.msra.mxu0 %v9166_v53  ;;  %v9502_v19 = vcombine.low %v3229_v7, %v3253_v9  ;;  %v9545_v53 = vcombine.high %v3274_v14, %v3298_v15  ;;  %v2823_v7 = vld [vmem:[#allocation13 + $0xf0] sm:$0xff]  ;;  %v2868_v14 = vld [vmem:[#allocation13 + $0x258] sm:$0xff] }
 0x430   :  { %7700 = vmatprep.subr.bf16.mxu1 %v9209_v49  ;;  %7823 = vmatprep.subr.bf16.mxu0 %v9215_v44  ;;  %v9551_v49 = vcombine.high %v3277_v16, %v3301_v22  ;;  %v3322_v44 = vld [vmem:[#allocation13 + $0x1088] sm:$0xff]  ;;  %v2847_v15 = vld [vmem:[#allocation13 + $0x1b0] sm:$0xff] }
 0x431   :  { %v9592_v36 = vcombine.low %v3322_v44, %v3346_v45 }
 0x433   :  { %7701 = vmatpush1.bf16.msra.mxu1 %v9208_v29  ;;  %7824 = vmatpush1.bf16.msra.mxu0 %v9214_v30  ;;  %v9550_v29 = vcombine.low %v3277_v16, %v3301_v22  ;;  %v9593_v30 = vcombine.high %v3322_v44, %v3346_v45  ;;  %v2871_v16 = vld [vmem:[#allocation13 + $0x270] sm:$0xff]  ;;  %v2916_v44 = vld [vmem:[#allocation13 + $0x3d8] sm:$0xff] }
 0x434   :  { %7702 = vmatprep.subr.bf16.mxu1 %v9257_v31  ;;  %7825 = vmatprep.subr.bf16.mxu0 %v9263_v32  ;;  %v9599_v31 = vcombine.high %v3325_v46, %v3349_v27  ;;  %v3370_v32 = vld [vmem:[#allocation13 + $0x1208] sm:$0xff]  ;;  %v2895_v45 = vld [vmem:[#allocation13 + $0x330] sm:$0xff] }
 0x435   :  { %v9640_v20 = vcombine.low %v3370_v32, %v3394_v33 }
 0x437   :  { %7703 = vmatpush1.bf16.msra.mxu1 %v9256_v37  ;;  %7826 = vmatpush1.bf16.msra.mxu0 %v9262_v38  ;;  %v9598_v37 = vcombine.low %v3325_v46, %v3349_v27  ;;  %v9641_v38 = vcombine.high %v3370_v32, %v3394_v33  ;;  %v2919_v46 = vld [vmem:[#allocation13 + $0x3f0] sm:$0xff]  ;;  %v2964_v32 = vld [vmem:[#allocation13 + $0x558] sm:$0xff] }
 0x438   :  { %7704 = vmatprep.subr.bf16.mxu1 %v9305_v39  ;;  %7827 = vmatprep.subr.bf16.mxu0 %v9311_v40  ;;  %v9647_v39 = vcombine.high %v3373_v34, %v3397_v35  ;;  %v3418_v40 = vld [vmem:[#allocation13 + $0x1388] sm:$0xff]  ;;  %v2943_v33 = vld [vmem:[#allocation13 + $0x4b0] sm:$0xff] }
 0x439   :  { %v9688_v56 = vcombine.low %v3418_v40, %v3442_v41 }
 0x43b   :  { %7705 = vmatpush1.bf16.msra.mxu1 %v9304_v54  ;;  %7828 = vmatpush1.bf16.msra.mxu0 %v9310_v43  ;;  %v9646_v54 = vcombine.low %v3373_v34, %v3397_v35  ;;  %v9689_v43 = vcombine.high %v3418_v40, %v3442_v41  ;;  %v2967_v34 = vld [vmem:[#allocation13 + $0x570] sm:$0xff]  ;;  %v3012_v40 = vld [vmem:[#allocation13 + $0x6d8] sm:$0xff] }
 0x43c   :  { %7706 = vmatprep.subr.bf16.mxu1 %v9353_v17  ;;  %7829 = vmatprep.subr.bf16.mxu0 %v9359_v50  ;;  %v9695_v17 = vcombine.high %v3421_v18, %v3445_v42  ;;  %v3466_v50 = vld [vmem:[#allocation13 + $0x1508] sm:$0xff]  ;;  %v2991_v41 = vld [vmem:[#allocation13 + $0x630] sm:$0xff] }
 0x43d   :  { %v9736_v0 = vcombine.low %v3466_v50, %v3490_v47 }
 0x43f   :  { %7707 = vmatpush1.bf16.msra.mxu1 %v9352_v57  ;;  %7830 = vmatpush1.bf16.msra.mxu0 %v9358_v58  ;;  %v9694_v57 = vcombine.low %v3421_v18, %v3445_v42  ;;  %v9737_v58 = vcombine.high %v3466_v50, %v3490_v47  ;;  %v3015_v18 = vld [vmem:[#allocation13 + $0x6f0] sm:$0xff]  ;;  %v3060_v50 = vld [vmem:[#allocation13 + $0x858] sm:$0xff] }
 0x440   :  { %7708 = vmatprep.subr.bf16.mxu1 %v9401_v59  ;;  %7831 = vmatprep.subr.bf16.mxu0 %v9407_v60  ;;  %v9743_v59 = vcombine.high %v3469_v51, %v3493_v55  ;;  %v3514_v60 = vld [vmem:[#allocation13 + $0x1688] sm:$0xff]  ;;  %v3039_v47 = vld [vmem:[#allocation13 + $0x7b0] sm:$0xff] }
 0x441   :  { %v9784_v9 = vcombine.low %v3514_v60, %v3538_v61 }
 0x443   :  { %7709 = vmatpush1.bf16.msra.mxu1 %v9400_v1  ;;  %7832 = vmatpush1.bf16.msra.mxu0 %v9406_v2  ;;  %v9742_v1 = vcombine.low %v3469_v51, %v3493_v55  ;;  %v9785_v2 = vcombine.high %v3514_v60, %v3538_v61  ;;  %v3063_v51 = vld [vmem:[#allocation13 + $0x870] sm:$0xff]  ;;  %v3108_v60 = vld [vmem:[#allocation13 + $0x9d8] sm:$0xff] }
 0x444   :  { %7710 = vmatprep.subr.bf16.mxu1 %v9449_v48  ;;  %7833 = vmatprep.subr.bf16.mxu0 %v9455_v4  ;;  %v9791_v48 = vcombine.high %v3517_v62, %v3541_v63  ;;  %v2796_v4 = vld [vmem:[#allocation13 + $0x18] sm:$0xff]  ;;  %v3087_v61 = vld [vmem:[#allocation13 + $0x930] sm:$0xff] }
 0x445   :  { %v9068_v22 = vcombine.low %v2796_v4, %v2820_v8 }
 0x447   :  { %7711 = vmatpush1.bf16.msra.mxu1 %v9448_v10  ;;  %7834 = vmatpush1.bf16.msra.mxu0 %v9454_v11  ;;  %v9790_v10 = vcombine.low %v3517_v62, %v3541_v63  ;;  %v9069_v11 = vcombine.high %v2796_v4, %v2820_v8  ;;  %v3111_v62 = vld [vmem:[#allocation13 + $0x9f0] sm:$0xff]  ;;  %v3156_v4 = vld [vmem:[#allocation13 + $0xb58] sm:$0xff] }
 0x448   :  { %7712 = vmatprep.subr.bf16.mxu1 %v9497_v12  ;;  %7835 = vmatprep.subr.bf16.mxu0 %v9503_v13  ;;  %v9075_v12 = vcombine.high %v2799_v6, %v2823_v7  ;;  %v2844_v13 = vld [vmem:[#allocation13 + $0x198] sm:$0xff]  ;;  %v3135_v8 = vld [vmem:[#allocation13 + $0xab0] sm:$0xff] }
 0x449   :  { %v9116_v27 = vcombine.low %v2844_v13, %v2868_v14 }
 0x44b   :  { %7713 = vmatpush1.bf16.msra.mxu1 %v9496_v26  ;;  %7836 = vmatpush1.bf16.msra.mxu0 %v9502_v19  ;;  %v9074_v26 = vcombine.low %v2799_v6, %v2823_v7  ;;  %v9117_v19 = vcombine.high %v2844_v13, %v2868_v14  ;;  %v3159_v6 = vld [vmem:[#allocation13 + $0xb70] sm:$0xff]  ;;  %v3204_v13 = vld [vmem:[#allocation13 + $0xcd8] sm:$0xff] }
 0x44c   :  { %7714 = vmatprep.subr.bf16.mxu1 %v9545_v53  ;;  %7837 = vmatprep.subr.bf16.mxu0 %v9551_v49  ;;  %v9123_v53 = vcombine.high %v2847_v15, %v2871_v16  ;;  %v2892_v49 = vld [vmem:[#allocation13 + $0x318] sm:$0xff]  ;;  %v3183_v14 = vld [vmem:[#allocation13 + $0xc30] sm:$0xff] }
 0x44d   :  { %v9164_v35 = vcombine.low %v2892_v49, %v2916_v44 }
 0x44f   :  { %7715 = vmatpush1.bf16.msra.mxu1 %v9544_v28  ;;  %7838 = vmatpush1.bf16.msra.mxu0 %v9550_v29  ;;  %v9122_v28 = vcombine.low %v2847_v15, %v2871_v16  ;;  %v9165_v29 = vcombine.high %v2892_v49, %v2916_v44  ;;  %v3207_v15 = vld [vmem:[#allocation13 + $0xcf0] sm:$0xff]  ;;  %v3252_v49 = vld [vmem:[#allocation13 + $0xe58] sm:$0xff] }
 0x450   :  { %7716 = vmatprep.subr.bf16.mxu1 %v9593_v30  ;;  %7839 = vmatprep.subr.bf16.mxu0 %v9599_v31  ;;  %v9171_v30 = vcombine.high %v2895_v45, %v2919_v46  ;;  %v2940_v31 = vld [vmem:[#allocation13 + $0x498] sm:$0xff]  ;;  %v3231_v44 = vld [vmem:[#allocation13 + $0xdb0] sm:$0xff] }
 0x451   :  { %v9212_v42 = vcombine.low %v2940_v31, %v2964_v32 }
 0x453   :  { %7717 = vmatpush1.bf16.msra.mxu1 %v9592_v36  ;;  %7840 = vmatpush1.bf16.msra.mxu0 %v9598_v37  ;;  %v9170_v36 = vcombine.low %v2895_v45, %v2919_v46  ;;  %v9213_v37 = vcombine.high %v2940_v31, %v2964_v32  ;;  %v3255_v45 = vld [vmem:[#allocation13 + $0xe70] sm:$0xff]  ;;  %v3300_v31 = vld [vmem:[#allocation13 + $0xfd8] sm:$0xff] }
 0x454   :  { %7718 = vmatprep.subr.bf16.mxu1 %v9641_v38  ;;  %7841 = vmatprep.subr.bf16.mxu0 %v9647_v39  ;;  %v9219_v38 = vcombine.high %v2943_v33, %v2967_v34  ;;  %v2988_v39 = vld [vmem:[#allocation13 + $0x618] sm:$0xff]  ;;  %v3279_v32 = vld [vmem:[#allocation13 + $0xf30] sm:$0xff] }
 0x455   :  { %v9260_v55 = vcombine.low %v2988_v39, %v3012_v40 }
 0x457   :  { %7719 = vmatpush1.bf16.msra.mxu1 %v9640_v20  ;;  %7842 = vmatpush1.bf16.msra.mxu0 %v9646_v54  ;;  %v9218_v20 = vcombine.low %v2943_v33, %v2967_v34  ;;  %v9261_v54 = vcombine.high %v2988_v39, %v3012_v40  ;;  %v3303_v33 = vld [vmem:[#allocation13 + $0xff0] sm:$0xff]  ;;  %v3348_v39 = vld [vmem:[#allocation13 + $0x1158] sm:$0xff] }
 0x458   :  { %7720 = vmatprep.subr.bf16.mxu1 %v9689_v43  ;;  %7843 = vmatprep.subr.bf16.mxu0 %v9695_v17  ;;  %v9267_v43 = vcombine.high %v2991_v41, %v3015_v18  ;;  %v3036_v17 = vld [vmem:[#allocation13 + $0x798] sm:$0xff]  ;;  %v3327_v40 = vld [vmem:[#allocation13 + $0x10b0] sm:$0xff] }
 0x459   :  { %v9308_v63 = vcombine.low %v3036_v17, %v3060_v50 }
 0x45b   :  { %7721 = vmatpush1.bf16.msra.mxu1 %v9688_v56  ;;  %7844 = vmatpush1.bf16.msra.mxu0 %v9694_v57  ;;  %v9266_v56 = vcombine.low %v2991_v41, %v3015_v18  ;;  %v9309_v57 = vcombine.high %v3036_v17, %v3060_v50  ;;  %v3351_v41 = vld [vmem:[#allocation13 + $0x1170] sm:$0xff]  ;;  %v3396_v17 = vld [vmem:[#allocation13 + $0x12d8] sm:$0xff] }
 0x45c   :  { %7722 = vmatprep.subr.bf16.mxu1 %v9737_v58  ;;  %7845 = vmatprep.subr.bf16.mxu0 %v9743_v59  ;;  %v9315_v58 = vcombine.high %v3039_v47, %v3063_v51  ;;  %v3084_v59 = vld [vmem:[#allocation13 + $0x918] sm:$0xff]  ;;  %v3375_v50 = vld [vmem:[#allocation13 + $0x1230] sm:$0xff] }
 0x45d   :  { %v9356_v7 = vcombine.low %v3084_v59, %v3108_v60 }
 0x45f   :  { %7723 = vmatpush1.bf16.msra.mxu1 %v9736_v0  ;;  %7846 = vmatpush1.bf16.msra.mxu0 %v9742_v1  ;;  %v9314_v0 = vcombine.low %v3039_v47, %v3063_v51  ;;  %v9357_v1 = vcombine.high %v3084_v59, %v3108_v60  ;;  %v3399_v47 = vld [vmem:[#allocation13 + $0x12f0] sm:$0xff]  ;;  %v3444_v59 = vld [vmem:[#allocation13 + $0x1458] sm:$0xff] }
 0x460   :  { %7724 = vmatprep.subr.bf16.mxu1 %v9785_v2  ;;  %7847 = vmatprep.subr.bf16.mxu0 %v9791_v48  ;;  %v9363_v2 = vcombine.high %v3087_v61, %v3111_v62  ;;  %v3132_v48 = vld [vmem:[#allocation13 + $0xa98] sm:$0xff]  ;;  %v3423_v60 = vld [vmem:[#allocation13 + $0x13b0] sm:$0xff] }
 0x461   :  { %v9404_v16 = vcombine.low %v3132_v48, %v3156_v4 }
 0x463   :  { %7725 = vmatpush1.bf16.msra.mxu1 %v9784_v9  ;;  %7848 = vmatpush1.bf16.msra.mxu0 %v9790_v10  ;;  %v9362_v9 = vcombine.low %v3087_v61, %v3111_v62  ;;  %v9405_v10 = vcombine.high %v3132_v48, %v3156_v4  ;;  %v3447_v61 = vld [vmem:[#allocation13 + $0x1470] sm:$0xff]  ;;  %v3492_v48 = vld [vmem:[#allocation13 + $0x15d8] sm:$0xff] }
 0x464   :  { %7776 = vmatprep.subr.bf16.mxu1 %v9069_v11  ;;  %7899 = vmatprep.subr.bf16.mxu0 %v9075_v12  ;;  %v9411_v11 = vcombine.high %v3135_v8, %v3159_v6  ;;  %v3180_v12 = vld [vmem:[#allocation13 + $0xc18] sm:$0xff]  ;;  %v3471_v4 = vld [vmem:[#allocation13 + $0x1530] sm:$0xff] }
 0x465   :  { %v9452_v46 = vcombine.low %v3180_v12, %v3204_v13 }
 0x466   :  { %7727 = vmatmul.mubr.bf16.vlgmr.msra.gmra.mrb[8].mxu1 %v10945_v52  ;;  %7850 = vmatmul.mubr.bf16.vlgmr.msra.gmra.mrb[12].mxu0 %v10945_v52 }
 0x467   :  { %7777 = vmatpush1.bf16.msra.mxu1 %v9068_v22  ;;  %7808 = vmatprep.mubr.bf16.mxu1 %v10947_v3  ;;  %v9410_v22 = vcombine.low %v3135_v8, %v3159_v6  ;;  %v3495_v8 = vld [vmem:[#allocation13 + $0x15f0] sm:$0xff] }
 0x468   :  { %7900 = vmatpush1.bf16.msra.mxu0 %v9074_v26  ;;  %7931 = vmatprep.mubr.bf16.mxu0 %v10947_v3  ;;  %v9453_v26 = vcombine.high %v3180_v12, %v3204_v13  ;;  %v3540_v12 = vld [vmem:[#allocation13 + $0x1758] sm:$0xff]  ;;  %v3519_v13 = vld [vmem:[#allocation13 + $0x16b0] sm:$0xff] }
 0x469   :  { %7778 = vmatprep.subr.bf16.mxu1 %v9117_v19  ;;  %7901 = vmatprep.subr.bf16.mxu0 %v9123_v53  ;;  %v9459_v19 = vcombine.high %v3183_v14, %v3207_v15  ;;  %v3228_v53 = vld [vmem:[#allocation13 + $0xd98] sm:$0xff] }
 0x46a   :  { %v9500_v34 = vcombine.low %v3228_v53, %v3252_v49 }
 0x46b   :  { %7779 = vmatpush1.bf16.msra.mxu1 %v9116_v27  ;;  %v9458_v27 = vcombine.low %v3183_v14, %v3207_v15  ;;  %v3543_v14 = vld [vmem:[#allocation13 + $0x1770] sm:$0xff] }
 0x46c   :  { %7902 = vmatpush1.bf16.msra.mxu0 %v9122_v28  ;;  %7780 = vmatprep.subr.bf16.mxu1 %v9165_v29  ;;  %v9501_v28 = vcombine.high %v3228_v53, %v3252_v49  ;;  %v9507_v29 = vcombine.high %v3231_v44, %v3255_v45  ;;  %v2822_v53 = vld [vmem:[#allocation13 + $0xe8] sm:$0xff]  ;;  %v2801_v49 = vld [vmem:[#allocation13 + $0x40] sm:$0xff] }
 0x46d   :  { %7903 = vmatprep.subr.bf16.mxu0 %v9171_v30  ;;  %v3276_v30 = vld [vmem:[#allocation13 + $0xf18] sm:$0xff] }
 0x46e   :  { %v9548_v18 = vcombine.low %v3276_v30, %v3300_v31 }
 0x46f   :  { %7781 = vmatpush1.bf16.msra.mxu1 %v9164_v35  ;;  %v9506_v35 = vcombine.low %v3231_v44, %v3255_v45  ;;  %v2825_v44 = vld [vmem:[#allocation13 + $0x100] sm:$0xff] }
 0x470   :  { %7904 = vmatpush1.bf16.msra.mxu0 %v9170_v36  ;;  %7782 = vmatprep.subr.bf16.mxu1 %v9213_v37  ;;  %v9549_v36 = vcombine.high %v3276_v30, %v3300_v31  ;;  %v9555_v37 = vcombine.high %v3279_v32, %v3303_v33  ;;  %v2870_v30 = vld [vmem:[#allocation13 + $0x268] sm:$0xff] }
 0x471   :  { %7905 = vmatprep.subr.bf16.mxu0 %v9219_v38  ;;  %v3324_v38 = vld [vmem:[#allocation13 + $0x1098] sm:$0xff] }
 0x472   :  { %v9596_v51 = vcombine.low %v3324_v38, %v3348_v39 }
 0x473   :  { %7783 = vmatpush1.bf16.msra.mxu1 %v9212_v42  ;;  %v9554_v42 = vcombine.low %v3279_v32, %v3303_v33  ;;  %v2849_v32 = vld [vmem:[#allocation13 + $0x1c0] sm:$0xff] }
 0x474   :  { %7906 = vmatpush1.bf16.msra.mxu0 %v9218_v20  ;;  %7784 = vmatprep.subr.bf16.mxu1 %v9261_v54  ;;  %v9597_v20 = vcombine.high %v3324_v38, %v3348_v39  ;;  %v9603_v54 = vcombine.high %v3327_v40, %v3351_v41  ;;  %v2873_v33 = vld [vmem:[#allocation13 + $0x280] sm:$0xff] }
 0x475   :  { %7907 = vmatprep.subr.bf16.mxu0 %v9267_v43  ;;  %v3372_v43 = vld [vmem:[#allocation13 + $0x1218] sm:$0xff]  ;;  %v9127_v38 = vcombine.high %v2849_v32, %v2873_v33  ;;  %v2897_v39 = vld [vmem:[#allocation13 + $0x340] sm:$0xff] }
 0x476   :  { %v9644_v62 = vcombine.low %v3372_v43, %v3396_v17 }
 0x477   :  { %7785 = vmatpush1.bf16.msra.mxu1 %v9260_v55  ;;  %v9602_v55 = vcombine.low %v3327_v40, %v3351_v41  ;;  %v2921_v40 = vld [vmem:[#allocation13 + $0x400] sm:$0xff] }
 0x478   :  { %7908 = vmatpush1.bf16.msra.mxu0 %v9266_v56  ;;  %7786 = vmatprep.subr.bf16.mxu1 %v9309_v57  ;;  %v9645_v56 = vcombine.high %v3372_v43, %v3396_v17  ;;  %v9651_v57 = vcombine.high %v3375_v50, %v3399_v47  ;;  %v2966_v43 = vld [vmem:[#allocation13 + $0x568] sm:$0xff]  ;;  %v2945_v17 = vld [vmem:[#allocation13 + $0x4c0] sm:$0xff] }
 0x479   :  { %7909 = vmatprep.subr.bf16.mxu0 %v9315_v58  ;;  %v3420_v58 = vld [vmem:[#allocation13 + $0x1398] sm:$0xff] }
 0x47a   :  { %v9692_v6 = vcombine.low %v3420_v58, %v3444_v59 }
 0x47b   :  { %7787 = vmatpush1.bf16.msra.mxu1 %v9308_v63  ;;  %v9650_v63 = vcombine.low %v3375_v50, %v3399_v47  ;;  %v2969_v50 = vld [vmem:[#allocation13 + $0x580] sm:$0xff] }
 0x47c   :  { %7910 = vmatpush1.bf16.msra.mxu0 %v9314_v0  ;;  %7788 = vmatprep.subr.bf16.mxu1 %v9357_v1  ;;  %v9693_v0 = vcombine.high %v3420_v58, %v3444_v59  ;;  %v9699_v1 = vcombine.high %v3423_v60, %v3447_v61  ;;  %v3014_v58 = vld [vmem:[#allocation13 + $0x6e8] sm:$0xff]  ;;  %v2993_v59 = vld [vmem:[#allocation13 + $0x640] sm:$0xff] }
 0x47d   :  { %7911 = vmatprep.subr.bf16.mxu0 %v9363_v2  ;;  %v3468_v2 = vld [vmem:[#allocation13 + $0x1518] sm:$0xff] }
 0x47e   :  { %v9740_v15 = vcombine.low %v3468_v2, %v3492_v48 }
 0x47f   :  { %7789 = vmatpush1.bf16.msra.mxu1 %v9356_v7  ;;  %v9698_v7 = vcombine.low %v3423_v60, %v3447_v61  ;;  %v3017_v60 = vld [vmem:[#allocation13 + $0x700] sm:$0xff] }
 0x480   :  { %7912 = vmatpush1.bf16.msra.mxu0 %v9362_v9  ;;  %7790 = vmatprep.subr.bf16.mxu1 %v9405_v10  ;;  %v9741_v9 = vcombine.high %v3468_v2, %v3492_v48  ;;  %v9747_v10 = vcombine.high %v3471_v4, %v3495_v8  ;;  %v3062_v2 = vld [vmem:[#allocation13 + $0x868] sm:$0xff]  ;;  %v3041_v48 = vld [vmem:[#allocation13 + $0x7c0] sm:$0xff] }
 0x481   :  { %7913 = vmatprep.subr.bf16.mxu0 %v9411_v11  ;;  %v3516_v11 = vld [vmem:[#allocation13 + $0x1698] sm:$0xff] }
 0x482   :  { %v9788_v45 = vcombine.low %v3516_v11, %v3540_v12 }
 0x483   :  { %7791 = vmatpush1.bf16.msra.mxu1 %v9404_v16  ;;  %v9746_v16 = vcombine.low %v3471_v4, %v3495_v8  ;;  %v3065_v4 = vld [vmem:[#allocation13 + $0x880] sm:$0xff] }
 0x484   :  { %7914 = vmatpush1.bf16.msra.mxu0 %v9410_v22  ;;  %7792 = vmatprep.subr.bf16.mxu1 %v9453_v26  ;;  %v9789_v22 = vcombine.high %v3516_v11, %v3540_v12  ;;  %v9795_v26 = vcombine.high %v3519_v13, %v3543_v14  ;;  %v3110_v11 = vld [vmem:[#allocation13 + $0x9e8] sm:$0xff]  ;;  %v3089_v12 = vld [vmem:[#allocation13 + $0x940] sm:$0xff] }
 0x485   :  { %7915 = vmatprep.subr.bf16.mxu0 %v9459_v19  ;;  %v2798_v19 = vld [vmem:[#allocation13 + $0x28] sm:$0xff] }
 0x486   :  { %v9072_v31 = vcombine.low %v2798_v19, %v2822_v53 }
 0x487   :  { %7793 = vmatpush1.bf16.msra.mxu1 %v9452_v46  ;;  %v9794_v46 = vcombine.low %v3519_v13, %v3543_v14  ;;  %v3113_v13 = vld [vmem:[#allocation13 + $0xa00] sm:$0xff] }
 0x488   :  { %7916 = vmatpush1.bf16.msra.mxu0 %v9458_v27  ;;  %7794 = vmatprep.subr.bf16.mxu1 %v9501_v28  ;;  %v9073_v27 = vcombine.high %v2798_v19, %v2822_v53  ;;  %v9079_v28 = vcombine.high %v2801_v49, %v2825_v44  ;;  %v3158_v19 = vld [vmem:[#allocation13 + $0xb68] sm:$0xff]  ;;  %v3137_v53 = vld [vmem:[#allocation13 + $0xac0] sm:$0xff] }
 0x489   :  { %7917 = vmatprep.subr.bf16.mxu0 %v9507_v29  ;;  %v2846_v29 = vld [vmem:[#allocation13 + $0x1a8] sm:$0xff] }
 0x48a   :  { %v9120_v41 = vcombine.low %v2846_v29, %v2870_v30 }
 0x48b   :  { %7795 = vmatpush1.bf16.msra.mxu1 %v9500_v34  ;;  %v9078_v34 = vcombine.low %v2801_v49, %v2825_v44  ;;  %v3161_v49 = vld [vmem:[#allocation13 + $0xb80] sm:$0xff] }
 0x48c   :  { %7918 = vmatpush1.bf16.msra.mxu0 %v9506_v35  ;;  %7796 = vmatprep.subr.bf16.mxu1 %v9549_v36  ;;  %v9121_v35 = vcombine.high %v2846_v29, %v2870_v30  ;;  %v2894_v36 = vld [vmem:[#allocation13 + $0x328] sm:$0xff]  ;;  %v3185_v30 = vld [vmem:[#allocation13 + $0xc40] sm:$0xff] }
 0x48d   :  { %7919 = vmatprep.subr.bf16.mxu0 %v9555_v37  ;;  %v2918_v37 = vld [vmem:[#allocation13 + $0x3e8] sm:$0xff] }
 0x48e   :  { %v9168_v47 = vcombine.low %v2894_v36, %v2918_v37  ;;  %v3206_v29 = vld [vmem:[#allocation13 + $0xce8] sm:$0xff] }
 0x48f   :  { %7797 = vmatpush1.bf16.msra.mxu1 %v9548_v18  ;;  %v9126_v18 = vcombine.low %v2849_v32, %v2873_v33  ;;  %v9414_v33 = vcombine.low %v3137_v53, %v3161_v49 }
 0x490   :  { %7920 = vmatpush1.bf16.msra.mxu0 %v9554_v42  ;;  %7798 = vmatprep.subr.bf16.mxu1 %v9597_v20  ;;  %v9169_v42 = vcombine.high %v2894_v36, %v2918_v37  ;;  %v9175_v20 = vcombine.high %v2897_v39, %v2921_v40  ;;  %v3230_v36 = vld [vmem:[#allocation13 + $0xda8] sm:$0xff] }
 0x491   :  { %7921 = vmatprep.subr.bf16.mxu0 %v9603_v54  ;;  %v2942_v54 = vld [vmem:[#allocation13 + $0x4a8] sm:$0xff] }
 0x492   :  { %v9216_v61 = vcombine.low %v2942_v54, %v2966_v43  ;;  %v3254_v37 = vld [vmem:[#allocation13 + $0xe68] sm:$0xff] }
 0x493   :  { %7799 = vmatpush1.bf16.msra.mxu1 %v9596_v51  ;;  %v9174_v51 = vcombine.low %v2897_v39, %v2921_v40  ;;  %v3257_v39 = vld [vmem:[#allocation13 + $0xe80] sm:$0xff] }
 0x494   :  { %7922 = vmatpush1.bf16.msra.mxu0 %v9602_v55  ;;  %7800 = vmatprep.subr.bf16.mxu1 %v9645_v56  ;;  %v9217_v55 = vcombine.high %v2942_v54, %v2966_v43  ;;  %v9223_v56 = vcombine.high %v2945_v17, %v2969_v50  ;;  %v3302_v54 = vld [vmem:[#allocation13 + $0xfe8] sm:$0xff]  ;;  %v3281_v43 = vld [vmem:[#allocation13 + $0xf40] sm:$0xff] }
 0x495   :  { %7923 = vmatprep.subr.bf16.mxu0 %v9651_v57  ;;  %v2990_v57 = vld [vmem:[#allocation13 + $0x628] sm:$0xff] }
 0x496   :  { %v9264_v8 = vcombine.low %v2990_v57, %v3014_v58 }
 0x497   :  { %7801 = vmatpush1.bf16.msra.mxu1 %v9644_v62  ;;  %v9222_v62 = vcombine.low %v2945_v17, %v2969_v50  ;;  %v3305_v17 = vld [vmem:[#allocation13 + $0x1000] sm:$0xff]  ;;  %v9504_v50 = vcombine.low %v3230_v36, %v3254_v37 }
 0x498   :  { %7924 = vmatpush1.bf16.msra.mxu0 %v9650_v63  ;;  %7802 = vmatprep.subr.bf16.mxu1 %v9693_v0  ;;  %v9265_v63 = vcombine.high %v2990_v57, %v3014_v58  ;;  %v9271_v0 = vcombine.high %v2993_v59, %v3017_v60  ;;  %v3350_v57 = vld [vmem:[#allocation13 + $0x1168] sm:$0xff]  ;;  %v3329_v58 = vld [vmem:[#allocation13 + $0x10c0] sm:$0xff] }
 0x499   :  { %7925 = vmatprep.subr.bf16.mxu0 %v9699_v1  ;;  %v3038_v1 = vld [vmem:[#allocation13 + $0x7a8] sm:$0xff] }
 0x49a   :  { %v9312_v14 = vcombine.low %v3038_v1, %v3062_v2 }
 0x49b   :  { %7803 = vmatpush1.bf16.msra.mxu1 %v9692_v6  ;;  %v9270_v6 = vcombine.low %v2993_v59, %v3017_v60  ;;  %v3353_v59 = vld [vmem:[#allocation13 + $0x1180] sm:$0xff] }
 0x49c   :  { %7926 = vmatpush1.bf16.msra.mxu0 %v9698_v7  ;;  %7804 = vmatprep.subr.bf16.mxu1 %v9741_v9  ;;  %v9313_v7 = vcombine.high %v3038_v1, %v3062_v2  ;;  %v9319_v9 = vcombine.high %v3041_v48, %v3065_v4  ;;  %v3398_v1 = vld [vmem:[#allocation13 + $0x12e8] sm:$0xff]  ;;  %v3377_v2 = vld [vmem:[#allocation13 + $0x1240] sm:$0xff] }
 0x49d   :  { %7927 = vmatprep.subr.bf16.mxu0 %v9747_v10  ;;  %v3086_v10 = vld [vmem:[#allocation13 + $0x928] sm:$0xff] }
 0x49e   :  { %v9360_v44 = vcombine.low %v3086_v10, %v3110_v11 }
 0x49f   :  { %7805 = vmatpush1.bf16.msra.mxu1 %v9740_v15  ;;  %v9318_v15 = vcombine.low %v3041_v48, %v3065_v4  ;;  %v3401_v48 = vld [vmem:[#allocation13 + $0x1300] sm:$0xff] }
 0x4a0   :  { %7928 = vmatpush1.bf16.msra.mxu0 %v9746_v16  ;;  %7806 = vmatprep.subr.bf16.mxu1 %v9789_v22  ;;  %v9361_v16 = vcombine.high %v3086_v10, %v3110_v11  ;;  %v9367_v22 = vcombine.high %v3089_v12, %v3113_v13  ;;  %v3446_v10 = vld [vmem:[#allocation13 + $0x1468] sm:$0xff]  ;;  %v3425_v11 = vld [vmem:[#allocation13 + $0x13c0] sm:$0xff] }
 0x4a1   :  { %7929 = vmatprep.subr.bf16.mxu0 %v9795_v26  ;;  %v3134_v26 = vld [vmem:[#allocation13 + $0xaa8] sm:$0xff] }
 0x4a2   :  { %v9408_v32 = vcombine.low %v3134_v26, %v3158_v19 }
 0x4a3   :  { %7807 = vmatpush1.bf16.msra.mxu1 %v9788_v45  ;;  %v9366_v45 = vcombine.low %v3089_v12, %v3113_v13  ;;  %v3449_v12 = vld [vmem:[#allocation13 + $0x1480] sm:$0xff] }
 0x4a4   :  { %7930 = vmatpush1.bf16.msra.mxu0 %v9794_v46  ;;  %7858 = vmatprep.subr.bf16.mxu1 %v9073_v27  ;;  %v9409_v46 = vcombine.high %v3134_v26, %v3158_v19  ;;  %v9415_v27 = vcombine.high %v3137_v53, %v3161_v49  ;;  %v3494_v26 = vld [vmem:[#allocation13 + $0x15e8] sm:$0xff]  ;;  %v3473_v19 = vld [vmem:[#allocation13 + $0x1540] sm:$0xff] }
 0x4a5   :  { %7981 = vmatprep.subr.bf16.mxu0 %v9079_v28  ;;  %v3182_v28 = vld [vmem:[#allocation13 + $0xc28] sm:$0xff]  ;;  %v3497_v53 = vld [vmem:[#allocation13 + $0x1600] sm:$0xff] }
 0x4a6   :  { %7809 = vmatmul.mubr.bf16.vlgmr.msra.gmra.mrb[12].mxu1 %v10945_v52  ;;  %v9456_v40 = vcombine.low %v3182_v28, %v3206_v29 }
 0x4a7   :  { %7932 = vmatmul.mubr.bf16.vlgmr.msra.gmra.mrb[16].mxu0 %v10945_v52  ;;  %7859 = vmatpush1.bf16.msra.mxu1 %v9072_v31  ;;  %v3209_v31 = vld [vmem:[#allocation13 + $0xd00] sm:$0xff] }
 0x4a8   :  { %7890 = vmatprep.mubr.bf16.mxu1 %v10947_v3  ;;  %7982 = vmatpush1.bf16.msra.mxu0 %v9078_v34  ;;  %v9457_v34 = vcombine.high %v3182_v28, %v3206_v29  ;;  %v3542_v28 = vld [vmem:[#allocation13 + $0x1768] sm:$0xff]  ;;  %v3521_v29 = vld [vmem:[#allocation13 + $0x16c0] sm:$0xff] }
 0x4a9   :  { %8013 = vmatprep.mubr.bf16.mxu0 %v10947_v3  ;;  %7860 = vmatprep.subr.bf16.mxu1 %v9121_v35  ;;  %v9463_v35 = vcombine.high %v3185_v30, %v3209_v31 }
 0x4aa   :  { %7983 = vmatprep.subr.bf16.mxu0 %v9127_v38  ;;  %v3233_v38 = vld [vmem:[#allocation13 + $0xdc0] sm:$0xff] }
 0x4ab   :  { %7861 = vmatpush1.bf16.msra.mxu1 %v9120_v41  ;;  %v9462_v41 = vcombine.low %v3185_v30, %v3209_v31  ;;  %v3545_v30 = vld [vmem:[#allocation13 + $0x1780] sm:$0xff] }
 0x4ac   :  { %7984 = vmatpush1.bf16.msra.mxu0 %v9126_v18  ;;  %7862 = vmatprep.subr.bf16.mxu1 %v9169_v42  ;;  %v9505_v18 = vcombine.high %v3230_v36, %v3254_v37  ;;  %v9511_v42 = vcombine.high %v3233_v38, %v3257_v39  ;;  %v2824_v36 = vld [vmem:[#allocation13 + $0xf8] sm:$0xff]  ;;  %v2803_v37 = vld [vmem:[#allocation13 + $0x50] sm:$0xff] }
 0x4ad   :  { %7985 = vmatprep.subr.bf16.mxu0 %v9175_v20  ;;  %v3278_v20 = vld [vmem:[#allocation13 + $0xf28] sm:$0xff] }
 0x4ae   :  { %v9552_v60 = vcombine.low %v3278_v20, %v3302_v54 }
 0x4af   :  { %7863 = vmatpush1.bf16.msra.mxu1 %v9168_v47  ;;  %v9510_v47 = vcombine.low %v3233_v38, %v3257_v39  ;;  %v2827_v38 = vld [vmem:[#allocation13 + $0x110] sm:$0xff] }
 0x4b0   :  { %7986 = vmatpush1.bf16.msra.mxu0 %v9174_v51  ;;  %7864 = vmatprep.subr.bf16.mxu1 %v9217_v55  ;;  %v9553_v51 = vcombine.high %v3278_v20, %v3302_v54  ;;  %v9559_v55 = vcombine.high %v3281_v43, %v3305_v17  ;;  %v2872_v20 = vld [vmem:[#allocation13 + $0x278] sm:$0xff] }
 0x4b1   :  { %7987 = vmatprep.subr.bf16.mxu0 %v9223_v56  ;;  %v3326_v56 = vld [vmem:[#allocation13 + $0x10a8] sm:$0xff] }
 0x4b2   :  { %v9600_v4 = vcombine.low %v3326_v56, %v3350_v57 }
 0x4b3   :  { %7865 = vmatpush1.bf16.msra.mxu1 %v9216_v61  ;;  %v9558_v61 = vcombine.low %v3281_v43, %v3305_v17  ;;  %v2851_v43 = vld [vmem:[#allocation13 + $0x1d0] sm:$0xff] }
 0x4b4   :  { %7988 = vmatpush1.bf16.msra.mxu0 %v9222_v62  ;;  %7866 = vmatprep.subr.bf16.mxu1 %v9265_v63  ;;  %v9601_v62 = vcombine.high %v3326_v56, %v3350_v57  ;;  %v9607_v63 = vcombine.high %v3329_v58, %v3353_v59  ;;  %v2875_v17 = vld [vmem:[#allocation13 + $0x290] sm:$0xff] }
 0x4b5   :  { %7989 = vmatprep.subr.bf16.mxu0 %v9271_v0  ;;  %v3374_v0 = vld [vmem:[#allocation13 + $0x1228] sm:$0xff]  ;;  %v9131_v56 = vcombine.high %v2851_v43, %v2875_v17  ;;  %v2899_v57 = vld [vmem:[#allocation13 + $0x350] sm:$0xff] }
 0x4b6   :  { %v9648_v13 = vcombine.low %v3374_v0, %v3398_v1 }
 0x4b7   :  { %7867 = vmatpush1.bf16.msra.mxu1 %v9264_v8  ;;  %v9606_v8 = vcombine.low %v3329_v58, %v3353_v59  ;;  %v2923_v58 = vld [vmem:[#allocation13 + $0x410] sm:$0xff] }
 0x4b8   :  { %7990 = vmatpush1.bf16.msra.mxu0 %v9270_v6  ;;  %7868 = vmatprep.subr.bf16.mxu1 %v9313_v7  ;;  %v9649_v6 = vcombine.high %v3374_v0, %v3398_v1  ;;  %v9655_v7 = vcombine.high %v3377_v2, %v3401_v48  ;;  %v2968_v0 = vld [vmem:[#allocation13 + $0x578] sm:$0xff]  ;;  %v2947_v1 = vld [vmem:[#allocation13 + $0x4d0] sm:$0xff] }
 0x4b9   :  { %7991 = vmatprep.subr.bf16.mxu0 %v9319_v9  ;;  %v3422_v9 = vld [vmem:[#allocation13 + $0x13a8] sm:$0xff] }
 0x4ba   :  { %v9696_v49 = vcombine.low %v3422_v9, %v3446_v10 }
 0x4bb   :  { %7869 = vmatpush1.bf16.msra.mxu1 %v9312_v14  ;;  %v9654_v14 = vcombine.low %v3377_v2, %v3401_v48  ;;  %v2971_v2 = vld [vmem:[#allocation13 + $0x590] sm:$0xff] }
 0x4bc   :  { %7992 = vmatpush1.bf16.msra.mxu0 %v9318_v15  ;;  %7870 = vmatprep.subr.bf16.mxu1 %v9361_v16  ;;  %v9697_v15 = vcombine.high %v3422_v9, %v3446_v10  ;;  %v9703_v16 = vcombine.high %v3425_v11, %v3449_v12  ;;  %v3016_v9 = vld [vmem:[#allocation13 + $0x6f8] sm:$0xff]  ;;  %v2995_v10 = vld [vmem:[#allocation13 + $0x650] sm:$0xff] }
 0x4bd   :  { %7993 = vmatprep.subr.bf16.mxu0 %v9367_v22  ;;  %v3470_v22 = vld [vmem:[#allocation13 + $0x1528] sm:$0xff] }
 0x4be   :  { %v9744_v31 = vcombine.low %v3470_v22, %v3494_v26 }
 0x4bf   :  { %7871 = vmatpush1.bf16.msra.mxu1 %v9360_v44  ;;  %v9702_v44 = vcombine.low %v3425_v11, %v3449_v12  ;;  %v3019_v11 = vld [vmem:[#allocation13 + $0x710] sm:$0xff] }
 0x4c0   :  { %7994 = vmatpush1.bf16.msra.mxu0 %v9366_v45  ;;  %7872 = vmatprep.subr.bf16.mxu1 %v9409_v46  ;;  %v9745_v45 = vcombine.high %v3470_v22, %v3494_v26  ;;  %v9751_v46 = vcombine.high %v3473_v19, %v3497_v53  ;;  %v3064_v22 = vld [vmem:[#allocation13 + $0x878] sm:$0xff]  ;;  %v10974_v26 = vsub.s32 4, %v10879_v5 }
 0x4c1   :  { %7995 = vmatprep.subr.bf16.mxu0 %v9415_v27  ;;  %v3518_v27 = vld [vmem:[#allocation13 + $0x16a8] sm:$0xff] }
 0x4c2   :  { %v9792_v39 = vcombine.low %v3518_v27, %v3542_v28 }
 0x4c3   :  { %7873 = vmatpush1.bf16.msra.mxu1 %v9408_v32  ;;  %v9750_v32 = vcombine.low %v3473_v19, %v3497_v53  ;;  %v3043_v19 = vld [vmem:[#allocation13 + $0x7d0] sm:$0xff] }
 0x4c4   :  { %7996 = vmatpush1.bf16.msra.mxu0 %v9414_v33  ;;  %7874 = vmatprep.subr.bf16.mxu1 %v9457_v34  ;;  %v9793_v33 = vcombine.high %v3518_v27, %v3542_v28  ;;  %v9799_v34 = vcombine.high %v3521_v29, %v3545_v30  ;;  %v3067_v53 = vld [vmem:[#allocation13 + $0x890] sm:$0xff] }
 0x4c5   :  { %7997 = vmatprep.subr.bf16.mxu0 %v9463_v35  ;;  %v2800_v35 = vld [vmem:[#allocation13 + $0x38] sm:$0xff]  ;;  %v9323_v28 = vcombine.high %v3043_v19, %v3067_v53 }
 0x4c6   :  { %v9076_v54 = vcombine.low %v2800_v35, %v2824_v36 }
 0x4c7   :  { %7875 = vmatpush1.bf16.msra.mxu1 %v9456_v40  ;;  %v9798_v40 = vcombine.low %v3521_v29, %v3545_v30  ;;  %v3088_v29 = vld [vmem:[#allocation13 + $0x938] sm:$0xff] }
 0x4c8   :  { %7998 = vmatpush1.bf16.msra.mxu0 %v9462_v41  ;;  %7876 = vmatprep.subr.bf16.mxu1 %v9505_v18  ;;  %v9077_v41 = vcombine.high %v2800_v35, %v2824_v36  ;;  %v9083_v18 = vcombine.high %v2803_v37, %v2827_v38  ;;  %v3112_v30 = vld [vmem:[#allocation13 + $0x9f8] sm:$0xff] }
 0x4c9   :  { %7999 = vmatprep.subr.bf16.mxu0 %v9511_v42  ;;  %v2848_v42 = vld [vmem:[#allocation13 + $0x1b8] sm:$0xff] }
 0x4ca   :  { %v9124_v59 = vcombine.low %v2848_v42, %v2872_v20 }
 0x4cb   :  { %7877 = vmatpush1.bf16.msra.mxu1 %v9504_v50  ;;  %v9082_v50 = vcombine.low %v2803_v37, %v2827_v38  ;;  %v9322_v38 = vcombine.low %v3043_v19, %v3067_v53  ;;  %v3280_v19 = vld [vmem:[#allocation13 + $0xf38] sm:$0xff] }
 0x4cc   :  { %8000 = vmatpush1.bf16.msra.mxu0 %v9510_v47  ;;  %7878 = vmatprep.subr.bf16.mxu1 %v9553_v51  ;;  %v9125_v47 = vcombine.high %v2848_v42, %v2872_v20  ;;  %v2896_v51 = vld [vmem:[#allocation13 + $0x338] sm:$0xff] }
 0x4cd   :  { %8001 = vmatprep.subr.bf16.mxu0 %v9559_v55  ;;  %v2920_v55 = vld [vmem:[#allocation13 + $0x3f8] sm:$0xff] }
 0x4ce   :  { %v9172_v48 = vcombine.low %v2896_v51, %v2920_v55  ;;  %v3136_v42 = vld [vmem:[#allocation13 + $0xab8] sm:$0xff] }
 0x4cf   :  { %7879 = vmatpush1.bf16.msra.mxu1 %v9552_v60  ;;  %v9130_v60 = vcombine.low %v2851_v43, %v2875_v17  ;;  %v3160_v20 = vld [vmem:[#allocation13 + $0xb78] sm:$0xff] }
 0x4d0   :  { %8002 = vmatpush1.bf16.msra.mxu0 %v9558_v61  ;;  %7880 = vmatprep.subr.bf16.mxu1 %v9601_v62  ;;  %v9173_v61 = vcombine.high %v2896_v51, %v2920_v55  ;;  %v9179_v62 = vcombine.high %v2899_v57, %v2923_v58  ;;  %v3163_v51 = vld [vmem:[#allocation13 + $0xb90] sm:$0xff]  ;;  %v3304_v53 = vld [vmem:[#allocation13 + $0xff8] sm:$0xff] }
 0x4d1   :  { %8003 = vmatprep.subr.bf16.mxu0 %v9607_v63  ;;  %v2944_v63 = vld [vmem:[#allocation13 + $0x4b8] sm:$0xff] }
 0x4d2   :  { %v9220_v12 = vcombine.low %v2944_v63, %v2968_v0 }
 0x4d3   :  { %7881 = vmatpush1.bf16.msra.mxu1 %v9600_v4  ;;  %v9178_v4 = vcombine.low %v2899_v57, %v2923_v58 }
 0x4d4   :  { %8004 = vmatpush1.bf16.msra.mxu0 %v9606_v8  ;;  %7882 = vmatprep.subr.bf16.mxu1 %v9649_v6  ;;  %v9221_v8 = vcombine.high %v2944_v63, %v2968_v0  ;;  %v9227_v6 = vcombine.high %v2947_v1, %v2971_v2  ;;  %v9413_v63 = vcombine.high %v3136_v42, %v3160_v20 }
 0x4d5   :  { %8005 = vmatprep.subr.bf16.mxu0 %v9655_v7  ;;  %v2992_v7 = vld [vmem:[#allocation13 + $0x638] sm:$0xff] }
 0x4d7   :  { %7883 = vmatpush1.bf16.msra.mxu1 %v9648_v13  ;;  %v9226_v13 = vcombine.low %v2947_v1, %v2971_v2  ;;  %v3184_v1 = vld [vmem:[#allocation13 + $0xc38] sm:$0xff] }
 0x4d8   :  { %8006 = vmatpush1.bf16.msra.mxu0 %v9654_v14  ;;  %7884 = vmatprep.subr.bf16.mxu1 %v9697_v15  ;;  %v9269_v14 = vcombine.high %v2992_v7, %v3016_v9  ;;  %v9275_v15 = vcombine.high %v2995_v10, %v3019_v11  ;;  %v3208_v2 = vld [vmem:[#allocation13 + $0xcf8] sm:$0xff] }
 0x4d9   :  { %8007 = vmatprep.subr.bf16.mxu0 %v9703_v16  ;;  %v3040_v16 = vld [vmem:[#allocation13 + $0x7b8] sm:$0xff] }
 0x4da   :  { %v9317_v27 = vcombine.high %v3040_v16, %v3064_v22  ;;  %v9316_v35 = vcombine.low %v3040_v16, %v3064_v22 }
 0x4db   :  { %7885 = vmatpush1.bf16.msra.mxu1 %v9696_v49  ;;  %v9268_v49 = vcombine.low %v2992_v7, %v3016_v9  ;;  %v9461_v7 = vcombine.high %v3184_v1, %v3208_v2 }
 0x4dc   :  { %8008 = vmatpush1.bf16.msra.mxu0 %v9702_v44  ;;  %7886 = vmatprep.subr.bf16.mxu1 %v9745_v45  ;;  %v10976_v44 = vld [vmem:[#allocation15] sm:$0xff]  ;;  %v10979_v45 = vsub.s32 5, %v10879_v5 }
 0x4dd   :  { %8009 = vmatprep.subr.bf16.mxu0 %v9751_v46  ;;  %v9274_v46 = vcombine.low %v2995_v10, %v3019_v11  ;;  %v3580_v36 = vrot.slane %v10976_v44, %v10897_v25  ;;  %v3232_v10 = vld [vmem:[#allocation13 + $0xdb8] sm:$0xff] }
 0x4de   :  { %v3596_v37 = vrot.slane %v10976_v44, %v10979_v45  ;;  %v3256_v11 = vld [vmem:[#allocation13 + $0xe78] sm:$0xff] }
 0x4df   :  { %7887 = vmatpush1.bf16.msra.mxu1 %v9744_v31  ;;  %v3576_v31 = vrot.slane %v10976_v44, %v10894_v24  ;;  %v9509_v16 = vcombine.high %v3232_v10, %v3256_v11 }
 0x4e0   :  { %8010 = vmatpush1.bf16.msra.mxu0 %v9750_v32  ;;  %7888 = vmatprep.subr.bf16.mxu1 %v9793_v33  ;;  %v3592_v32 = vrot.slane %v10976_v44, %v10974_v26  ;;  %v3091_v33 = vld [vmem:[#allocation13 + $0x950] sm:$0xff] }
 0x4e1   :  { %8011 = vmatprep.subr.bf16.mxu0 %v9799_v34  ;;  %v3115_v34 = vld [vmem:[#allocation13 + $0xa10] sm:$0xff] }
 0x4e3   :  { %7889 = vmatpush1.bf16.msra.mxu1 %v9792_v39  ;;  %v9365_v39 = vcombine.high %v3088_v29, %v3112_v30 }
 0x4e4   :  { %8012 = vmatpush1.bf16.msra.mxu0 %v9798_v40  ;;  %7940 = vmatprep.subr.bf16.mxu1 %v9077_v41 }
 0x4e5   :  { %8063 = vmatprep.subr.bf16.mxu0 %v9083_v18  ;;  %v9371_v18 = vcombine.high %v3091_v33, %v3115_v34 }
 0x4e6   :  { %7891 = vmatmul.mubr.bf16.vlgmr.msra.gmra.mrb[16].mxu1 %v10945_v52 }
 0x4e7   :  { %8014 = vmatmul.mubr.bf16.vlgmr.msra.gmra.mrb[20].mxu0 %v10945_v52  ;;  %7941 = vmatpush1.bf16.msra.mxu1 %v9076_v54 }
 0x4e8   :  { %7972 = vmatprep.mubr.bf16.mxu1 %v10947_v3  ;;  %8064 = vmatpush1.bf16.msra.mxu0 %v9082_v50 }
 0x4e9   :  { %8095 = vmatprep.mubr.bf16.mxu0 %v10947_v3  ;;  %7942 = vmatprep.subr.bf16.mxu1 %v9125_v47  ;;  %v3139_v47 = vld [vmem:[#allocation13 + $0xad0] sm:$0xff] }
 0x4ea   :  { %8065 = vmatprep.subr.bf16.mxu0 %v9131_v56  ;;  %v9419_v0 = vcombine.high %v3139_v47, %v3163_v51 }
 0x4eb   :  { %7943 = vmatpush1.bf16.msra.mxu1 %v9124_v59  ;;  %v9364_v59 = vcombine.low %v3088_v29, %v3112_v30  ;;  %v9508_v29 = vcombine.low %v3232_v10, %v3256_v11  ;;  %v3523_v10 = vld [vmem:[#allocation13 + $0x16d0] sm:$0xff] }
 0x4ec   :  { %8066 = vmatpush1.bf16.msra.mxu0 %v9130_v60  ;;  %7944 = vmatprep.subr.bf16.mxu1 %v9173_v61  ;;  %v3547_v11 = vld [vmem:[#allocation13 + $0x1790] sm:$0xff] }
 0x4ed   :  { %8067 = vmatprep.subr.bf16.mxu0 %v9179_v62  ;;  %v9370_v62 = vcombine.low %v3091_v33, %v3115_v34 }
 0x4ef   :  { %7945 = vmatpush1.bf16.msra.mxu1 %v9172_v48  ;;  %v3187_v48 = vld [vmem:[#allocation13 + $0xc50] sm:$0xff] }
 0x4f0   :  { %8068 = vmatpush1.bf16.msra.mxu0 %v9178_v4  ;;  %7946 = vmatprep.subr.bf16.mxu1 %v9221_v8  ;;  %v3211_v4 = vld [vmem:[#allocation13 + $0xd10] sm:$0xff]  ;;  %v9412_v8 = vcombine.low %v3136_v42, %v3160_v20  ;;  %v3376_v42 = vld [vmem:[#allocation13 + $0x1238] sm:$0xff] }
 0x4f1   :  { %8069 = vmatprep.subr.bf16.mxu0 %v9227_v6  ;;  %v9418_v6 = vcombine.low %v3139_v47, %v3163_v51  ;;  %v9467_v9 = vcombine.high %v3187_v48, %v3211_v4  ;;  %v3400_v20 = vld [vmem:[#allocation13 + $0x12f8] sm:$0xff] }
 0x4f2   :  { %v9653_v47 = vcombine.high %v3376_v42, %v3400_v20 }
 0x4f3   :  { %7947 = vmatpush1.bf16.msra.mxu1 %v9220_v12  ;;  %v3235_v12 = vld [vmem:[#allocation13 + $0xdd0] sm:$0xff] }
 0x4f4   :  { %8070 = vmatpush1.bf16.msra.mxu0 %v9226_v13  ;;  %7948 = vmatprep.subr.bf16.mxu1 %v9269_v14  ;;  %v3259_v13 = vld [vmem:[#allocation13 + $0xe90] sm:$0xff]  ;;  %v9460_v14 = vcombine.low %v3184_v1, %v3208_v2 }
 0x4f5   :  { %8071 = vmatprep.subr.bf16.mxu0 %v9275_v15  ;;  %v9466_v15 = vcombine.low %v3187_v48, %v3211_v4  ;;  %v9515_v22 = vcombine.high %v3235_v12, %v3259_v13  ;;  %v3475_v1 = vld [vmem:[#allocation13 + $0x1550] sm:$0xff] }
 0x4f6   :  { %v3499_v2 = vld [vmem:[#allocation13 + $0x1610] sm:$0xff] }
 0x4f7   :  { %7949 = vmatpush1.bf16.msra.mxu1 %v9268_v49 }
 0x4f8   :  { %8072 = vmatpush1.bf16.msra.mxu0 %v9274_v46  ;;  %7950 = vmatprep.subr.bf16.mxu1 %v9317_v27  ;;  %v3283_v46 = vld [vmem:[#allocation13 + $0xf50] sm:$0xff] }
 0x4f9   :  { %v7687_v40 = vpop.f32.mrb[4].mxu1  ;;  %v7769_v41 = vpop.f32.mrb[8].mxu0  ;;  %8073 = vmatprep.subr.bf16.mxu0 %v9323_v28  ;;  %v3307_v27 = vld [vmem:[#allocation13 + $0x1010] sm:$0xff] }
 0x4fa   :  { %v7688_v54 = vadd.f32 %v7687_v40, %v3576_v31  ;;  %v7770_v43 = vadd.f32 %v7769_v41, %v3592_v32  ;;  %v7689_v17 = vpop.f32.mrb[5].mxu1  ;;  %v7771_v50 = vpop.f32.mrb[9].mxu0  ;;  %v9514_v31 = vcombine.low %v3235_v12, %v3259_v13  ;;  %v9557_v32 = vcombine.high %v3280_v19, %v3304_v53 }
 0x4fb   :  { %v7690_v55 = vadd.f32 %v7689_v17, %v3580_v36  ;;  %v7772_v56 = vadd.f32 %v7771_v50, %v3596_v37  ;;  %7951 = vmatpush1.bf16.msra.mxu1 %v9316_v35  ;;  %v7691_v57 = vpop.f32.mrb[6].mxu1  ;;  %v7773_v58 = vpop.f32.mrb[10].mxu0  ;;  %v9563_v34 = vcombine.high %v3283_v46, %v3307_v27  ;;  %v3328_v35 = vld [vmem:[#allocation13 + $0x10b8] sm:$0xff]  ;;  %v3331_v37 = vld [vmem:[#allocation13 + $0x10d0] sm:$0xff]  ;;  %v9562_v40 = vcombine.low %v3283_v46, %v3307_v27 }
 0x4fc   :  { %10366 = vtanh.f32 %v7688_v54  ;;  %8074 = vmatpush1.bf16.msra.mxu0 %v9322_v38  ;;  %v7692_v60 = vpop.f32.mrb[7].mxu1  ;;  %v7774_v61 = vpop.f32.mrb[11].mxu0  ;;  %7952 = vmatprep.subr.bf16.mxu1 %v9365_v39  ;;  %v3352_v36 = vld [vmem:[#allocation13 + $0x1178] sm:$0xff]  ;;  %v3355_v38 = vld [vmem:[#allocation13 + $0x1190] sm:$0xff]  ;;  %v9556_v39 = vcombine.low %v3280_v19, %v3304_v53  ;;  %v9754_v13 = vcombine.low %v3475_v1, %v3499_v2  ;;  %v2805_v19 = vld [vmem:[#allocation13 + $0x60] sm:$0xff]  ;;  %v9802_v46 = vcombine.low %v3523_v10, %v3547_v11 }
 0x4fd   :  { %10368 = vtanh.f32 %v7770_v43  ;;  %8075 = vmatprep.subr.bf16.mxu0 %v9371_v18  ;;  %v9605_v41 = vcombine.high %v3328_v35, %v3352_v36  ;;  %v9611_v18 = vcombine.high %v3331_v37, %v3355_v38  ;;  %v3379_v54 = vld [vmem:[#allocation13 + $0x1250] sm:$0xff]  ;;  %v9604_v17 = vcombine.low %v3328_v35, %v3352_v36  ;;  %v2829_v53 = vld [vmem:[#allocation13 + $0x120] sm:$0xff]  ;;  %v2898_v36 = vld [vmem:[#allocation13 + $0x348] sm:$0xff] }
 0x4fe   :  { %10370 = vtanh.f32 %v7690_v55  ;;  %v3403_v43 = vld [vmem:[#allocation13 + $0x1310] sm:$0xff]  ;;  %v9610_v50 = vcombine.low %v3331_v37, %v3355_v38  ;;  %v3424_v55 = vld [vmem:[#allocation13 + $0x13b8] sm:$0xff]  ;;  %v2922_v37 = vld [vmem:[#allocation13 + $0x408] sm:$0xff] }
 0x4ff   :  { %10372 = vtanh.f32 %v7772_v56  ;;  %7953 = vmatpush1.bf16.msra.mxu1 %v9364_v59  ;;  %v9659_v51 = vcombine.high %v3379_v54, %v3403_v43  ;;  %v3448_v56 = vld [vmem:[#allocation13 + $0x1478] sm:$0xff]  ;;  %v3427_v57 = vld [vmem:[#allocation13 + $0x13d0] sm:$0xff]  ;;  %v9652_v59 = vcombine.low %v3376_v42, %v3400_v20  ;;  %v9658_v60 = vcombine.low %v3379_v54, %v3403_v43  ;;  %v2946_v54 = vld [vmem:[#allocation13 + $0x4c8] sm:$0xff] }
 0x500   :  { %8076 = vmatpush1.bf16.msra.mxu0 %v9370_v62  ;;  %7954 = vmatprep.subr.bf16.mxu1 %v9413_v63  ;;  %v3451_v58 = vld [vmem:[#allocation13 + $0x1490] sm:$0xff]  ;;  %v9701_v61 = vcombine.high %v3424_v55, %v3448_v56  ;;  %v3472_v63 = vld [vmem:[#allocation13 + $0x1538] sm:$0xff]  ;;  %v9700_v48 = vcombine.low %v3424_v55, %v3448_v56  ;;  %v9177_v42 = vcombine.high %v2898_v36, %v2922_v37  ;;  %v2970_v43 = vld [vmem:[#allocation13 + $0x588] sm:$0xff] }
 0x501   :  { %8077 = vmatprep.subr.bf16.mxu0 %v9419_v0  ;;  %v9707_v62 = vcombine.high %v3427_v57, %v3451_v58  ;;  %v3496_v0 = vld [vmem:[#allocation13 + $0x15f8] sm:$0xff]  ;;  %v9706_v4 = vcombine.low %v3427_v57, %v3451_v58  ;;  %v9225_v55 = vcombine.high %v2946_v54, %v2970_v43  ;;  %v2994_v57 = vld [vmem:[#allocation13 + $0x648] sm:$0xff] }
 0x502   :  { %v9748_v12 = vcombine.low %v3472_v63, %v3496_v0  ;;  %v3018_v58 = vld [vmem:[#allocation13 + $0x708] sm:$0xff] }
 0x503   :  { %7955 = vmatpush1.bf16.msra.mxu1 %v9412_v8  ;;  %v9749_v8 = vcombine.high %v3472_v63, %v3496_v0  ;;  %v9273_v63 = vcombine.high %v2994_v57, %v3018_v58 }
 0x504   :  { %8078 = vmatpush1.bf16.msra.mxu0 %v9418_v6  ;;  %7956 = vmatprep.subr.bf16.mxu1 %v9461_v7  ;;  %v9755_v6 = vcombine.high %v3475_v1, %v3499_v2  ;;  %v3520_v7 = vld [vmem:[#allocation13 + $0x16b8] sm:$0xff]  ;;  %v3042_v1 = vld [vmem:[#allocation13 + $0x7c8] sm:$0xff] }
 0x505   :  { %8079 = vmatprep.subr.bf16.mxu0 %v9467_v9  ;;  %v3544_v9 = vld [vmem:[#allocation13 + $0x1778] sm:$0xff]  ;;  %v3066_v2 = vld [vmem:[#allocation13 + $0x888] sm:$0xff] }
 0x506   :  { %v10367_v49 = vpop.eup %10366 }
 0x507   :  { %v10369_v28 = vpop.eup %10368  ;;  %8685 = vst [vmem:[%s11270_s9] sm:$0xff] %v10367_v49  ;;  %7957 = vmatpush1.bf16.msra.mxu1 %v9460_v14  ;;  %v9797_v14 = vcombine.high %v3520_v7, %v3544_v9  ;;  %v9796_v49 = vcombine.low %v3520_v7, %v3544_v9  ;;  %v9321_v9 = vcombine.high %v3042_v1, %v3066_v2 }
 0x508   :  { %v10371_v30 = vpop.eup %10370  ;;  %8689 = vst [vmem:[%s11270_s9 + $0x20] sm:$0xff] %v10369_v28  ;;  %8080 = vmatpush1.bf16.msra.mxu0 %v9466_v15  ;;  %7958 = vmatprep.subr.bf16.mxu1 %v9509_v16  ;;  %v9803_v15 = vcombine.high %v3523_v10, %v3547_v11  ;;  %v2802_v16 = vld [vmem:[#allocation13 + $0x48] sm:$0xff]  ;;  %v9087_v28 = vcombine.high %v2805_v19, %v2829_v53 }
 0x509   :  { %v10373_v33 = vpop.eup %10372  ;;  %8686 = vst [vmem:[%s11270_s9 + $0x8] sm:$0xff] %v10371_v30  ;;  %8081 = vmatprep.subr.bf16.mxu0 %v9515_v22  ;;  %v2826_v22 = vld [vmem:[#allocation13 + $0x108] sm:$0xff] }
 0x50a   :  { %8690 = vst [vmem:[%s11270_s9 + $0x28] sm:$0xff] %v10373_v33  ;;  %v9081_v27 = vcombine.high %v2802_v16, %v2826_v22  ;;  %v2874_v30 = vld [vmem:[#allocation13 + $0x288] sm:$0xff]  ;;  %v2877_v33 = vld [vmem:[#allocation13 + $0x2a0] sm:$0xff] }
 0x50b   :  { %7959 = vmatpush1.bf16.msra.mxu1 %v9508_v29  ;;  %v2850_v29 = vld [vmem:[#allocation13 + $0x1c8] sm:$0xff] }
 0x50c   :  { %8082 = vmatpush1.bf16.msra.mxu0 %v9514_v31  ;;  %7960 = vmatprep.subr.bf16.mxu1 %v9557_v32  ;;  %v9080_v31 = vcombine.low %v2802_v16, %v2826_v22  ;;  %v2853_v32 = vld [vmem:[#allocation13 + $0x1e0] sm:$0xff]  ;;  %v9129_v35 = vcombine.high %v2850_v29, %v2874_v30  ;;  %v3090_v11 = vld [vmem:[#allocation13 + $0x948] sm:$0xff]  ;;  %v3588_v22 = vrot.slane %v10976_v44, %v10891_v23 }
 0x50d   :  { %8083 = vmatprep.subr.bf16.mxu0 %v9563_v34  ;;  %v9086_v34 = vcombine.low %v2805_v19, %v2829_v53  ;;  %v9135_v38 = vcombine.high %v2853_v32, %v2877_v33  ;;  %v3117_v16 = vld [vmem:[#allocation13 + $0xa20] sm:$0xff]  ;;  %v9320_v53 = vcombine.low %v3042_v1, %v3066_v2 }
 0x50f   :  { %7961 = vmatpush1.bf16.msra.mxu1 %v9556_v39  ;;  %v2901_v39 = vld [vmem:[#allocation13 + $0x360] sm:$0xff] }
 0x510   :  { %8084 = vmatpush1.bf16.msra.mxu0 %v9562_v40  ;;  %7962 = vmatprep.subr.bf16.mxu1 %v9605_v41  ;;  %v2925_v40 = vld [vmem:[#allocation13 + $0x420] sm:$0xff]  ;;  %v9128_v41 = vcombine.low %v2850_v29, %v2874_v30  ;;  %v3138_v30 = vld [vmem:[#allocation13 + $0xac8] sm:$0xff] }
 0x511   :  { %8085 = vmatprep.subr.bf16.mxu0 %v9611_v18  ;;  %v9134_v18 = vcombine.low %v2853_v32, %v2877_v33  ;;  %v9183_v20 = vcombine.high %v2901_v39, %v2925_v40 }
 0x513   :  { %7963 = vmatpush1.bf16.msra.mxu1 %v9604_v17  ;;  %v2949_v17 = vld [vmem:[#allocation13 + $0x4e0] sm:$0xff] }
 0x514   :  { %8086 = vmatpush1.bf16.msra.mxu0 %v9610_v50  ;;  %7964 = vmatprep.subr.bf16.mxu1 %v9653_v47  ;;  %v2973_v50 = vld [vmem:[#allocation13 + $0x5a0] sm:$0xff]  ;;  %v9176_v47 = vcombine.low %v2898_v36, %v2922_v37 }
 0x515   :  { %8087 = vmatprep.subr.bf16.mxu0 %v9659_v51  ;;  %v9182_v51 = vcombine.low %v2901_v39, %v2925_v40  ;;  %v9231_v56 = vcombine.high %v2949_v17, %v2973_v50  ;;  %v3141_v36 = vld [vmem:[#allocation13 + $0xae0] sm:$0xff] }
 0x516   :  { %v3165_v37 = vld [vmem:[#allocation13 + $0xba0] sm:$0xff] }
 0x517   :  { %7965 = vmatpush1.bf16.msra.mxu1 %v9652_v59  ;;  %v2997_v59 = vld [vmem:[#allocation13 + $0x660] sm:$0xff] }
 0x518   :  { %8088 = vmatpush1.bf16.msra.mxu0 %v9658_v60  ;;  %7966 = vmatprep.subr.bf16.mxu1 %v9701_v61  ;;  %v3021_v60 = vld [vmem:[#allocation13 + $0x720] sm:$0xff]  ;;  %v9224_v61 = vcombine.low %v2946_v54, %v2970_v43 }
 0x519   :  { %8089 = vmatprep.subr.bf16.mxu0 %v9707_v62  ;;  %v9230_v62 = vcombine.low %v2949_v17, %v2973_v50  ;;  %v9279_v0 = vcombine.high %v2997_v59, %v3021_v60  ;;  %v9278_v7 = vcombine.low %v2997_v59, %v3021_v60  ;;  %v9423_v17 = vcombine.high %v3141_v36, %v3165_v37  ;;  %v3186_v50 = vld [vmem:[#allocation13 + $0xc48] sm:$0xff] }
 0x51a   :  { %v3234_v60 = vld [vmem:[#allocation13 + $0xdc8] sm:$0xff] }
 0x51b   :  { %7967 = vmatpush1.bf16.msra.mxu1 %v9700_v48  ;;  %v3045_v48 = vld [vmem:[#allocation13 + $0x7e0] sm:$0xff] }
 0x51c   :  { %8090 = vmatpush1.bf16.msra.mxu0 %v9706_v4  ;;  %7968 = vmatprep.subr.bf16.mxu1 %v9749_v8  ;;  %v3069_v4 = vld [vmem:[#allocation13 + $0x8a0] sm:$0xff]  ;;  %v9272_v8 = vcombine.low %v2994_v57, %v3018_v58  ;;  %v9422_v57 = vcombine.low %v3141_v36, %v3165_v37 }
 0x51d   :  { %8091 = vmatprep.subr.bf16.mxu0 %v9755_v6  ;;  %v11005_v6 = vld [vmem:[#allocation15 + $0x8] sm:$0xff]  ;;  %v9327_v10 = vcombine.high %v3045_v48, %v3069_v4 }
 0x51e   :  { %v3612_v19 = vrot.slane %v11005_v6, %v10897_v25 }
 0x51f   :  { %7969 = vmatpush1.bf16.msra.mxu1 %v9748_v12  ;;  %v3114_v12 = vld [vmem:[#allocation13 + $0xa08] sm:$0xff] }
 0x520   :  { %8092 = vmatpush1.bf16.msra.mxu0 %v9754_v13  ;;  %7970 = vmatprep.subr.bf16.mxu1 %v9797_v14  ;;  %v3584_v13 = vrot.slane %v10976_v44, %v10887_v21  ;;  %v3608_v14 = vrot.slane %v11005_v6, %v10894_v24 }
 0x521   :  { %8093 = vmatprep.subr.bf16.mxu0 %v9803_v15  ;;  %v3093_v15 = vld [vmem:[#allocation13 + $0x960] sm:$0xff] }
 0x522   :  { %v9375_v29 = vcombine.high %v3093_v15, %v3117_v16  ;;  %v9374_v54 = vcombine.low %v3093_v15, %v3117_v16 }
 0x523   :  { %7971 = vmatpush1.bf16.msra.mxu1 %v9796_v49  ;;  %v9326_v49 = vcombine.low %v3045_v48, %v3069_v4  ;;  %v3282_v4 = vld [vmem:[#allocation13 + $0xf48] sm:$0xff] }
 0x524   :  { %8094 = vmatpush1.bf16.msra.mxu0 %v9802_v46  ;;  %8022 = vmatprep.subr.bf16.mxu1 %v9081_v27  ;;  %v9369_v46 = vcombine.high %v3090_v11, %v3114_v12 }
 0x525   :  { %8145 = vmatprep.subr.bf16.mxu0 %v9087_v28 }
 0x526   :  { %7973 = vmatmul.mubr.bf16.vlgmr.msra.gmra.mrb[20].mxu1 %v10945_v52 }
 0x527   :  { %8096 = vmatmul.mubr.bf16.vlgmr.msra.gmra.mrb[24].mxu0 %v10945_v52  ;;  %8023 = vmatpush1.bf16.msra.mxu1 %v9080_v31  ;;  %v3162_v31 = vld [vmem:[#allocation13 + $0xb88] sm:$0xff] }
 0x528   :  { %8054 = vmatprep.mubr.bf16.mxu1 %v10947_v3  ;;  %8146 = vmatpush1.bf16.msra.mxu0 %v9086_v34  ;;  %v9417_v43 = vcombine.high %v3138_v30, %v3162_v31 }
 0x529   :  { %8177 = vmatprep.mubr.bf16.mxu0 %v10947_v3  ;;  %8024 = vmatprep.subr.bf16.mxu1 %v9129_v35 }
 0x52a   :  { %8147 = vmatprep.subr.bf16.mxu0 %v9135_v38 }
 0x52b   :  { %8025 = vmatpush1.bf16.msra.mxu1 %v9128_v41 }
 0x52c   :  { %8148 = vmatpush1.bf16.msra.mxu0 %v9134_v18  ;;  %8026 = vmatprep.subr.bf16.mxu1 %v9177_v42  ;;  %v9368_v18 = vcombine.low %v3090_v11, %v3114_v12 }
 0x52d   :  { %8149 = vmatprep.subr.bf16.mxu0 %v9183_v20 }
 0x52f   :  { %8027 = vmatpush1.bf16.msra.mxu1 %v9176_v47  ;;  %v3210_v47 = vld [vmem:[#allocation13 + $0xd08] sm:$0xff] }
 0x530   :  { %8150 = vmatpush1.bf16.msra.mxu0 %v9182_v51  ;;  %8028 = vmatprep.subr.bf16.mxu1 %v9225_v55  ;;  %v3189_v51 = vld [vmem:[#allocation13 + $0xc60] sm:$0xff]  ;;  %v9465_v58 = vcombine.high %v3186_v50, %v3210_v47 }
 0x531   :  { %8151 = vmatprep.subr.bf16.mxu0 %v9231_v56  ;;  %v3213_v55 = vld [vmem:[#allocation13 + $0xd20] sm:$0xff]  ;;  %v9416_v56 = vcombine.low %v3138_v30, %v3162_v31  ;;  %v3378_v31 = vld [vmem:[#allocation13 + $0x1248] sm:$0xff] }
 0x532   :  { %v9471_v59 = vcombine.high %v3189_v51, %v3213_v55  ;;  %v9470_v1 = vcombine.low %v3189_v51, %v3213_v55  ;;  %v3501_v51 = vld [vmem:[#allocation13 + $0x1620] sm:$0xff] }
 0x533   :  { %8029 = vmatpush1.bf16.msra.mxu1 %v9224_v61  ;;  %v3258_v61 = vld [vmem:[#allocation13 + $0xe88] sm:$0xff] }
 0x534   :  { %8152 = vmatpush1.bf16.msra.mxu0 %v9230_v62  ;;  %8030 = vmatprep.subr.bf16.mxu1 %v9273_v63  ;;  %v3237_v62 = vld [vmem:[#allocation13 + $0xde0] sm:$0xff]  ;;  %v9513_v2 = vcombine.high %v3234_v60, %v3258_v61  ;;  %v9512_v12 = vcombine.low %v3234_v60, %v3258_v61  ;;  %v3546_v60 = vld [vmem:[#allocation13 + $0x1788] sm:$0xff] }
 0x535   :  { %8153 = vmatprep.subr.bf16.mxu0 %v9279_v0  ;;  %v3261_v63 = vld [vmem:[#allocation13 + $0xea0] sm:$0xff]  ;;  %v9464_v0 = vcombine.low %v3186_v50, %v3210_v47  ;;  %v3498_v50 = vld [vmem:[#allocation13 + $0x1608] sm:$0xff] }
 0x536   :  { %v9519_v48 = vcombine.high %v3237_v62, %v3261_v63  ;;  %v3477_v47 = vld [vmem:[#allocation13 + $0x1560] sm:$0xff] }
 0x537   :  { %8031 = vmatpush1.bf16.msra.mxu1 %v9272_v8  ;;  %v3306_v8 = vld [vmem:[#allocation13 + $0x1008] sm:$0xff]  ;;  %v3525_v61 = vld [vmem:[#allocation13 + $0x16e0] sm:$0xff] }
 0x538   :  { %8154 = vmatpush1.bf16.msra.mxu0 %v9278_v7  ;;  %8032 = vmatprep.subr.bf16.mxu1 %v9321_v9  ;;  %v3285_v9 = vld [vmem:[#allocation13 + $0xf60] sm:$0xff]  ;;  %v9561_v15 = vcombine.high %v3282_v4, %v3306_v8 }
 0x539   :  { %v7728_v27 = vpop.f32.mrb[8].mxu1  ;;  %v7851_v28 = vpop.f32.mrb[12].mxu0  ;;  %8155 = vmatprep.subr.bf16.mxu0 %v9327_v10  ;;  %v3309_v10 = vld [vmem:[#allocation13 + $0x1020] sm:$0xff] }
 0x53a   :  { %v7729_v32 = vadd.f32 %v7728_v27, %v3584_v13  ;;  %v7852_v33 = vadd.f32 %v7851_v28, %v3608_v14  ;;  %v7730_v34 = vpop.f32.mrb[9].mxu1  ;;  %v7853_v35 = vpop.f32.mrb[13].mxu0  ;;  %v9518_v14 = vcombine.low %v3237_v62, %v3261_v63  ;;  %v9560_v27 = vcombine.low %v3282_v4, %v3306_v8  ;;  %v3549_v62 = vld [vmem:[#allocation13 + $0x17a0] sm:$0xff]  ;;  %v2828_v4 = vld [vmem:[#allocation13 + $0x118] sm:$0xff]  ;;  %v2807_v8 = vld [vmem:[#allocation13 + $0x70] sm:$0xff] }
 0x53b   :  { %v7731_v38 = vadd.f32 %v7730_v34, %v3588_v22  ;;  %v7854_v39 = vadd.f32 %v7853_v35, %v3612_v19  ;;  %v7732_v40 = vpop.f32.mrb[10].mxu1  ;;  %v7855_v41 = vpop.f32.mrb[14].mxu0  ;;  %8033 = vmatpush1.bf16.msra.mxu1 %v9320_v53  ;;  %v9567_v22 = vcombine.high %v3285_v9, %v3309_v10  ;;  %v3330_v19 = vld [vmem:[#allocation13 + $0x10c8] sm:$0xff]  ;;  %v9566_v28 = vcombine.low %v3285_v9, %v3309_v10  ;;  %v3405_v34 = vld [vmem:[#allocation13 + $0x1320] sm:$0xff] }
 0x53c   :  { %10374 = vtanh.f32 %v7729_v32  ;;  %8156 = vmatpush1.bf16.msra.mxu0 %v9326_v49  ;;  %v7733_v42 = vpop.f32.mrb[11].mxu1  ;;  %v7856_v20 = vpop.f32.mrb[15].mxu0  ;;  %8034 = vmatprep.subr.bf16.mxu1 %v9369_v46  ;;  %v3354_v53 = vld [vmem:[#allocation13 + $0x1188] sm:$0xff]  ;;  %v3333_v49 = vld [vmem:[#allocation13 + $0x10e0] sm:$0xff]  ;;  %v9806_v10 = vcombine.low %v3525_v61, %v3549_v62 }
 0x53d   :  { %10376 = vtanh.f32 %v7852_v33  ;;  %8157 = vmatprep.subr.bf16.mxu0 %v9375_v29  ;;  %v3357_v46 = vld [vmem:[#allocation13 + $0x11a0] sm:$0xff]  ;;  %v9609_v29 = vcombine.high %v3330_v19, %v3354_v53  ;;  %v3402_v32 = vld [vmem:[#allocation13 + $0x1308] sm:$0xff]  ;;  %v9608_v35 = vcombine.low %v3330_v19, %v3354_v53 }
 0x53e   :  { %10378 = vtanh.f32 %v7731_v38  ;;  %v9615_v30 = vcombine.high %v3333_v49, %v3357_v46  ;;  %v3381_v33 = vld [vmem:[#allocation13 + $0x1260] sm:$0xff]  ;;  %v9614_v36 = vcombine.low %v3333_v49, %v3357_v46  ;;  %v9657_v37 = vcombine.high %v3378_v31, %v3402_v32  ;;  %v3450_v40 = vld [vmem:[#allocation13 + $0x1488] sm:$0xff]  ;;  %v2900_v49 = vld [vmem:[#allocation13 + $0x358] sm:$0xff] }
 0x53f   :  { %10380 = vtanh.f32 %v7854_v39  ;;  %8035 = vmatpush1.bf16.msra.mxu1 %v9368_v18  ;;  %v9663_v38 = vcombine.high %v3381_v33, %v3405_v34  ;;  %v3426_v39 = vld [vmem:[#allocation13 + $0x13c8] sm:$0xff]  ;;  %v3429_v41 = vld [vmem:[#allocation13 + $0x13e0] sm:$0xff]  ;;  %v9656_v42 = vcombine.low %v3378_v31, %v3402_v32  ;;  %v9662_v20 = vcombine.low %v3381_v33, %v3405_v34  ;;  %v2924_v46 = vld [vmem:[#allocation13 + $0x418] sm:$0xff] }
 0x540   :  { %8158 = vmatpush1.bf16.msra.mxu0 %v9374_v54  ;;  %8036 = vmatprep.subr.bf16.mxu1 %v9417_v43  ;;  %v3453_v18 = vld [vmem:[#allocation13 + $0x14a0] sm:$0xff]  ;;  %v9705_v54 = vcombine.high %v3426_v39, %v3450_v40  ;;  %v9704_v55 = vcombine.low %v3426_v39, %v3450_v40  ;;  %v9181_v32 = vcombine.high %v2900_v49, %v2924_v46  ;;  %v2948_v34 = vld [vmem:[#allocation13 + $0x4d8] sm:$0xff] }
 0x541   :  { %8159 = vmatprep.subr.bf16.mxu0 %v9423_v17  ;;  %v9711_v43 = vcombine.high %v3429_v41, %v3453_v18  ;;  %v3474_v17 = vld [vmem:[#allocation13 + $0x1548] sm:$0xff] }
 0x542   :  { %v9752_v63 = vcombine.low %v3474_v17, %v3498_v50 }
 0x543   :  { %8037 = vmatpush1.bf16.msra.mxu1 %v9416_v56  ;;  %v9710_v56 = vcombine.low %v3429_v41, %v3453_v18  ;;  %v2996_v18 = vld [vmem:[#allocation13 + $0x658] sm:$0xff] }
 0x544   :  { %8160 = vmatpush1.bf16.msra.mxu0 %v9422_v57  ;;  %8038 = vmatprep.subr.bf16.mxu1 %v9465_v58  ;;  %v9753_v57 = vcombine.high %v3474_v17, %v3498_v50  ;;  %v9759_v58 = vcombine.high %v3477_v47, %v3501_v51 }
 0x545   :  { %8161 = vmatprep.subr.bf16.mxu0 %v9471_v59  ;;  %v3522_v59 = vld [vmem:[#allocation13 + $0x16c8] sm:$0xff] }
 0x546   :  { %v10375_v7 = vpop.eup %10374  ;;  %v9800_v9 = vcombine.low %v3522_v59, %v3546_v60 }
 0x547   :  { %v10377_v11 = vpop.eup %10376  ;;  %8687 = vst [vmem:[%s11270_s9 + $0x10] sm:$0xff] %v10375_v7  ;;  %8039 = vmatpush1.bf16.msra.mxu1 %v9464_v0  ;;  %v9758_v0 = vcombine.low %v3477_v47, %v3501_v51  ;;  %v2831_v7 = vld [vmem:[#allocation13 + $0x130] sm:$0xff]  ;;  %v3044_v51 = vld [vmem:[#allocation13 + $0x7d8] sm:$0xff] }
 0x548   :  { %v10379_v13 = vpop.eup %10378  ;;  %8693 = vst [vmem:[%s11270_s9 + $0x40] sm:$0xff] %v10377_v11  ;;  %8162 = vmatpush1.bf16.msra.mxu0 %v9470_v1  ;;  %8040 = vmatprep.subr.bf16.mxu1 %v9513_v2  ;;  %v9801_v1 = vcombine.high %v3522_v59, %v3546_v60  ;;  %v9807_v2 = vcombine.high %v3525_v61, %v3549_v62  ;;  %v11035_v60 = vsub.s32 7, %v10879_v5 }
 0x549   :  { %v10381_v16 = vpop.eup %10380  ;;  %8688 = vst [vmem:[%s11270_s9 + $0x18] sm:$0xff] %v10379_v13  ;;  %8163 = vmatprep.subr.bf16.mxu0 %v9519_v48  ;;  %v2804_v48 = vld [vmem:[#allocation13 + $0x58] sm:$0xff]  ;;  %v9090_v19 = vcombine.low %v2807_v8, %v2831_v7 }
 0x54a   :  { %8694 = vst [vmem:[%s11270_s9 + $0x48] sm:$0xff] %v10381_v16  ;;  %v9085_v11 = vcombine.high %v2804_v48, %v2828_v4  ;;  %v2852_v13 = vld [vmem:[#allocation13 + $0x1d8] sm:$0xff]  ;;  %v2855_v16 = vld [vmem:[#allocation13 + $0x1f0] sm:$0xff] }
 0x54b   :  { %8041 = vmatpush1.bf16.msra.mxu1 %v9512_v12  ;;  %v9091_v12 = vcombine.high %v2807_v8, %v2831_v7  ;;  %v3624_v8 = vrot.slane %v11005_v6, %v10974_v26 }
 0x54c   :  { %8164 = vmatpush1.bf16.msra.mxu0 %v9518_v14  ;;  %8042 = vmatprep.subr.bf16.mxu1 %v9561_v15  ;;  %v2876_v14 = vld [vmem:[#allocation13 + $0x298] sm:$0xff]  ;;  %v9084_v15 = vcombine.low %v2804_v48, %v2828_v4  ;;  %v3095_v48 = vld [vmem:[#allocation13 + $0x970] sm:$0xff] }
 0x54d   :  { %8165 = vmatprep.subr.bf16.mxu0 %v9567_v22  ;;  %v2879_v22 = vld [vmem:[#allocation13 + $0x2b0] sm:$0xff]  ;;  %v9133_v53 = vcombine.high %v2852_v13, %v2876_v14 }
 0x54e   :  { %v9138_v31 = vcombine.low %v2855_v16, %v2879_v22  ;;  %v3119_v4 = vld [vmem:[#allocation13 + $0xa30] sm:$0xff] }
 0x54f   :  { %8043 = vmatpush1.bf16.msra.mxu1 %v9560_v27  ;;  %v9139_v27 = vcombine.high %v2855_v16, %v2879_v22 }
 0x550   :  { %8166 = vmatpush1.bf16.msra.mxu0 %v9566_v28  ;;  %8044 = vmatprep.subr.bf16.mxu1 %v9609_v29  ;;  %v2903_v28 = vld [vmem:[#allocation13 + $0x370] sm:$0xff] }
 0x551   :  { %8167 = vmatprep.subr.bf16.mxu0 %v9615_v30  ;;  %v2927_v29 = vld [vmem:[#allocation13 + $0x430] sm:$0xff]  ;;  %v9132_v30 = vcombine.low %v2852_v13, %v2876_v14  ;;  %v9379_v13 = vcombine.high %v3095_v48, %v3119_v4  ;;  %v3140_v14 = vld [vmem:[#allocation13 + $0xad8] sm:$0xff] }
 0x552   :  { %v9187_v33 = vcombine.high %v2903_v28, %v2927_v29  ;;  %v9186_v39 = vcombine.low %v2903_v28, %v2927_v29 }
 0x553   :  { %8045 = vmatpush1.bf16.msra.mxu1 %v9608_v35  ;;  %v2972_v35 = vld [vmem:[#allocation13 + $0x598] sm:$0xff] }
 0x554   :  { %8168 = vmatpush1.bf16.msra.mxu0 %v9614_v36  ;;  %8046 = vmatprep.subr.bf16.mxu1 %v9657_v37  ;;  %v2951_v36 = vld [vmem:[#allocation13 + $0x4f0] sm:$0xff]  ;;  %v9229_v40 = vcombine.high %v2948_v34, %v2972_v35 }
 0x555   :  { %8169 = vmatprep.subr.bf16.mxu0 %v9663_v38  ;;  %v2975_v37 = vld [vmem:[#allocation13 + $0x5b0] sm:$0xff]  ;;  %v9180_v38 = vcombine.low %v2900_v49, %v2924_v46 }
 0x556   :  { %v9235_v41 = vcombine.high %v2951_v36, %v2975_v37  ;;  %v9234_v17 = vcombine.low %v2951_v36, %v2975_v37  ;;  %v3167_v49 = vld [vmem:[#allocation13 + $0xbb0] sm:$0xff]  ;;  %v3188_v37 = vld [vmem:[#allocation13 + $0xc58] sm:$0xff] }
 0x557   :  { %8047 = vmatpush1.bf16.msra.mxu1 %v9656_v42  ;;  %v3020_v42 = vld [vmem:[#allocation13 + $0x718] sm:$0xff] }
 0x558   :  { %8170 = vmatpush1.bf16.msra.mxu0 %v9662_v20  ;;  %8048 = vmatprep.subr.bf16.mxu1 %v9705_v54  ;;  %v2999_v20 = vld [vmem:[#allocation13 + $0x670] sm:$0xff]  ;;  %v9277_v50 = vcombine.high %v2996_v18, %v3020_v42  ;;  %v9276_v59 = vcombine.low %v2996_v18, %v3020_v42 }
 0x559   :  { %8171 = vmatprep.subr.bf16.mxu0 %v9711_v43  ;;  %v3023_v54 = vld [vmem:[#allocation13 + $0x730] sm:$0xff]  ;;  %v9228_v43 = vcombine.low %v2948_v34, %v2972_v35 }
 0x55a   :  { %v9283_v47 = vcombine.high %v2999_v20, %v3023_v54  ;;  %v9282_v61 = vcombine.low %v2999_v20, %v3023_v54  ;;  %v3236_v54 = vld [vmem:[#allocation13 + $0xdd8] sm:$0xff] }
 0x55b   :  { %8049 = vmatpush1.bf16.msra.mxu1 %v9704_v55  ;;  %v3068_v55 = vld [vmem:[#allocation13 + $0x898] sm:$0xff] }
 0x55c   :  { %8172 = vmatpush1.bf16.msra.mxu0 %v9710_v56  ;;  %8050 = vmatprep.subr.bf16.mxu1 %v9753_v57  ;;  %v11032_v56 = vsub.s32 6, %v10879_v5  ;;  %v3047_v57 = vld [vmem:[#allocation13 + $0x7f0] sm:$0xff]  ;;  %v9325_v62 = vcombine.high %v3044_v51, %v3068_v55  ;;  %v3604_v5 = vrot.slane %v10976_v44, %v11035_v60  ;;  %v9324_v7 = vcombine.low %v3044_v51, %v3068_v55 }
 0x55d   :  { %8173 = vmatprep.subr.bf16.mxu0 %v9759_v58  ;;  %v3071_v58 = vld [vmem:[#allocation13 + $0x8b0] sm:$0xff] }
 0x55f   :  { %8051 = vmatpush1.bf16.msra.mxu1 %v9752_v63  ;;  %v9331_v63 = vcombine.high %v3047_v57, %v3071_v58 }
 0x560   :  { %8174 = vmatpush1.bf16.msra.mxu0 %v9758_v0  ;;  %8052 = vmatprep.subr.bf16.mxu1 %v9801_v1  ;;  %v3092_v0 = vld [vmem:[#allocation13 + $0x958] sm:$0xff] }
 0x561   :  { %8175 = vmatprep.subr.bf16.mxu0 %v9807_v2  ;;  %v3116_v1 = vld [vmem:[#allocation13 + $0xa18] sm:$0xff]  ;;  %v3600_v2 = vrot.slane %v10976_v44, %v11032_v56 }
 0x562   :  { %v9372_v29 = vcombine.low %v3092_v0, %v3116_v1 }
 0x563   :  { %8053 = vmatpush1.bf16.msra.mxu1 %v9800_v9  ;;  %v3628_v9 = vrot.slane %v11005_v6, %v10979_v45 }
 0x564   :  { %8176 = vmatpush1.bf16.msra.mxu0 %v9806_v10  ;;  %8104 = vmatprep.subr.bf16.mxu1 %v9085_v11  ;;  %v9330_v10 = vcombine.low %v3047_v57, %v3071_v58  ;;  %v9373_v11 = vcombine.high %v3092_v0, %v3116_v1  ;;  %v3284_v58 = vld [vmem:[#allocation13 + $0xf58] sm:$0xff] }
 0x565   :  { %8227 = vmatprep.subr.bf16.mxu0 %v9091_v12 }
 0x566   :  { %8055 = vmatmul.mubr.bf16.vlgmr.msra.gmra.mrb[24].mxu1 %v10945_v52 }
 0x567   :  { %8178 = vmatmul.mubr.bf16.vlgmr.msra.gmra.mrb[28].mxu0 %v10945_v52  ;;  %8105 = vmatpush1.bf16.msra.mxu1 %v9084_v15  ;;  %v3164_v15 = vld [vmem:[#allocation13 + $0xb98] sm:$0xff] }
 0x568   :  { %8136 = vmatprep.mubr.bf16.mxu1 %v10947_v3  ;;  %8228 = vmatpush1.bf16.msra.mxu0 %v9090_v19  ;;  %v9421_v34 = vcombine.high %v3140_v14, %v3164_v15 }
 0x569   :  { %8259 = vmatprep.mubr.bf16.mxu0 %v10947_v3  ;;  %8106 = vmatprep.subr.bf16.mxu1 %v9133_v53  ;;  %v3143_v53 = vld [vmem:[#allocation13 + $0xaf0] sm:$0xff] }
 0x56a   :  { %8229 = vmatprep.subr.bf16.mxu0 %v9139_v27  ;;  %v9427_v36 = vcombine.high %v3143_v53, %v3167_v49  ;;  %v9426_v18 = vcombine.low %v3143_v53, %v3167_v49  ;;  %v3407_v53 = vld [vmem:[#allocation13 + $0x1330] sm:$0xff] }
 0x56b   :  { %8107 = vmatpush1.bf16.msra.mxu1 %v9132_v30 }
 0x56c   :  { %8230 = vmatpush1.bf16.msra.mxu0 %v9138_v31  ;;  %8108 = vmatprep.subr.bf16.mxu1 %v9181_v32 }
 0x56d   :  { %8231 = vmatprep.subr.bf16.mxu0 %v9187_v33  ;;  %v9378_v33 = vcombine.low %v3095_v48, %v3119_v4 }
 0x56f   :  { %8109 = vmatpush1.bf16.msra.mxu1 %v9180_v38  ;;  %v3212_v38 = vld [vmem:[#allocation13 + $0xd18] sm:$0xff] }
 0x570   :  { %8232 = vmatpush1.bf16.msra.mxu0 %v9186_v39  ;;  %8110 = vmatprep.subr.bf16.mxu1 %v9229_v40  ;;  %v3191_v39 = vld [vmem:[#allocation13 + $0xc70] sm:$0xff]  ;;  %v9469_v42 = vcombine.high %v3188_v37, %v3212_v38 }
 0x571   :  { %8233 = vmatprep.subr.bf16.mxu0 %v9235_v41  ;;  %v3215_v40 = vld [vmem:[#allocation13 + $0xd30] sm:$0xff]  ;;  %v9420_v41 = vcombine.low %v3140_v14, %v3164_v15 }
 0x572   :  { %v9475_v20 = vcombine.high %v3191_v39, %v3215_v40  ;;  %v9474_v51 = vcombine.low %v3191_v39, %v3215_v40  ;;  %v3503_v39 = vld [vmem:[#allocation13 + $0x1630] sm:$0xff] }
 0x573   :  { %8111 = vmatpush1.bf16.msra.mxu1 %v9228_v43  ;;  %v3260_v43 = vld [vmem:[#allocation13 + $0xe98] sm:$0xff] }
 0x574   :  { %8234 = vmatpush1.bf16.msra.mxu0 %v9234_v17  ;;  %8112 = vmatprep.subr.bf16.mxu1 %v9277_v50  ;;  %v3239_v17 = vld [vmem:[#allocation13 + $0xdf0] sm:$0xff]  ;;  %v9517_v55 = vcombine.high %v3236_v54, %v3260_v43  ;;  %v9516_v1 = vcombine.low %v3236_v54, %v3260_v43  ;;  %v3548_v54 = vld [vmem:[#allocation13 + $0x1798] sm:$0xff] }
 0x575   :  { %8235 = vmatprep.subr.bf16.mxu0 %v9283_v47  ;;  %v3263_v50 = vld [vmem:[#allocation13 + $0xeb0] sm:$0xff]  ;;  %v9468_v47 = vcombine.low %v3188_v37, %v3212_v38  ;;  %v3500_v37 = vld [vmem:[#allocation13 + $0x1618] sm:$0xff] }
 0x576   :  { %v9523_v57 = vcombine.high %v3239_v17, %v3263_v50  ;;  %v9522_v48 = vcombine.low %v3239_v17, %v3263_v50  ;;  %v3479_v38 = vld [vmem:[#allocation13 + $0x1570] sm:$0xff] }
 0x577   :  { %8113 = vmatpush1.bf16.msra.mxu1 %v9276_v59  ;;  %v3308_v59 = vld [vmem:[#allocation13 + $0x1018] sm:$0xff]  ;;  %v3527_v43 = vld [vmem:[#allocation13 + $0x16f0] sm:$0xff] }
 0x578   :  { %8236 = vmatpush1.bf16.msra.mxu0 %v9282_v61  ;;  %8114 = vmatprep.subr.bf16.mxu1 %v9325_v62  ;;  %v3287_v62 = vld [vmem:[#allocation13 + $0xf70] sm:$0xff]  ;;  %v9565_v4 = vcombine.high %v3284_v58, %v3308_v59 }
 0x579   :  { %v7810_v12 = vpop.f32.mrb[12].mxu1  ;;  %8237 = vmatprep.subr.bf16.mxu0 %v9331_v63  ;;  %v3311_v63 = vld [vmem:[#allocation13 + $0x1030] sm:$0xff] }
 0x57a   :  { %v7811_v16 = vadd.f32 %v7810_v12, %v3600_v2  ;;  %v7933_v22 = vpop.f32.mrb[16].mxu0  ;;  %v7812_v19 = vpop.f32.mrb[13].mxu1  ;;  %v9564_v12 = vcombine.low %v3284_v58, %v3308_v59  ;;  %v3551_v17 = vld [vmem:[#allocation13 + $0x17b0] sm:$0xff]  ;;  %v2830_v58 = vld [vmem:[#allocation13 + $0x128] sm:$0xff]  ;;  %v2809_v59 = vld [vmem:[#allocation13 + $0x80] sm:$0xff] }
 0x57b   :  { %v7934_v46 = vadd.f32 %v7933_v22, %v3624_v8  ;;  %v7813_v44 = vadd.f32 %v7812_v19, %v3604_v5  ;;  %v7935_v27 = vpop.f32.mrb[17].mxu0  ;;  %v7814_v28 = vpop.f32.mrb[14].mxu1  ;;  %8115 = vmatpush1.bf16.msra.mxu1 %v9324_v7  ;;  %v9571_v5 = vcombine.high %v3287_v62, %v3311_v63  ;;  %v3332_v7 = vld [vmem:[#allocation13 + $0x10d8] sm:$0xff]  ;;  %v3383_v19 = vld [vmem:[#allocation13 + $0x1270] sm:$0xff] }
 0x57c   :  { %10382 = vtanh.f32 %v7811_v16  ;;  %v7936_v30 = vadd.f32 %v7935_v27, %v3628_v9  ;;  %v7937_v31 = vpop.f32.mrb[18].mxu0  ;;  %8238 = vmatpush1.bf16.msra.mxu0 %v9330_v10  ;;  %v7815_v32 = vpop.f32.mrb[15].mxu1  ;;  %8116 = vmatprep.subr.bf16.mxu1 %v9373_v11  ;;  %v3356_v9 = vld [vmem:[#allocation13 + $0x1198] sm:$0xff]  ;;  %v3335_v10 = vld [vmem:[#allocation13 + $0x10f0] sm:$0xff]  ;;  %v9667_v27 = vcombine.high %v3383_v19, %v3407_v53 }
 0x57d   :  { %10384 = vtanh.f32 %v7934_v46  ;;  %v7938_v35 = vpop.f32.mrb[19].mxu0  ;;  %8239 = vmatprep.subr.bf16.mxu0 %v9379_v13  ;;  %v3359_v11 = vld [vmem:[#allocation13 + $0x11b0] sm:$0xff]  ;;  %v9570_v13 = vcombine.low %v3287_v62, %v3311_v63  ;;  %v9613_v14 = vcombine.high %v3332_v7, %v3356_v9  ;;  %v3380_v16 = vld [vmem:[#allocation13 + $0x1258] sm:$0xff]  ;;  %v9612_v49 = vcombine.low %v3332_v7, %v3356_v9 }
 0x57e   :  { %10386 = vtanh.f32 %v7813_v44  ;;  %v9619_v15 = vcombine.high %v3335_v10, %v3359_v11  ;;  %v3404_v22 = vld [vmem:[#allocation13 + $0x1318] sm:$0xff]  ;;  %v9618_v46 = vcombine.low %v3335_v10, %v3359_v11  ;;  %v3455_v31 = vld [vmem:[#allocation13 + $0x14b0] sm:$0xff]  ;;  %v9810_v63 = vcombine.low %v3527_v43, %v3551_v17  ;;  %v2902_v10 = vld [vmem:[#allocation13 + $0x368] sm:$0xff] }
 0x57f   :  { %10388 = vtanh.f32 %v7936_v30  ;;  %8117 = vmatpush1.bf16.msra.mxu1 %v9372_v29  ;;  %v9661_v44 = vcombine.high %v3380_v16, %v3404_v22  ;;  %v3428_v28 = vld [vmem:[#allocation13 + $0x13d8] sm:$0xff]  ;;  %v3431_v30 = vld [vmem:[#allocation13 + $0x13f0] sm:$0xff]  ;;  %v9660_v32 = vcombine.low %v3380_v16, %v3404_v22  ;;  %v2926_v11 = vld [vmem:[#allocation13 + $0x428] sm:$0xff] }
 0x580   :  { %8240 = vmatpush1.bf16.msra.mxu0 %v9378_v33  ;;  %8118 = vmatprep.subr.bf16.mxu1 %v9421_v34  ;;  %v3452_v29 = vld [vmem:[#allocation13 + $0x1498] sm:$0xff]  ;;  %v9666_v33 = vcombine.low %v3383_v19, %v3407_v53  ;;  %v9715_v35 = vcombine.high %v3431_v30, %v3455_v31  ;;  %v9185_v22 = vcombine.high %v2902_v10, %v2926_v11  ;;  %v2950_v53 = vld [vmem:[#allocation13 + $0x4e8] sm:$0xff] }
 0x581   :  { %8241 = vmatprep.subr.bf16.mxu0 %v9427_v36  ;;  %v9709_v34 = vcombine.high %v3428_v28, %v3452_v29  ;;  %v3476_v36 = vld [vmem:[#allocation13 + $0x1558] sm:$0xff]  ;;  %v9708_v40 = vcombine.low %v3428_v28, %v3452_v29 }
 0x582   :  { %v9756_v50 = vcombine.low %v3476_v36, %v3500_v37 }
 0x583   :  { %8119 = vmatpush1.bf16.msra.mxu1 %v9420_v41  ;;  %v9714_v41 = vcombine.low %v3431_v30, %v3455_v31  ;;  %v2998_v31 = vld [vmem:[#allocation13 + $0x668] sm:$0xff] }
 0x584   :  { %8242 = vmatpush1.bf16.msra.mxu0 %v9426_v18  ;;  %8120 = vmatprep.subr.bf16.mxu1 %v9469_v42  ;;  %v9757_v18 = vcombine.high %v3476_v36, %v3500_v37  ;;  %v9763_v42 = vcombine.high %v3479_v38, %v3503_v39 }
 0x585   :  { %8243 = vmatprep.subr.bf16.mxu0 %v9475_v20  ;;  %v3524_v20 = vld [vmem:[#allocation13 + $0x16d8] sm:$0xff] }
 0x586   :  { %v10383_v61 = vpop.eup %10382  ;;  %v9804_v62 = vcombine.low %v3524_v20, %v3548_v54 }
 0x587   :  { %v10385_v0 = vpop.eup %10384  ;;  %8691 = vst [vmem:[%s11270_s9 + $0x30] sm:$0xff] %v10383_v61  ;;  %8121 = vmatpush1.bf16.msra.mxu1 %v9468_v47  ;;  %v9762_v47 = vcombine.low %v3479_v38, %v3503_v39  ;;  %v2833_v61 = vld [vmem:[#allocation13 + $0x140] sm:$0xff]  ;;  %v3046_v39 = vld [vmem:[#allocation13 + $0x7e8] sm:$0xff] }
 0x588   :  { %v10387_v2 = vpop.eup %10386  ;;  %8697 = vst [vmem:[%s11270_s9 + $0x60] sm:$0xff] %v10385_v0  ;;  %8244 = vmatpush1.bf16.msra.mxu0 %v9474_v51  ;;  %8122 = vmatprep.subr.bf16.mxu1 %v9517_v55  ;;  %v9805_v51 = vcombine.high %v3524_v20, %v3548_v54  ;;  %v9811_v55 = vcombine.high %v3527_v43, %v3551_v17  ;;  %v11061_v54 = vld [vmem:[#allocation15 + $0x10] sm:$0xff] }
 0x589   :  { %v10389_v8 = vpop.eup %10388  ;;  %8692 = vst [vmem:[%s11270_s9 + $0x38] sm:$0xff] %v10387_v2  ;;  %8245 = vmatprep.subr.bf16.mxu0 %v9523_v57  ;;  %v2806_v57 = vld [vmem:[#allocation13 + $0x68] sm:$0xff]  ;;  %v9094_v7 = vcombine.low %v2809_v59, %v2833_v61 }
 0x58a   :  { %8698 = vst [vmem:[%s11270_s9 + $0x68] sm:$0xff] %v10389_v8  ;;  %v9089_v0 = vcombine.high %v2806_v57, %v2830_v58  ;;  %v2854_v2 = vld [vmem:[#allocation13 + $0x1e8] sm:$0xff]  ;;  %v2857_v8 = vld [vmem:[#allocation13 + $0x200] sm:$0xff] }
 0x58b   :  { %8123 = vmatpush1.bf16.msra.mxu1 %v9516_v1  ;;  %v9095_v1 = vcombine.high %v2809_v59, %v2833_v61  ;;  %v3620_v59 = vrot.slane %v11005_v6, %v10891_v23 }
 0x58c   :  { %8246 = vmatpush1.bf16.msra.mxu0 %v9522_v48  ;;  %8124 = vmatprep.subr.bf16.mxu1 %v9565_v4  ;;  %v2878_v48 = vld [vmem:[#allocation13 + $0x2a8] sm:$0xff]  ;;  %v9088_v4 = vcombine.low %v2806_v57, %v2830_v58  ;;  %v3121_v57 = vld [vmem:[#allocation13 + $0xa40] sm:$0xff]  ;;  %v3640_v58 = vrot.slane %v11061_v54, %v10894_v24 }
 0x58d   :  { %8247 = vmatprep.subr.bf16.mxu0 %v9571_v5  ;;  %v2881_v5 = vld [vmem:[#allocation13 + $0x2c0] sm:$0xff]  ;;  %v9137_v9 = vcombine.high %v2854_v2, %v2878_v48 }
 0x58e   :  { %v9142_v16 = vcombine.low %v2857_v8, %v2881_v5 }
 0x58f   :  { %8125 = vmatpush1.bf16.msra.mxu1 %v9564_v12  ;;  %v9143_v12 = vcombine.high %v2857_v8, %v2881_v5 }
 0x590   :  { %8248 = vmatpush1.bf16.msra.mxu0 %v9570_v13  ;;  %8126 = vmatprep.subr.bf16.mxu1 %v9613_v14  ;;  %v2905_v13 = vld [vmem:[#allocation13 + $0x380] sm:$0xff] }
 0x591   :  { %8249 = vmatprep.subr.bf16.mxu0 %v9619_v15  ;;  %v2929_v14 = vld [vmem:[#allocation13 + $0x440] sm:$0xff]  ;;  %v9136_v15 = vcombine.low %v2854_v2, %v2878_v48  ;;  %v3142_v48 = vld [vmem:[#allocation13 + $0xae8] sm:$0xff] }
 0x592   :  { %v9191_v19 = vcombine.high %v2905_v13, %v2929_v14  ;;  %v9190_v28 = vcombine.low %v2905_v13, %v2929_v14 }
 0x593   :  { %8127 = vmatpush1.bf16.msra.mxu1 %v9612_v49  ;;  %v2974_v49 = vld [vmem:[#allocation13 + $0x5a8] sm:$0xff] }
 0x594   :  { %8250 = vmatpush1.bf16.msra.mxu0 %v9618_v46  ;;  %8128 = vmatprep.subr.bf16.mxu1 %v9661_v44  ;;  %v2953_v46 = vld [vmem:[#allocation13 + $0x500] sm:$0xff]  ;;  %v9233_v29 = vcombine.high %v2950_v53, %v2974_v49 }
 0x595   :  { %8251 = vmatprep.subr.bf16.mxu0 %v9667_v27  ;;  %v2977_v44 = vld [vmem:[#allocation13 + $0x5c0] sm:$0xff]  ;;  %v9184_v27 = vcombine.low %v2902_v10, %v2926_v11 }
 0x596   :  { %v9239_v30 = vcombine.high %v2953_v46, %v2977_v44  ;;  %v9238_v36 = vcombine.low %v2953_v46, %v2977_v44  ;;  %v3169_v10 = vld [vmem:[#allocation13 + $0xbc0] sm:$0xff]  ;;  %v3190_v44 = vld [vmem:[#allocation13 + $0xc68] sm:$0xff] }
 0x597   :  { %8129 = vmatpush1.bf16.msra.mxu1 %v9660_v32  ;;  %v3022_v32 = vld [vmem:[#allocation13 + $0x728] sm:$0xff] }
 0x598   :  { %8252 = vmatpush1.bf16.msra.mxu0 %v9666_v33  ;;  %8130 = vmatprep.subr.bf16.mxu1 %v9709_v34  ;;  %v3001_v33 = vld [vmem:[#allocation13 + $0x680] sm:$0xff]  ;;  %v9281_v37 = vcombine.high %v2998_v31, %v3022_v32 }
 0x599   :  { %8253 = vmatprep.subr.bf16.mxu0 %v9715_v35  ;;  %v3025_v34 = vld [vmem:[#allocation13 + $0x740] sm:$0xff]  ;;  %v9232_v35 = vcombine.low %v2950_v53, %v2974_v49 }
 0x59a   :  { %v9287_v38 = vcombine.high %v3001_v33, %v3025_v34  ;;  %v9286_v20 = vcombine.low %v3001_v33, %v3025_v34  ;;  %v3238_v34 = vld [vmem:[#allocation13 + $0xde8] sm:$0xff] }
 0x59b   :  { %8131 = vmatpush1.bf16.msra.mxu1 %v9708_v40  ;;  %v3070_v40 = vld [vmem:[#allocation13 + $0x8a8] sm:$0xff] }
 0x59c   :  { %8254 = vmatpush1.bf16.msra.mxu0 %v9714_v41  ;;  %8132 = vmatprep.subr.bf16.mxu1 %v9757_v18  ;;  %v3049_v41 = vld [vmem:[#allocation13 + $0x800] sm:$0xff]  ;;  %v9329_v43 = vcombine.high %v3046_v39, %v3070_v40  ;;  %v9328_v61 = vcombine.low %v3046_v39, %v3070_v40 }
 0x59d   :  { %8255 = vmatprep.subr.bf16.mxu0 %v9763_v42  ;;  %v3073_v18 = vld [vmem:[#allocation13 + $0x8c0] sm:$0xff]  ;;  %v9280_v42 = vcombine.low %v2998_v31, %v3022_v32 }
 0x59e   :  { %v9335_v17 = vcombine.high %v3049_v41, %v3073_v18 }
 0x59f   :  { %8133 = vmatpush1.bf16.msra.mxu1 %v9756_v50  ;;  %v3094_v50 = vld [vmem:[#allocation13 + $0x968] sm:$0xff] }
 0x5a0   :  { %8256 = vmatpush1.bf16.msra.mxu0 %v9762_v47  ;;  %8134 = vmatprep.subr.bf16.mxu1 %v9805_v51  ;;  %v3118_v47 = vld [vmem:[#allocation13 + $0xa28] sm:$0xff]  ;;  %v3616_v51 = vrot.slane %v11005_v6, %v10887_v21 }
 0x5a1   :  { %8257 = vmatprep.subr.bf16.mxu0 %v9811_v55  ;;  %v3097_v55 = vld [vmem:[#allocation13 + $0x980] sm:$0xff]  ;;  %v9376_v14 = vcombine.low %v3094_v50, %v3118_v47 }
 0x5a2   :  { %v9383_v2 = vcombine.high %v3097_v55, %v3121_v57 }
 0x5a3   :  { %8135 = vmatpush1.bf16.msra.mxu1 %v9804_v62  ;;  %v3644_v62 = vrot.slane %v11061_v54, %v10897_v25 }
 0x5a4   :  { %8258 = vmatpush1.bf16.msra.mxu0 %v9810_v63  ;;  %8186 = vmatprep.subr.bf16.mxu1 %v9089_v0  ;;  %v9334_v63 = vcombine.low %v3049_v41, %v3073_v18  ;;  %v9377_v0 = vcombine.high %v3094_v50, %v3118_v47  ;;  %v3286_v18 = vld [vmem:[#allocation13 + $0xf68] sm:$0xff] }
 0x5a5   :  { %8309 = vmatprep.subr.bf16.mxu0 %v9095_v1 }
 0x5a6   :  { %8137 = vmatmul.mubr.bf16.vlgmr.msra.gmra.mrb[28].mxu1 %v10945_v52 }
 0x5a7   :  { %8260 = vmatmul.mubr.bf16.vlgmr.msra.gmra.mrb[32].mxu0 %v10945_v52  ;;  %8187 = vmatpush1.bf16.msra.mxu1 %v9088_v4  ;;  %v3166_v4 = vld [vmem:[#allocation13 + $0xba8] sm:$0xff] }
 0x5a8   :  { %8218 = vmatprep.mubr.bf16.mxu1 %v10947_v3  ;;  %8310 = vmatpush1.bf16.msra.mxu0 %v9094_v7  ;;  %v9425_v53 = vcombine.high %v3142_v48, %v3166_v4 }
 0x5a9   :  { %8341 = vmatprep.mubr.bf16.mxu0 %v10947_v3  ;;  %8188 = vmatprep.subr.bf16.mxu1 %v9137_v9  ;;  %v3145_v9 = vld [vmem:[#allocation13 + $0xb00] sm:$0xff] }
 0x5aa   :  { %8311 = vmatprep.subr.bf16.mxu0 %v9143_v12  ;;  %v9431_v46 = vcombine.high %v3145_v9, %v3169_v10  ;;  %v9430_v31 = vcombine.low %v3145_v9, %v3169_v10  ;;  %v3409_v9 = vld [vmem:[#allocation13 + $0x1340] sm:$0xff] }
 0x5ab   :  { %8189 = vmatpush1.bf16.msra.mxu1 %v9136_v15 }
 0x5ac   :  { %8312 = vmatpush1.bf16.msra.mxu0 %v9142_v16  ;;  %8190 = vmatprep.subr.bf16.mxu1 %v9185_v22 }
 0x5ad   :  { %8313 = vmatprep.subr.bf16.mxu0 %v9191_v19  ;;  %v9382_v19 = vcombine.low %v3097_v55, %v3121_v57 }
 0x5af   :  { %8191 = vmatpush1.bf16.msra.mxu1 %v9184_v27  ;;  %v3214_v27 = vld [vmem:[#allocation13 + $0xd28] sm:$0xff] }
 0x5b0   :  { %8314 = vmatpush1.bf16.msra.mxu0 %v9190_v28  ;;  %8192 = vmatprep.subr.bf16.mxu1 %v9233_v29  ;;  %v3193_v28 = vld [vmem:[#allocation13 + $0xc80] sm:$0xff]  ;;  %v9473_v32 = vcombine.high %v3190_v44, %v3214_v27 }
 0x5b1   :  { %8315 = vmatprep.subr.bf16.mxu0 %v9239_v30  ;;  %v3217_v29 = vld [vmem:[#allocation13 + $0xd40] sm:$0xff]  ;;  %v9424_v30 = vcombine.low %v3142_v48, %v3166_v4 }
 0x5b2   :  { %v9479_v33 = vcombine.high %v3193_v28, %v3217_v29  ;;  %v9478_v39 = vcombine.low %v3193_v28, %v3217_v29  ;;  %v3505_v28 = vld [vmem:[#allocation13 + $0x1640] sm:$0xff] }
 0x5b3   :  { %8193 = vmatpush1.bf16.msra.mxu1 %v9232_v35  ;;  %v3262_v35 = vld [vmem:[#allocation13 + $0xea8] sm:$0xff] }
 0x5b4   :  { %8316 = vmatpush1.bf16.msra.mxu0 %v9238_v36  ;;  %8194 = vmatprep.subr.bf16.mxu1 %v9281_v37  ;;  %v3241_v36 = vld [vmem:[#allocation13 + $0xe00] sm:$0xff]  ;;  %v9521_v40 = vcombine.high %v3238_v34, %v3262_v35  ;;  %v9520_v47 = vcombine.low %v3238_v34, %v3262_v35  ;;  %v3550_v34 = vld [vmem:[#allocation13 + $0x17a8] sm:$0xff] }
 0x5b5   :  { %8317 = vmatprep.subr.bf16.mxu0 %v9287_v38  ;;  %v3265_v37 = vld [vmem:[#allocation13 + $0xec0] sm:$0xff]  ;;  %v9472_v38 = vcombine.low %v3190_v44, %v3214_v27  ;;  %v3502_v44 = vld [vmem:[#allocation13 + $0x1628] sm:$0xff] }
 0x5b6   :  { %v9527_v41 = vcombine.high %v3241_v36, %v3265_v37  ;;  %v9526_v55 = vcombine.low %v3241_v36, %v3265_v37  ;;  %v3481_v27 = vld [vmem:[#allocation13 + $0x1580] sm:$0xff] }
 0x5b7   :  { %8195 = vmatpush1.bf16.msra.mxu1 %v9280_v42  ;;  %v3310_v42 = vld [vmem:[#allocation13 + $0x1028] sm:$0xff]  ;;  %v3529_v35 = vld [vmem:[#allocation13 + $0x1700] sm:$0xff] }
 0x5b8   :  { %8318 = vmatpush1.bf16.msra.mxu0 %v9286_v20  ;;  %8196 = vmatprep.subr.bf16.mxu1 %v9329_v43  ;;  %v3289_v43 = vld [vmem:[#allocation13 + $0xf80] sm:$0xff]  ;;  %v9569_v57 = vcombine.high %v3286_v18, %v3310_v42 }
 0x5b9   :  { %v7892_v1 = vpop.f32.mrb[16].mxu1  ;;  %8319 = vmatprep.subr.bf16.mxu0 %v9335_v17  ;;  %v3313_v17 = vld [vmem:[#allocation13 + $0x1040] sm:$0xff] }
 0x5ba   :  { %v7893_v8 = vadd.f32 %v7892_v1, %v3616_v51  ;;  %v8015_v5 = vpop.f32.mrb[20].mxu0  ;;  %v7894_v7 = vpop.f32.mrb[17].mxu1  ;;  %v9568_v1 = vcombine.low %v3286_v18, %v3310_v42  ;;  %v3553_v36 = vld [vmem:[#allocation13 + $0x17c0] sm:$0xff]  ;;  %v2832_v18 = vld [vmem:[#allocation13 + $0x138] sm:$0xff]  ;;  %v2811_v42 = vld [vmem:[#allocation13 + $0x90] sm:$0xff] }
 0x5bb   :  { %v8016_v11 = vadd.f32 %v8015_v5, %v3640_v58  ;;  %v7895_v6 = vadd.f32 %v7894_v7, %v3620_v59  ;;  %v8017_v12 = vpop.f32.mrb[21].mxu0  ;;  %v7896_v13 = vpop.f32.mrb[18].mxu1  ;;  %8197 = vmatpush1.bf16.msra.mxu1 %v9328_v61  ;;  %v9575_v59 = vcombine.high %v3289_v43, %v3313_v17  ;;  %v3334_v61 = vld [vmem:[#allocation13 + $0x10e8] sm:$0xff]  ;;  %v3385_v7 = vld [vmem:[#allocation13 + $0x1280] sm:$0xff] }
 0x5bc   :  { %10390 = vtanh.f32 %v7893_v8  ;;  %v8018_v15 = vadd.f32 %v8017_v12, %v3644_v62  ;;  %v8019_v16 = vpop.f32.mrb[22].mxu0  ;;  %8320 = vmatpush1.bf16.msra.mxu0 %v9334_v63  ;;  %v7897_v22 = vpop.f32.mrb[19].mxu1  ;;  %8198 = vmatprep.subr.bf16.mxu1 %v9377_v0  ;;  %v3358_v62 = vld [vmem:[#allocation13 + $0x11a8] sm:$0xff]  ;;  %v3337_v63 = vld [vmem:[#allocation13 + $0x1100] sm:$0xff]  ;;  %v9671_v12 = vcombine.high %v3385_v7, %v3409_v9 }
 0x5bd   :  { %10392 = vtanh.f32 %v8016_v11  ;;  %v8020_v49 = vpop.f32.mrb[23].mxu0  ;;  %8321 = vmatprep.subr.bf16.mxu0 %v9383_v2  ;;  %v3361_v0 = vld [vmem:[#allocation13 + $0x11c0] sm:$0xff]  ;;  %v9574_v2 = vcombine.low %v3289_v43, %v3313_v17  ;;  %v9617_v48 = vcombine.high %v3334_v61, %v3358_v62  ;;  %v3382_v8 = vld [vmem:[#allocation13 + $0x1268] sm:$0xff]  ;;  %v9616_v10 = vcombine.low %v3334_v61, %v3358_v62 }
 0x5be   :  { %10394 = vtanh.f32 %v7895_v6  ;;  %v9623_v4 = vcombine.high %v3337_v63, %v3361_v0  ;;  %v3406_v5 = vld [vmem:[#allocation13 + $0x1328] sm:$0xff]  ;;  %v9622_v11 = vcombine.low %v3337_v63, %v3361_v0  ;;  %v3457_v16 = vld [vmem:[#allocation13 + $0x14c0] sm:$0xff]  ;;  %v9814_v17 = vcombine.low %v3529_v35, %v3553_v36  ;;  %v2904_v63 = vld [vmem:[#allocation13 + $0x378] sm:$0xff] }
 0x5bf   :  { %10396 = vtanh.f32 %v8018_v15  ;;  %8199 = vmatpush1.bf16.msra.mxu1 %v9376_v14  ;;  %v9665_v6 = vcombine.high %v3382_v8, %v3406_v5  ;;  %v3430_v13 = vld [vmem:[#allocation13 + $0x13e8] sm:$0xff]  ;;  %v3433_v15 = vld [vmem:[#allocation13 + $0x1400] sm:$0xff]  ;;  %v9664_v22 = vcombine.low %v3382_v8, %v3406_v5  ;;  %v2928_v0 = vld [vmem:[#allocation13 + $0x438] sm:$0xff] }
 0x5c0   :  { %8322 = vmatpush1.bf16.msra.mxu0 %v9382_v19  ;;  %8200 = vmatprep.subr.bf16.mxu1 %v9425_v53  ;;  %v3454_v14 = vld [vmem:[#allocation13 + $0x14a8] sm:$0xff]  ;;  %v9670_v19 = vcombine.low %v3385_v7, %v3409_v9  ;;  %v9719_v49 = vcombine.high %v3433_v15, %v3457_v16  ;;  %v9189_v5 = vcombine.high %v2904_v63, %v2928_v0  ;;  %v2952_v9 = vld [vmem:[#allocation13 + $0x4f8] sm:$0xff] }
 0x5c1   :  { %8323 = vmatprep.subr.bf16.mxu0 %v9431_v46  ;;  %v9713_v53 = vcombine.high %v3430_v13, %v3454_v14  ;;  %v3478_v46 = vld [vmem:[#allocation13 + $0x1568] sm:$0xff]  ;;  %v9712_v29 = vcombine.low %v3430_v13, %v3454_v14 }
 0x5c2   :  { %v9760_v37 = vcombine.low %v3478_v46, %v3502_v44 }
 0x5c3   :  { %8201 = vmatpush1.bf16.msra.mxu1 %v9424_v30  ;;  %v9718_v30 = vcombine.low %v3433_v15, %v3457_v16  ;;  %v3000_v16 = vld [vmem:[#allocation13 + $0x678] sm:$0xff] }
 0x5c4   :  { %8324 = vmatpush1.bf16.msra.mxu0 %v9430_v31  ;;  %8202 = vmatprep.subr.bf16.mxu1 %v9473_v32  ;;  %v9761_v31 = vcombine.high %v3478_v46, %v3502_v44  ;;  %v9767_v32 = vcombine.high %v3481_v27, %v3505_v28 }
 0x5c5   :  { %8325 = vmatprep.subr.bf16.mxu0 %v9479_v33  ;;  %v3526_v33 = vld [vmem:[#allocation13 + $0x16e8] sm:$0xff] }
 0x5c6   :  { %v10391_v20 = vpop.eup %10390  ;;  %v9808_v43 = vcombine.low %v3526_v33, %v3550_v34 }
 0x5c7   :  { %v10393_v50 = vpop.eup %10392  ;;  %8695 = vst [vmem:[%s11270_s9 + $0x50] sm:$0xff] %v10391_v20  ;;  %8203 = vmatpush1.bf16.msra.mxu1 %v9472_v38  ;;  %v9766_v38 = vcombine.low %v3481_v27, %v3505_v28  ;;  %v2835_v20 = vld [vmem:[#allocation13 + $0x150] sm:$0xff]  ;;  %v3048_v28 = vld [vmem:[#allocation13 + $0x7f8] sm:$0xff] }
 0x5c8   :  { %v10395_v51 = vpop.eup %10394  ;;  %8701 = vst [vmem:[%s11270_s9 + $0x80] sm:$0xff] %v10393_v50  ;;  %8326 = vmatpush1.bf16.msra.mxu0 %v9478_v39  ;;  %8204 = vmatprep.subr.bf16.mxu1 %v9521_v40  ;;  %v9809_v39 = vcombine.high %v3526_v33, %v3550_v34  ;;  %v9815_v40 = vcombine.high %v3529_v35, %v3553_v36  ;;  %v3096_v36 = vld [vmem:[#allocation13 + $0x978] sm:$0xff] }
 0x5c9   :  { %v10397_v58 = vpop.eup %10396  ;;  %8696 = vst [vmem:[%s11270_s9 + $0x58] sm:$0xff] %v10395_v51  ;;  %8327 = vmatprep.subr.bf16.mxu0 %v9527_v41  ;;  %v2808_v41 = vld [vmem:[#allocation13 + $0x78] sm:$0xff]  ;;  %v9098_v61 = vcombine.low %v2811_v42, %v2835_v20 }
 0x5ca   :  { %8702 = vst [vmem:[%s11270_s9 + $0x88] sm:$0xff] %v10397_v58  ;;  %v9093_v50 = vcombine.high %v2808_v41, %v2832_v18  ;;  %v2856_v51 = vld [vmem:[#allocation13 + $0x1f8] sm:$0xff]  ;;  %v2859_v58 = vld [vmem:[#allocation13 + $0x210] sm:$0xff] }
 0x5cb   :  { %8205 = vmatpush1.bf16.msra.mxu1 %v9520_v47  ;;  %v9099_v47 = vcombine.high %v2811_v42, %v2835_v20 }
 0x5cc   :  { %8328 = vmatpush1.bf16.msra.mxu0 %v9526_v55  ;;  %8206 = vmatprep.subr.bf16.mxu1 %v9569_v57  ;;  %v2880_v55 = vld [vmem:[#allocation13 + $0x2b8] sm:$0xff]  ;;  %v9092_v57 = vcombine.low %v2808_v41, %v2832_v18  ;;  %v3123_v41 = vld [vmem:[#allocation13 + $0xa50] sm:$0xff]  ;;  %v3656_v18 = vrot.slane %v11061_v54, %v10974_v26 }
 0x5cd   :  { %8329 = vmatprep.subr.bf16.mxu0 %v9575_v59  ;;  %v2883_v59 = vld [vmem:[#allocation13 + $0x2d0] sm:$0xff]  ;;  %v9141_v62 = vcombine.high %v2856_v51, %v2880_v55 }
 0x5ce   :  { %v9146_v8 = vcombine.low %v2859_v58, %v2883_v59 }
 0x5cf   :  { %8207 = vmatpush1.bf16.msra.mxu1 %v9568_v1  ;;  %v9147_v1 = vcombine.high %v2859_v58, %v2883_v59 }
 0x5d0   :  { %8330 = vmatpush1.bf16.msra.mxu0 %v9574_v2  ;;  %8208 = vmatprep.subr.bf16.mxu1 %v9617_v48  ;;  %v2907_v2 = vld [vmem:[#allocation13 + $0x390] sm:$0xff] }
 0x5d1   :  { %8331 = vmatprep.subr.bf16.mxu0 %v9623_v4  ;;  %v2931_v48 = vld [vmem:[#allocation13 + $0x450] sm:$0xff]  ;;  %v9140_v4 = vcombine.low %v2856_v51, %v2880_v55  ;;  %v3144_v55 = vld [vmem:[#allocation13 + $0xaf8] sm:$0xff] }
 0x5d2   :  { %v9195_v7 = vcombine.high %v2907_v2, %v2931_v48  ;;  %v9194_v13 = vcombine.low %v2907_v2, %v2931_v48 }
 0x5d3   :  { %8209 = vmatpush1.bf16.msra.mxu1 %v9616_v10  ;;  %v2976_v10 = vld [vmem:[#allocation13 + $0x5b8] sm:$0xff] }
 0x5d4   :  { %8332 = vmatpush1.bf16.msra.mxu0 %v9622_v11  ;;  %8210 = vmatprep.subr.bf16.mxu1 %v9665_v6  ;;  %v2955_v11 = vld [vmem:[#allocation13 + $0x510] sm:$0xff]  ;;  %v9237_v14 = vcombine.high %v2952_v9, %v2976_v10 }
 0x5d5   :  { %8333 = vmatprep.subr.bf16.mxu0 %v9671_v12  ;;  %v2979_v6 = vld [vmem:[#allocation13 + $0x5d0] sm:$0xff]  ;;  %v9188_v12 = vcombine.low %v2904_v63, %v2928_v0 }
 0x5d6   :  { %v9243_v15 = vcombine.high %v2955_v11, %v2979_v6  ;;  %v9242_v46 = vcombine.low %v2955_v11, %v2979_v6  ;;  %v3171_v63 = vld [vmem:[#allocation13 + $0xbd0] sm:$0xff] }
 0x5d7   :  { %8211 = vmatpush1.bf16.msra.mxu1 %v9664_v22  ;;  %v3024_v22 = vld [vmem:[#allocation13 + $0x738] sm:$0xff] }
 0x5d8   :  { %8334 = vmatpush1.bf16.msra.mxu0 %v9670_v19  ;;  %8212 = vmatprep.subr.bf16.mxu1 %v9713_v53  ;;  %v3003_v19 = vld [vmem:[#allocation13 + $0x690] sm:$0xff]  ;;  %v9285_v44 = vcombine.high %v3000_v16, %v3024_v22 }
 0x5d9   :  { %8335 = vmatprep.subr.bf16.mxu0 %v9719_v49  ;;  %v3027_v53 = vld [vmem:[#allocation13 + $0x750] sm:$0xff]  ;;  %v9236_v49 = vcombine.low %v2952_v9, %v2976_v10 }
 0x5da   :  { %v9291_v27 = vcombine.high %v3003_v19, %v3027_v53  ;;  %v9290_v33 = vcombine.low %v3003_v19, %v3027_v53 }
 0x5db   :  { %8213 = vmatpush1.bf16.msra.mxu1 %v9712_v29  ;;  %v3072_v29 = vld [vmem:[#allocation13 + $0x8b8] sm:$0xff] }
 0x5dc   :  { %8336 = vmatpush1.bf16.msra.mxu0 %v9718_v30  ;;  %8214 = vmatprep.subr.bf16.mxu1 %v9761_v31  ;;  %v3051_v30 = vld [vmem:[#allocation13 + $0x810] sm:$0xff]  ;;  %v9333_v34 = vcombine.high %v3048_v28, %v3072_v29  ;;  %v9332_v20 = vcombine.low %v3048_v28, %v3072_v29 }
 0x5dd   :  { %8337 = vmatprep.subr.bf16.mxu0 %v9767_v32  ;;  %v3075_v31 = vld [vmem:[#allocation13 + $0x8d0] sm:$0xff]  ;;  %v9284_v32 = vcombine.low %v3000_v16, %v3024_v22 }
 0x5de   :  { %v9339_v35 = vcombine.high %v3051_v30, %v3075_v31 }
 0x5df   :  { %8215 = vmatpush1.bf16.msra.mxu1 %v9760_v37  ;;  %v3120_v37 = vld [vmem:[#allocation13 + $0xa38] sm:$0xff] }
 0x5e0   :  { %8338 = vmatpush1.bf16.msra.mxu0 %v9766_v38  ;;  %8216 = vmatprep.subr.bf16.mxu1 %v9809_v39  ;;  %v10462_v38 = vld [vmem:[#allocation15 + $0x8] sm:$0xff] }
 0x5e1   :  { %8339 = vmatprep.subr.bf16.mxu0 %v9815_v40  ;;  %v3632_v39 = vrot.slane %v10462_v38, %v11032_v56  ;;  %v3099_v40 = vld [vmem:[#allocation13 + $0x990] sm:$0xff]  ;;  %v3636_v42 = vrot.slane %v10462_v38, %v11035_v60 }
 0x5e2   :  { %v9387_v51 = vcombine.high %v3099_v40, %v3123_v41  ;;  %v9386_v9 = vcombine.low %v3099_v40, %v3123_v41 }
 0x5e3   :  { %8217 = vmatpush1.bf16.msra.mxu1 %v9808_v43  ;;  %v3660_v43 = vrot.slane %v11061_v54, %v10979_v45 }
 0x5e4   :  { %8340 = vmatpush1.bf16.msra.mxu0 %v9814_v17  ;;  %8268 = vmatprep.subr.bf16.mxu1 %v9093_v50  ;;  %v9338_v17 = vcombine.low %v3051_v30, %v3075_v31  ;;  %v9381_v50 = vcombine.high %v3096_v36, %v3120_v37 }
 0x5e5   :  { %8391 = vmatprep.subr.bf16.mxu0 %v9099_v47 }
 0x5e6   :  { %8219 = vmatmul.mubr.bf16.vlgmr.msra.gmra.mrb[32].mxu1 %v10945_v52 }
 0x5e7   :  { %8342 = vmatmul.mubr.bf16.vlgmr.msra.gmra.mrb[36].mxu0 %v10945_v52  ;;  %8269 = vmatpush1.bf16.msra.mxu1 %v9092_v57  ;;  %v3168_v57 = vld [vmem:[#allocation13 + $0xbb8] sm:$0xff] }
 0x5e8   :  { %8300 = vmatprep.mubr.bf16.mxu1 %v10947_v3  ;;  %8392 = vmatpush1.bf16.msra.mxu0 %v9098_v61  ;;  %v9429_v10 = vcombine.high %v3144_v55, %v3168_v57  ;;  %v9428_v16 = vcombine.low %v3144_v55, %v3168_v57 }
 0x5e9   :  { %8423 = vmatprep.mubr.bf16.mxu0 %v10947_v3  ;;  %8270 = vmatprep.subr.bf16.mxu1 %v9141_v62  ;;  %v3147_v62 = vld [vmem:[#allocation13 + $0xb10] sm:$0xff] }
 0x5ea   :  { %8393 = vmatprep.subr.bf16.mxu0 %v9147_v1  ;;  %v9435_v6 = vcombine.high %v3147_v62, %v3171_v63  ;;  %v9434_v22 = vcombine.low %v3147_v62, %v3171_v63  ;;  %v3411_v62 = vld [vmem:[#allocation13 + $0x1350] sm:$0xff] }
 0x5eb   :  { %8271 = vmatpush1.bf16.msra.mxu1 %v9140_v4  ;;  %v9380_v4 = vcombine.low %v3096_v36, %v3120_v37  ;;  %v3315_v36 = vld [vmem:[#allocation13 + $0x1050] sm:$0xff] }
 0x5ec   :  { %8394 = vmatpush1.bf16.msra.mxu0 %v9146_v8  ;;  %8272 = vmatprep.subr.bf16.mxu1 %v9189_v5 }
 0x5ed   :  { %8395 = vmatprep.subr.bf16.mxu0 %v9195_v7 }
 0x5ef   :  { %8273 = vmatpush1.bf16.msra.mxu1 %v9188_v12  ;;  %v3192_v12 = vld [vmem:[#allocation13 + $0xc78] sm:$0xff] }
 0x5f0   :  { %8396 = vmatpush1.bf16.msra.mxu0 %v9194_v13  ;;  %8274 = vmatprep.subr.bf16.mxu1 %v9237_v14  ;;  %v3216_v13 = vld [vmem:[#allocation13 + $0xd38] sm:$0xff]  ;;  %v3195_v14 = vld [vmem:[#allocation13 + $0xc90] sm:$0xff] }
 0x5f1   :  { %8397 = vmatprep.subr.bf16.mxu0 %v9243_v15  ;;  %v3219_v15 = vld [vmem:[#allocation13 + $0xd50] sm:$0xff]  ;;  %v9477_v19 = vcombine.high %v3192_v12, %v3216_v13  ;;  %v9476_v28 = vcombine.low %v3192_v12, %v3216_v13  ;;  %v3504_v12 = vld [vmem:[#allocation13 + $0x1638] sm:$0xff] }
 0x5f2   :  { %v9483_v53 = vcombine.high %v3195_v14, %v3219_v15  ;;  %v9482_v29 = vcombine.low %v3195_v14, %v3219_v15  ;;  %v3483_v13 = vld [vmem:[#allocation13 + $0x1590] sm:$0xff] }
 0x5f3   :  { %8275 = vmatpush1.bf16.msra.mxu1 %v9236_v49  ;;  %v3240_v49 = vld [vmem:[#allocation13 + $0xdf8] sm:$0xff]  ;;  %v3507_v14 = vld [vmem:[#allocation13 + $0x1650] sm:$0xff] }
 0x5f4   :  { %8398 = vmatpush1.bf16.msra.mxu0 %v9242_v46  ;;  %8276 = vmatprep.subr.bf16.mxu1 %v9285_v44  ;;  %v3264_v46 = vld [vmem:[#allocation13 + $0xeb8] sm:$0xff]  ;;  %v3243_v44 = vld [vmem:[#allocation13 + $0xe10] sm:$0xff] }
 0x5f5   :  { %8399 = vmatprep.subr.bf16.mxu0 %v9291_v27  ;;  %v3267_v27 = vld [vmem:[#allocation13 + $0xed0] sm:$0xff]  ;;  %v9525_v30 = vcombine.high %v3240_v49, %v3264_v46  ;;  %v9524_v38 = vcombine.low %v3240_v49, %v3264_v46  ;;  %v3552_v49 = vld [vmem:[#allocation13 + $0x17b8] sm:$0xff] }
 0x5f6   :  { %v9531_v31 = vcombine.high %v3243_v44, %v3267_v27  ;;  %v9530_v40 = vcombine.low %v3243_v44, %v3267_v27  ;;  %v3531_v46 = vld [vmem:[#allocation13 + $0x1710] sm:$0xff] }
 0x5f7   :  { %8277 = vmatpush1.bf16.msra.mxu1 %v9284_v32  ;;  %v3288_v32 = vld [vmem:[#allocation13 + $0xf78] sm:$0xff]  ;;  %v3555_v44 = vld [vmem:[#allocation13 + $0x17d0] sm:$0xff] }
 0x5f8   :  { %8400 = vmatpush1.bf16.msra.mxu0 %v9290_v33  ;;  %8278 = vmatprep.subr.bf16.mxu1 %v9333_v34  ;;  %v3312_v33 = vld [vmem:[#allocation13 + $0x1038] sm:$0xff] }
 0x5f9   :  { %v7974_v47 = vpop.f32.mrb[20].mxu1  ;;  %8401 = vmatprep.subr.bf16.mxu0 %v9339_v35  ;;  %v3291_v35 = vld [vmem:[#allocation13 + $0xf90] sm:$0xff]  ;;  %v9573_v41 = vcombine.high %v3288_v32, %v3312_v33 }
 0x5fa   :  { %v7975_v58 = vadd.f32 %v7974_v47, %v3632_v39  ;;  %v8097_v59 = vpop.f32.mrb[24].mxu0  ;;  %v7976_v61 = vpop.f32.mrb[21].mxu1  ;;  %v9572_v47 = vcombine.low %v3288_v32, %v3312_v33  ;;  %v2834_v32 = vld [vmem:[#allocation13 + $0x148] sm:$0xff]  ;;  %v2813_v33 = vld [vmem:[#allocation13 + $0xa0] sm:$0xff] }
 0x5fb   :  { %v8098_v0 = vadd.f32 %v8097_v59, %v3656_v18  ;;  %v7977_v1 = vadd.f32 %v7976_v61, %v3636_v42  ;;  %v8099_v2 = vpop.f32.mrb[25].mxu0  ;;  %v7978_v48 = vpop.f32.mrb[22].mxu1  ;;  %8279 = vmatpush1.bf16.msra.mxu1 %v9332_v20  ;;  %v9579_v42 = vcombine.high %v3291_v35, %v3315_v36  ;;  %v3336_v20 = vld [vmem:[#allocation13 + $0x10f8] sm:$0xff]  ;;  %v3387_v61 = vld [vmem:[#allocation13 + $0x1290] sm:$0xff] }
 0x5fc   :  { %10398 = vtanh.f32 %v7975_v58  ;;  %v8100_v8 = vadd.f32 %v8099_v2, %v3660_v43  ;;  %v8101_v5 = vpop.f32.mrb[26].mxu0  ;;  %8402 = vmatpush1.bf16.msra.mxu0 %v9338_v17  ;;  %v7979_v7 = vpop.f32.mrb[23].mxu1  ;;  %8280 = vmatprep.subr.bf16.mxu1 %v9381_v50  ;;  %v3360_v43 = vld [vmem:[#allocation13 + $0x11b8] sm:$0xff]  ;;  %v3339_v17 = vld [vmem:[#allocation13 + $0x1110] sm:$0xff]  ;;  %v9675_v2 = vcombine.high %v3387_v61, %v3411_v62 }
 0x5fd   :  { %10400 = vtanh.f32 %v8098_v0  ;;  %v8102_v11 = vpop.f32.mrb[27].mxu0  ;;  %8403 = vmatprep.subr.bf16.mxu0 %v9387_v51  ;;  %v3363_v50 = vld [vmem:[#allocation13 + $0x11d0] sm:$0xff]  ;;  %v9578_v51 = vcombine.low %v3291_v35, %v3315_v36  ;;  %v9621_v55 = vcombine.high %v3336_v20, %v3360_v43  ;;  %v3384_v58 = vld [vmem:[#allocation13 + $0x1278] sm:$0xff]  ;;  %v9620_v63 = vcombine.low %v3336_v20, %v3360_v43 }
 0x5fe   :  { %10402 = vtanh.f32 %v7977_v1  ;;  %v9627_v57 = vcombine.high %v3339_v17, %v3363_v50  ;;  %v3408_v59 = vld [vmem:[#allocation13 + $0x1338] sm:$0xff]  ;;  %v9626_v0 = vcombine.low %v3339_v17, %v3363_v50  ;;  %v3459_v5 = vld [vmem:[#allocation13 + $0x14d0] sm:$0xff]  ;;  %v9818_v36 = vcombine.low %v3531_v46, %v3555_v44  ;;  %v2906_v17 = vld [vmem:[#allocation13 + $0x388] sm:$0xff] }
 0x5ff   :  { %10404 = vtanh.f32 %v8100_v8  ;;  %8281 = vmatpush1.bf16.msra.mxu1 %v9380_v4  ;;  %v9669_v1 = vcombine.high %v3384_v58, %v3408_v59  ;;  %v3432_v48 = vld [vmem:[#allocation13 + $0x13f8] sm:$0xff]  ;;  %v3435_v8 = vld [vmem:[#allocation13 + $0x1410] sm:$0xff]  ;;  %v9668_v7 = vcombine.low %v3384_v58, %v3408_v59  ;;  %v2930_v50 = vld [vmem:[#allocation13 + $0x448] sm:$0xff] }
 0x600   :  { %8404 = vmatpush1.bf16.msra.mxu0 %v9386_v9  ;;  %8282 = vmatprep.subr.bf16.mxu1 %v9429_v10  ;;  %v3456_v4 = vld [vmem:[#allocation13 + $0x14b8] sm:$0xff]  ;;  %v9674_v9 = vcombine.low %v3387_v61, %v3411_v62  ;;  %v9723_v11 = vcombine.high %v3435_v8, %v3459_v5  ;;  %v9193_v59 = vcombine.high %v2906_v17, %v2930_v50  ;;  %v2954_v62 = vld [vmem:[#allocation13 + $0x508] sm:$0xff] }
 0x601   :  { %8405 = vmatprep.subr.bf16.mxu0 %v9435_v6  ;;  %v9717_v10 = vcombine.high %v3432_v48, %v3456_v4  ;;  %v3480_v6 = vld [vmem:[#allocation13 + $0x1578] sm:$0xff]  ;;  %v9716_v15 = vcombine.low %v3432_v48, %v3456_v4 }
 0x602   :  { %v9764_v27 = vcombine.low %v3480_v6, %v3504_v12 }
 0x603   :  { %8283 = vmatpush1.bf16.msra.mxu1 %v9428_v16  ;;  %v9722_v16 = vcombine.low %v3435_v8, %v3459_v5  ;;  %v3002_v5 = vld [vmem:[#allocation13 + $0x688] sm:$0xff] }
 0x604   :  { %8406 = vmatpush1.bf16.msra.mxu0 %v9434_v22  ;;  %8284 = vmatprep.subr.bf16.mxu1 %v9477_v19  ;;  %v9765_v22 = vcombine.high %v3480_v6, %v3504_v12  ;;  %v9771_v19 = vcombine.high %v3483_v13, %v3507_v14 }
 0x605   :  { %8407 = vmatprep.subr.bf16.mxu0 %v9483_v53  ;;  %v3528_v53 = vld [vmem:[#allocation13 + $0x16f8] sm:$0xff] }
 0x606   :  { %v10399_v34 = vpop.eup %10398  ;;  %v9812_v35 = vcombine.low %v3528_v53, %v3552_v49 }
 0x607   :  { %v10401_v37 = vpop.eup %10400  ;;  %8699 = vst [vmem:[%s11270_s9 + $0x70] sm:$0xff] %v10399_v34  ;;  %8285 = vmatpush1.bf16.msra.mxu1 %v9476_v28  ;;  %v9770_v28 = vcombine.low %v3483_v13, %v3507_v14  ;;  %v2837_v34 = vld [vmem:[#allocation13 + $0x160] sm:$0xff]  ;;  %v3050_v14 = vld [vmem:[#allocation13 + $0x808] sm:$0xff] }
 0x608   :  { %v10403_v39 = vpop.eup %10402  ;;  %8705 = vst [vmem:[%s11270_s9 + $0xa0] sm:$0xff] %v10401_v37  ;;  %8408 = vmatpush1.bf16.msra.mxu0 %v9482_v29  ;;  %8286 = vmatprep.subr.bf16.mxu1 %v9525_v30  ;;  %v9813_v29 = vcombine.high %v3528_v53, %v3552_v49  ;;  %v9819_v30 = vcombine.high %v3531_v46, %v3555_v44  ;;  %v11109_v49 = vld [vmem:[#allocation15 + $0x18] sm:$0xff] }
 0x609   :  { %v10405_v18 = vpop.eup %10404  ;;  %8700 = vst [vmem:[%s11270_s9 + $0x78] sm:$0xff] %v10403_v39  ;;  %8409 = vmatprep.subr.bf16.mxu0 %v9531_v31  ;;  %v2810_v31 = vld [vmem:[#allocation13 + $0x88] sm:$0xff]  ;;  %v9102_v20 = vcombine.low %v2813_v33, %v2837_v34 }
 0x60a   :  { %8706 = vst [vmem:[%s11270_s9 + $0xa8] sm:$0xff] %v10405_v18  ;;  %v9097_v37 = vcombine.high %v2810_v31, %v2834_v32  ;;  %v2858_v39 = vld [vmem:[#allocation13 + $0x208] sm:$0xff]  ;;  %v2861_v18 = vld [vmem:[#allocation13 + $0x220] sm:$0xff] }
 0x60b   :  { %8287 = vmatpush1.bf16.msra.mxu1 %v9524_v38  ;;  %v9103_v38 = vcombine.high %v2813_v33, %v2837_v34  ;;  %v3652_v33 = vrot.slane %v11061_v54, %v10891_v23 }
 0x60c   :  { %8410 = vmatpush1.bf16.msra.mxu0 %v9530_v40  ;;  %8288 = vmatprep.subr.bf16.mxu1 %v9573_v41  ;;  %v2882_v40 = vld [vmem:[#allocation13 + $0x2c8] sm:$0xff]  ;;  %v9096_v41 = vcombine.low %v2810_v31, %v2834_v32  ;;  %v3125_v31 = vld [vmem:[#allocation13 + $0xa60] sm:$0xff]  ;;  %v3672_v32 = vrot.slane %v11109_v49, %v10894_v24 }
 0x60d   :  { %8411 = vmatprep.subr.bf16.mxu0 %v9579_v42  ;;  %v2885_v42 = vld [vmem:[#allocation13 + $0x2e0] sm:$0xff]  ;;  %v9145_v43 = vcombine.high %v2858_v39, %v2882_v40 }
 0x60e   :  { %v9150_v58 = vcombine.low %v2861_v18, %v2885_v42 }
 0x60f   :  { %8289 = vmatpush1.bf16.msra.mxu1 %v9572_v47  ;;  %v9151_v47 = vcombine.high %v2861_v18, %v2885_v42 }
 0x610   :  { %8412 = vmatpush1.bf16.msra.mxu0 %v9578_v51  ;;  %8290 = vmatprep.subr.bf16.mxu1 %v9621_v55  ;;  %v2909_v51 = vld [vmem:[#allocation13 + $0x3a0] sm:$0xff] }
 0x611   :  { %8413 = vmatprep.subr.bf16.mxu0 %v9627_v57  ;;  %v2933_v55 = vld [vmem:[#allocation13 + $0x460] sm:$0xff]  ;;  %v9144_v57 = vcombine.low %v2858_v39, %v2882_v40  ;;  %v3146_v40 = vld [vmem:[#allocation13 + $0xb08] sm:$0xff] }
 0x612   :  { %v9199_v61 = vcombine.high %v2909_v51, %v2933_v55  ;;  %v9198_v48 = vcombine.low %v2909_v51, %v2933_v55 }
 0x613   :  { %8291 = vmatpush1.bf16.msra.mxu1 %v9620_v63  ;;  %v2978_v63 = vld [vmem:[#allocation13 + $0x5c8] sm:$0xff] }
 0x614   :  { %8414 = vmatpush1.bf16.msra.mxu0 %v9626_v0  ;;  %8292 = vmatprep.subr.bf16.mxu1 %v9669_v1  ;;  %v2957_v0 = vld [vmem:[#allocation13 + $0x520] sm:$0xff]  ;;  %v9241_v4 = vcombine.high %v2954_v62, %v2978_v63 }
 0x615   :  { %8415 = vmatprep.subr.bf16.mxu0 %v9675_v2  ;;  %v2981_v1 = vld [vmem:[#allocation13 + $0x5e0] sm:$0xff]  ;;  %v9192_v2 = vcombine.low %v2906_v17, %v2930_v50 }
 0x616   :  { %v9247_v8 = vcombine.high %v2957_v0, %v2981_v1  ;;  %v9246_v6 = vcombine.low %v2957_v0, %v2981_v1  ;;  %v3173_v17 = vld [vmem:[#allocation13 + $0xbe0] sm:$0xff]  ;;  %v3194_v1 = vld [vmem:[#allocation13 + $0xc88] sm:$0xff] }
 0x617   :  { %8293 = vmatpush1.bf16.msra.mxu1 %v9668_v7  ;;  %v3026_v7 = vld [vmem:[#allocation13 + $0x748] sm:$0xff] }
 0x618   :  { %8416 = vmatpush1.bf16.msra.mxu0 %v9674_v9  ;;  %8294 = vmatprep.subr.bf16.mxu1 %v9717_v10  ;;  %v3005_v9 = vld [vmem:[#allocation13 + $0x6a0] sm:$0xff]  ;;  %v9289_v12 = vcombine.high %v3002_v5, %v3026_v7 }
 0x619   :  { %8417 = vmatprep.subr.bf16.mxu0 %v9723_v11  ;;  %v3029_v10 = vld [vmem:[#allocation13 + $0x760] sm:$0xff]  ;;  %v9240_v11 = vcombine.low %v2954_v62, %v2978_v63 }
 0x61a   :  { %v9295_v13 = vcombine.high %v3005_v9, %v3029_v10  ;;  %v9294_v53 = vcombine.low %v3005_v9, %v3029_v10  ;;  %v3242_v10 = vld [vmem:[#allocation13 + $0xe08] sm:$0xff] }
 0x61b   :  { %8295 = vmatpush1.bf16.msra.mxu1 %v9716_v15  ;;  %v3074_v15 = vld [vmem:[#allocation13 + $0x8c8] sm:$0xff] }
 0x61c   :  { %8418 = vmatpush1.bf16.msra.mxu0 %v9722_v16  ;;  %8296 = vmatprep.subr.bf16.mxu1 %v9765_v22  ;;  %v3053_v16 = vld [vmem:[#allocation13 + $0x820] sm:$0xff]  ;;  %v9337_v46 = vcombine.high %v3050_v14, %v3074_v15  ;;  %v9336_v34 = vcombine.low %v3050_v14, %v3074_v15 }
 0x61d   :  { %8419 = vmatprep.subr.bf16.mxu0 %v9771_v19  ;;  %v3077_v22 = vld [vmem:[#allocation13 + $0x8e0] sm:$0xff]  ;;  %v9288_v19 = vcombine.low %v3002_v5, %v3026_v7 }
 0x61e   :  { %v9343_v44 = vcombine.high %v3053_v16, %v3077_v22 }
 0x61f   :  { %8297 = vmatpush1.bf16.msra.mxu1 %v9764_v27  ;;  %v3098_v27 = vld [vmem:[#allocation13 + $0x988] sm:$0xff] }
 0x620   :  { %8420 = vmatpush1.bf16.msra.mxu0 %v9770_v28  ;;  %8298 = vmatprep.subr.bf16.mxu1 %v9813_v29  ;;  %v3122_v28 = vld [vmem:[#allocation13 + $0xa48] sm:$0xff]  ;;  %v3648_v29 = vrot.slane %v11061_v54, %v10887_v21 }
 0x621   :  { %8421 = vmatprep.subr.bf16.mxu0 %v9819_v30  ;;  %v3101_v30 = vld [vmem:[#allocation13 + $0x9a0] sm:$0xff]  ;;  %v9384_v55 = vcombine.low %v3098_v27, %v3122_v28 }
 0x622   :  { %v9391_v39 = vcombine.high %v3101_v30, %v3125_v31 }
 0x623   :  { %8299 = vmatpush1.bf16.msra.mxu1 %v9812_v35  ;;  %v3676_v35 = vrot.slane %v11109_v49, %v10897_v25 }
 0x624   :  { %8422 = vmatpush1.bf16.msra.mxu0 %v9818_v36  ;;  %8350 = vmatprep.subr.bf16.mxu1 %v9097_v37  ;;  %v9342_v36 = vcombine.low %v3053_v16, %v3077_v22  ;;  %v9385_v37 = vcombine.high %v3098_v27, %v3122_v28  ;;  %v3290_v22 = vld [vmem:[#allocation13 + $0xf88] sm:$0xff] }
 0x625   :  { %8473 = vmatprep.subr.bf16.mxu0 %v9103_v38 }
 0x626   :  { %8301 = vmatmul.mubr.bf16.vlgmr.msra.gmra.mrb[36].mxu1 %v10945_v52 }
 0x627   :  { %8424 = vmatmul.mubr.bf16.vlgmr.msra.gmra.mrb[40].mxu0 %v10945_v52  ;;  %8351 = vmatpush1.bf16.msra.mxu1 %v9096_v41  ;;  %v3170_v41 = vld [vmem:[#allocation13 + $0xbc8] sm:$0xff] }
 0x628   :  { %8382 = vmatprep.mubr.bf16.mxu1 %v10947_v3  ;;  %8474 = vmatpush1.bf16.msra.mxu0 %v9102_v20  ;;  %v9433_v62 = vcombine.high %v3146_v40, %v3170_v41 }
 0x629   :  { %8505 = vmatprep.mubr.bf16.mxu0 %v10947_v3  ;;  %8352 = vmatprep.subr.bf16.mxu1 %v9145_v43  ;;  %v3149_v43 = vld [vmem:[#allocation13 + $0xb20] sm:$0xff] }
 0x62a   :  { %8475 = vmatprep.subr.bf16.mxu0 %v9151_v47  ;;  %v9439_v0 = vcombine.high %v3149_v43, %v3173_v17  ;;  %v9438_v5 = vcombine.low %v3149_v43, %v3173_v17  ;;  %v3413_v43 = vld [vmem:[#allocation13 + $0x1360] sm:$0xff] }
 0x62b   :  { %8353 = vmatpush1.bf16.msra.mxu1 %v9144_v57 }
 0x62c   :  { %8476 = vmatpush1.bf16.msra.mxu0 %v9150_v58  ;;  %8354 = vmatprep.subr.bf16.mxu1 %v9193_v59 }
 0x62d   :  { %8477 = vmatprep.subr.bf16.mxu0 %v9199_v61  ;;  %v9390_v61 = vcombine.low %v3101_v30, %v3125_v31 }
 0x62f   :  { %8355 = vmatpush1.bf16.msra.mxu1 %v9192_v2  ;;  %v3218_v2 = vld [vmem:[#allocation13 + $0xd48] sm:$0xff] }
 0x630   :  { %8478 = vmatpush1.bf16.msra.mxu0 %v9198_v48  ;;  %8356 = vmatprep.subr.bf16.mxu1 %v9241_v4  ;;  %v3197_v48 = vld [vmem:[#allocation13 + $0xca0] sm:$0xff]  ;;  %v9481_v7 = vcombine.high %v3194_v1, %v3218_v2 }
 0x631   :  { %8479 = vmatprep.subr.bf16.mxu0 %v9247_v8  ;;  %v3221_v4 = vld [vmem:[#allocation13 + $0xd60] sm:$0xff]  ;;  %v9432_v8 = vcombine.low %v3146_v40, %v3170_v41 }
 0x632   :  { %v9487_v9 = vcombine.high %v3197_v48, %v3221_v4  ;;  %v9486_v14 = vcombine.low %v3197_v48, %v3221_v4  ;;  %v3509_v48 = vld [vmem:[#allocation13 + $0x1660] sm:$0xff] }
 0x633   :  { %8357 = vmatpush1.bf16.msra.mxu1 %v9240_v11  ;;  %v3266_v11 = vld [vmem:[#allocation13 + $0xec8] sm:$0xff] }
 0x634   :  { %8480 = vmatpush1.bf16.msra.mxu0 %v9246_v6  ;;  %8358 = vmatprep.subr.bf16.mxu1 %v9289_v12  ;;  %v3245_v6 = vld [vmem:[#allocation13 + $0xe20] sm:$0xff]  ;;  %v9529_v15 = vcombine.high %v3242_v10, %v3266_v11  ;;  %v9528_v28 = vcombine.low %v3242_v10, %v3266_v11  ;;  %v3554_v10 = vld [vmem:[#allocation13 + $0x17c8] sm:$0xff] }
 0x635   :  { %8481 = vmatprep.subr.bf16.mxu0 %v9295_v13  ;;  %v3269_v12 = vld [vmem:[#allocation13 + $0xee0] sm:$0xff]  ;;  %v9480_v13 = vcombine.low %v3194_v1, %v3218_v2  ;;  %v3506_v1 = vld [vmem:[#allocation13 + $0x1648] sm:$0xff] }
 0x636   :  { %v9535_v16 = vcombine.high %v3245_v6, %v3269_v12  ;;  %v9534_v30 = vcombine.low %v3245_v6, %v3269_v12  ;;  %v3485_v2 = vld [vmem:[#allocation13 + $0x15a0] sm:$0xff] }
 0x637   :  { %8359 = vmatpush1.bf16.msra.mxu1 %v9288_v19  ;;  %v3314_v19 = vld [vmem:[#allocation13 + $0x1048] sm:$0xff]  ;;  %v3533_v11 = vld [vmem:[#allocation13 + $0x1720] sm:$0xff] }
 0x638   :  { %8482 = vmatpush1.bf16.msra.mxu0 %v9294_v53  ;;  %8360 = vmatprep.subr.bf16.mxu1 %v9337_v46  ;;  %v3293_v46 = vld [vmem:[#allocation13 + $0xfa0] sm:$0xff]  ;;  %v9577_v31 = vcombine.high %v3290_v22, %v3314_v19 }
 0x639   :  { %v8056_v38 = vpop.f32.mrb[24].mxu1  ;;  %8483 = vmatprep.subr.bf16.mxu0 %v9343_v44  ;;  %v3317_v44 = vld [vmem:[#allocation13 + $0x1060] sm:$0xff] }
 0x63a   :  { %v8057_v18 = vadd.f32 %v8056_v38, %v3648_v29  ;;  %v8179_v42 = vpop.f32.mrb[28].mxu0  ;;  %v8058_v20 = vpop.f32.mrb[25].mxu1  ;;  %v9576_v38 = vcombine.low %v3290_v22, %v3314_v19  ;;  %v3557_v6 = vld [vmem:[#allocation13 + $0x17e0] sm:$0xff]  ;;  %v2836_v22 = vld [vmem:[#allocation13 + $0x158] sm:$0xff]  ;;  %v2815_v19 = vld [vmem:[#allocation13 + $0xb0] sm:$0xff] }
 0x63b   :  { %v8180_v50 = vadd.f32 %v8179_v42, %v3672_v32  ;;  %v8059_v54 = vadd.f32 %v8058_v20, %v3652_v33  ;;  %v8181_v47 = vpop.f32.mrb[29].mxu0  ;;  %v8060_v51 = vpop.f32.mrb[26].mxu1  ;;  %8361 = vmatpush1.bf16.msra.mxu1 %v9336_v34  ;;  %v9583_v33 = vcombine.high %v3293_v46, %v3317_v44  ;;  %v3338_v34 = vld [vmem:[#allocation13 + $0x1108] sm:$0xff]  ;;  %v3389_v20 = vld [vmem:[#allocation13 + $0x12a0] sm:$0xff] }
 0x63c   :  { %10406 = vtanh.f32 %v8057_v18  ;;  %v8182_v57 = vadd.f32 %v8181_v47, %v3676_v35  ;;  %v8183_v58 = vpop.f32.mrb[30].mxu0  ;;  %8484 = vmatpush1.bf16.msra.mxu0 %v9342_v36  ;;  %v8061_v59 = vpop.f32.mrb[27].mxu1  ;;  %8362 = vmatprep.subr.bf16.mxu1 %v9385_v37  ;;  %v3362_v35 = vld [vmem:[#allocation13 + $0x11c8] sm:$0xff]  ;;  %v3341_v36 = vld [vmem:[#allocation13 + $0x1120] sm:$0xff]  ;;  %v9679_v47 = vcombine.high %v3389_v20, %v3413_v43 }
 0x63d   :  { %10408 = vtanh.f32 %v8180_v50  ;;  %v8184_v63 = vpop.f32.mrb[31].mxu0  ;;  %8485 = vmatprep.subr.bf16.mxu0 %v9391_v39  ;;  %v3365_v37 = vld [vmem:[#allocation13 + $0x11e0] sm:$0xff]  ;;  %v9582_v39 = vcombine.low %v3293_v46, %v3317_v44  ;;  %v9625_v40 = vcombine.high %v3338_v34, %v3362_v35  ;;  %v3386_v18 = vld [vmem:[#allocation13 + $0x1288] sm:$0xff]  ;;  %v9624_v17 = vcombine.low %v3338_v34, %v3362_v35 }
 0x63e   :  { %10410 = vtanh.f32 %v8059_v54  ;;  %v9631_v41 = vcombine.high %v3341_v36, %v3365_v37  ;;  %v3410_v42 = vld [vmem:[#allocation13 + $0x1348] sm:$0xff]  ;;  %v9630_v50 = vcombine.low %v3341_v36, %v3365_v37  ;;  %v3461_v58 = vld [vmem:[#allocation13 + $0x14e0] sm:$0xff]  ;;  %v9822_v44 = vcombine.low %v3533_v11, %v3557_v6  ;;  %v2908_v36 = vld [vmem:[#allocation13 + $0x398] sm:$0xff] }
 0x63f   :  { %10412 = vtanh.f32 %v8182_v57  ;;  %8363 = vmatpush1.bf16.msra.mxu1 %v9384_v55  ;;  %v9673_v54 = vcombine.high %v3386_v18, %v3410_v42  ;;  %v3434_v51 = vld [vmem:[#allocation13 + $0x1408] sm:$0xff]  ;;  %v3437_v57 = vld [vmem:[#allocation13 + $0x1420] sm:$0xff]  ;;  %v9672_v59 = vcombine.low %v3386_v18, %v3410_v42  ;;  %v2932_v37 = vld [vmem:[#allocation13 + $0x458] sm:$0xff] }
 0x640   :  { %8486 = vmatpush1.bf16.msra.mxu0 %v9390_v61  ;;  %8364 = vmatprep.subr.bf16.mxu1 %v9433_v62  ;;  %v3458_v55 = vld [vmem:[#allocation13 + $0x14c8] sm:$0xff]  ;;  %v9678_v61 = vcombine.low %v3389_v20, %v3413_v43  ;;  %v9727_v63 = vcombine.high %v3437_v57, %v3461_v58  ;;  %v9197_v42 = vcombine.high %v2908_v36, %v2932_v37  ;;  %v2956_v43 = vld [vmem:[#allocation13 + $0x518] sm:$0xff] }
 0x641   :  { %8487 = vmatprep.subr.bf16.mxu0 %v9439_v0  ;;  %v9721_v62 = vcombine.high %v3434_v51, %v3458_v55  ;;  %v3482_v0 = vld [vmem:[#allocation13 + $0x1588] sm:$0xff]  ;;  %v9720_v4 = vcombine.low %v3434_v51, %v3458_v55 }
 0x642   :  { %v9768_v12 = vcombine.low %v3482_v0, %v3506_v1 }
 0x643   :  { %8365 = vmatpush1.bf16.msra.mxu1 %v9432_v8  ;;  %v9726_v8 = vcombine.low %v3437_v57, %v3461_v58  ;;  %v3004_v58 = vld [vmem:[#allocation13 + $0x698] sm:$0xff] }
 0x644   :  { %8488 = vmatpush1.bf16.msra.mxu0 %v9438_v5  ;;  %8366 = vmatprep.subr.bf16.mxu1 %v9481_v7  ;;  %v9769_v5 = vcombine.high %v3482_v0, %v3506_v1  ;;  %v9775_v7 = vcombine.high %v3485_v2, %v3509_v48 }
 0x645   :  { %8489 = vmatprep.subr.bf16.mxu0 %v9487_v9  ;;  %v3530_v9 = vld [vmem:[#allocation13 + $0x1708] sm:$0xff] }
 0x646   :  { %v10407_v53 = vpop.eup %10406  ;;  %v9816_v46 = vcombine.low %v3530_v9, %v3554_v10 }
 0x647   :  { %v10409_v27 = vpop.eup %10408  ;;  %8703 = vst [vmem:[%s11270_s9 + $0x90] sm:$0xff] %v10407_v53  ;;  %8367 = vmatpush1.bf16.msra.mxu1 %v9480_v13  ;;  %v9774_v13 = vcombine.low %v3485_v2, %v3509_v48  ;;  %v2839_v53 = vld [vmem:[#allocation13 + $0x170] sm:$0xff]  ;;  %v3052_v48 = vld [vmem:[#allocation13 + $0x818] sm:$0xff] }
 0x648   :  { %v10411_v29 = vpop.eup %10410  ;;  %8709 = vst [vmem:[%s11270_s9 + $0xc0] sm:$0xff] %v10409_v27  ;;  %8490 = vmatpush1.bf16.msra.mxu0 %v9486_v14  ;;  %8368 = vmatprep.subr.bf16.mxu1 %v9529_v15  ;;  %v9817_v14 = vcombine.high %v3530_v9, %v3554_v10  ;;  %v9823_v15 = vcombine.high %v3533_v11, %v3557_v6  ;;  %v3100_v6 = vld [vmem:[#allocation13 + $0x998] sm:$0xff] }
 0x649   :  { %v10413_v32 = vpop.eup %10412  ;;  %8704 = vst [vmem:[%s11270_s9 + $0x98] sm:$0xff] %v10411_v29  ;;  %8491 = vmatprep.subr.bf16.mxu0 %v9535_v16  ;;  %v2812_v16 = vld [vmem:[#allocation13 + $0x98] sm:$0xff]  ;;  %v9106_v34 = vcombine.low %v2815_v19, %v2839_v53 }
 0x64a   :  { %8710 = vst [vmem:[%s11270_s9 + $0xc8] sm:$0xff] %v10413_v32  ;;  %v9101_v27 = vcombine.high %v2812_v16, %v2836_v22  ;;  %v2860_v29 = vld [vmem:[#allocation13 + $0x218] sm:$0xff]  ;;  %v2863_v32 = vld [vmem:[#allocation13 + $0x230] sm:$0xff] }
 0x64b   :  { %8369 = vmatpush1.bf16.msra.mxu1 %v9528_v28  ;;  %v9107_v28 = vcombine.high %v2815_v19, %v2839_v53 }
 0x64c   :  { %8492 = vmatpush1.bf16.msra.mxu0 %v9534_v30  ;;  %8370 = vmatprep.subr.bf16.mxu1 %v9577_v31  ;;  %v2884_v30 = vld [vmem:[#allocation13 + $0x2d8] sm:$0xff]  ;;  %v9100_v31 = vcombine.low %v2812_v16, %v2836_v22  ;;  %v3127_v16 = vld [vmem:[#allocation13 + $0xa70] sm:$0xff]  ;;  %v3688_v22 = vrot.slane %v11109_v49, %v10974_v26 }
 0x64d   :  { %8493 = vmatprep.subr.bf16.mxu0 %v9583_v33  ;;  %v2887_v33 = vld [vmem:[#allocation13 + $0x2f0] sm:$0xff]  ;;  %v9149_v35 = vcombine.high %v2860_v29, %v2884_v30 }
 0x64e   :  { %v9154_v18 = vcombine.low %v2863_v32, %v2887_v33 }
 0x64f   :  { %8371 = vmatpush1.bf16.msra.mxu1 %v9576_v38  ;;  %v9155_v38 = vcombine.high %v2863_v32, %v2887_v33 }
 0x650   :  { %8494 = vmatpush1.bf16.msra.mxu0 %v9582_v39  ;;  %8372 = vmatprep.subr.bf16.mxu1 %v9625_v40  ;;  %v2911_v39 = vld [vmem:[#allocation13 + $0x3b0] sm:$0xff] }
 0x651   :  { %8495 = vmatprep.subr.bf16.mxu0 %v9631_v41  ;;  %v2935_v40 = vld [vmem:[#allocation13 + $0x470] sm:$0xff]  ;;  %v9148_v41 = vcombine.low %v2860_v29, %v2884_v30  ;;  %v3148_v30 = vld [vmem:[#allocation13 + $0xb18] sm:$0xff] }
 0x652   :  { %v9203_v20 = vcombine.high %v2911_v39, %v2935_v40  ;;  %v9202_v51 = vcombine.low %v2911_v39, %v2935_v40 }
 0x653   :  { %8373 = vmatpush1.bf16.msra.mxu1 %v9624_v17  ;;  %v2980_v17 = vld [vmem:[#allocation13 + $0x5d8] sm:$0xff] }
 0x654   :  { %8496 = vmatpush1.bf16.msra.mxu0 %v9630_v50  ;;  %8374 = vmatprep.subr.bf16.mxu1 %v9673_v54  ;;  %v2959_v50 = vld [vmem:[#allocation13 + $0x530] sm:$0xff]  ;;  %v9245_v55 = vcombine.high %v2956_v43, %v2980_v17 }
 0x655   :  { %8497 = vmatprep.subr.bf16.mxu0 %v9679_v47  ;;  %v2983_v54 = vld [vmem:[#allocation13 + $0x5f0] sm:$0xff]  ;;  %v9196_v47 = vcombine.low %v2908_v36, %v2932_v37 }
 0x656   :  { %v9251_v57 = vcombine.high %v2959_v50, %v2983_v54  ;;  %v9250_v0 = vcombine.low %v2959_v50, %v2983_v54  ;;  %v3175_v36 = vld [vmem:[#allocation13 + $0xbf0] sm:$0xff] }
 0x657   :  { %8375 = vmatpush1.bf16.msra.mxu1 %v9672_v59  ;;  %v3028_v59 = vld [vmem:[#allocation13 + $0x758] sm:$0xff] }
 0x658   :  { %8498 = vmatpush1.bf16.msra.mxu0 %v9678_v61  ;;  %8376 = vmatprep.subr.bf16.mxu1 %v9721_v62  ;;  %v3007_v61 = vld [vmem:[#allocation13 + $0x6b0] sm:$0xff]  ;;  %v9293_v1 = vcombine.high %v3004_v58, %v3028_v59 }
 0x659   :  { %8499 = vmatprep.subr.bf16.mxu0 %v9727_v63  ;;  %v3031_v62 = vld [vmem:[#allocation13 + $0x770] sm:$0xff]  ;;  %v9244_v63 = vcombine.low %v2956_v43, %v2980_v17 }
 0x65a   :  { %v9299_v2 = vcombine.high %v3007_v61, %v3031_v62  ;;  %v9298_v9 = vcombine.low %v3007_v61, %v3031_v62 }
 0x65b   :  { %8377 = vmatpush1.bf16.msra.mxu1 %v9720_v4  ;;  %v3076_v4 = vld [vmem:[#allocation13 + $0x8d8] sm:$0xff] }
 0x65c   :  { %8500 = vmatpush1.bf16.msra.mxu0 %v9726_v8  ;;  %8378 = vmatprep.subr.bf16.mxu1 %v9769_v5  ;;  %v3055_v8 = vld [vmem:[#allocation13 + $0x830] sm:$0xff]  ;;  %v9341_v10 = vcombine.high %v3052_v48, %v3076_v4  ;;  %v9340_v53 = vcombine.low %v3052_v48, %v3076_v4 }
 0x65d   :  { %8501 = vmatprep.subr.bf16.mxu0 %v9775_v7  ;;  %v3079_v5 = vld [vmem:[#allocation13 + $0x8f0] sm:$0xff]  ;;  %v9292_v7 = vcombine.low %v3004_v58, %v3028_v59 }
 0x65e   :  { %v9347_v11 = vcombine.high %v3055_v8, %v3079_v5 }
 0x65f   :  { %8379 = vmatpush1.bf16.msra.mxu1 %v9768_v12  ;;  %v3124_v12 = vld [vmem:[#allocation13 + $0xa58] sm:$0xff] }
 0x660   :  { %8502 = vmatpush1.bf16.msra.mxu0 %v9774_v13  ;;  %8380 = vmatprep.subr.bf16.mxu1 %v9817_v14  ;;  %v10463_v13 = vld [vmem:[#allocation15 + $0x10] sm:$0xff] }
 0x661   :  { %8503 = vmatprep.subr.bf16.mxu0 %v9823_v15  ;;  %v3664_v14 = vrot.slane %v10463_v13, %v11032_v56  ;;  %v3103_v15 = vld [vmem:[#allocation13 + $0x9b0] sm:$0xff]  ;;  %v3668_v19 = vrot.slane %v10463_v13, %v11035_v60 }
 0x662   :  { %v9395_v29 = vcombine.high %v3103_v15, %v3127_v16  ;;  %v9394_v43 = vcombine.low %v3103_v15, %v3127_v16 }
 0x663   :  { %8381 = vmatpush1.bf16.msra.mxu1 %v9816_v46  ;;  %v3692_v46 = vrot.slane %v11109_v49, %v10979_v45 }
 0x664   :  { %8504 = vmatpush1.bf16.msra.mxu0 %v9822_v44  ;;  %8432 = vmatprep.subr.bf16.mxu1 %v9101_v27  ;;  %v9346_v44 = vcombine.low %v3055_v8, %v3079_v5  ;;  %v9389_v27 = vcombine.high %v3100_v6, %v3124_v12 }
 0x665   :  { %8555 = vmatprep.subr.bf16.mxu0 %v9107_v28 }
 0x666   :  { %8383 = vmatmul.mubr.bf16.vlgmr.msra.gmra.mrb[40].mxu1 %v10945_v52 }
 0x667   :  { %8506 = vmatmul.mubr.bf16.vlgmr.msra.gmra.mrb[44].mxu0 %v10945_v52  ;;  %8433 = vmatpush1.bf16.msra.mxu1 %v9100_v31  ;;  %v3172_v31 = vld [vmem:[#allocation13 + $0xbd8] sm:$0xff] }
 0x668   :  { %8464 = vmatprep.mubr.bf16.mxu1 %v10947_v3  ;;  %8556 = vmatpush1.bf16.msra.mxu0 %v9106_v34  ;;  %v9437_v17 = vcombine.high %v3148_v30, %v3172_v31  ;;  %v9436_v58 = vcombine.low %v3148_v30, %v3172_v31 }
 0x669   :  { %8587 = vmatprep.mubr.bf16.mxu0 %v10947_v3  ;;  %8434 = vmatprep.subr.bf16.mxu1 %v9149_v35  ;;  %v3151_v35 = vld [vmem:[#allocation13 + $0xb30] sm:$0xff] }
 0x66a   :  { %8557 = vmatprep.subr.bf16.mxu0 %v9155_v38  ;;  %v9443_v54 = vcombine.high %v3151_v35, %v3175_v36  ;;  %v9442_v59 = vcombine.low %v3151_v35, %v3175_v36  ;;  %v3415_v35 = vld [vmem:[#allocation13 + $0x1370] sm:$0xff] }
 0x66b   :  { %8435 = vmatpush1.bf16.msra.mxu1 %v9148_v41  ;;  %v9388_v41 = vcombine.low %v3100_v6, %v3124_v12  ;;  %v3319_v6 = vld [vmem:[#allocation13 + $0x1070] sm:$0xff] }
 0x66c   :  { %8558 = vmatpush1.bf16.msra.mxu0 %v9154_v18  ;;  %8436 = vmatprep.subr.bf16.mxu1 %v9197_v42 }
 0x66d   :  { %8559 = vmatprep.subr.bf16.mxu0 %v9203_v20 }
 0x66f   :  { %8437 = vmatpush1.bf16.msra.mxu1 %v9196_v47  ;;  %v3196_v47 = vld [vmem:[#allocation13 + $0xc98] sm:$0xff] }
 0x670   :  { %8560 = vmatpush1.bf16.msra.mxu0 %v9202_v51  ;;  %8438 = vmatprep.subr.bf16.mxu1 %v9245_v55  ;;  %v3220_v51 = vld [vmem:[#allocation13 + $0xd58] sm:$0xff]  ;;  %v3199_v55 = vld [vmem:[#allocation13 + $0xcb0] sm:$0xff] }
 0x671   :  { %8561 = vmatprep.subr.bf16.mxu0 %v9251_v57  ;;  %v3223_v57 = vld [vmem:[#allocation13 + $0xd70] sm:$0xff]  ;;  %v9485_v61 = vcombine.high %v3196_v47, %v3220_v51  ;;  %v9484_v48 = vcombine.low %v3196_v47, %v3220_v51  ;;  %v3508_v47 = vld [vmem:[#allocation13 + $0x1658] sm:$0xff] }
 0x672   :  { %v9491_v62 = vcombine.high %v3199_v55, %v3223_v57  ;;  %v9490_v4 = vcombine.low %v3199_v55, %v3223_v57  ;;  %v3487_v51 = vld [vmem:[#allocation13 + $0x15b0] sm:$0xff] }
 0x673   :  { %8439 = vmatpush1.bf16.msra.mxu1 %v9244_v63  ;;  %v3244_v63 = vld [vmem:[#allocation13 + $0xe18] sm:$0xff]  ;;  %v3511_v55 = vld [vmem:[#allocation13 + $0x1670] sm:$0xff] }
 0x674   :  { %8562 = vmatpush1.bf16.msra.mxu0 %v9250_v0  ;;  %8440 = vmatprep.subr.bf16.mxu1 %v9293_v1  ;;  %v3268_v0 = vld [vmem:[#allocation13 + $0xed8] sm:$0xff]  ;;  %v3247_v1 = vld [vmem:[#allocation13 + $0xe30] sm:$0xff] }
 0x675   :  { %8563 = vmatprep.subr.bf16.mxu0 %v9299_v2  ;;  %v3271_v2 = vld [vmem:[#allocation13 + $0xef0] sm:$0xff]  ;;  %v9533_v8 = vcombine.high %v3244_v63, %v3268_v0  ;;  %v9532_v13 = vcombine.low %v3244_v63, %v3268_v0  ;;  %v3556_v63 = vld [vmem:[#allocation13 + $0x17d8] sm:$0xff] }
 0x676   :  { %v9539_v5 = vcombine.high %v3247_v1, %v3271_v2  ;;  %v9538_v15 = vcombine.low %v3247_v1, %v3271_v2  ;;  %v3535_v0 = vld [vmem:[#allocation13 + $0x1730] sm:$0xff] }
 0x677   :  { %8441 = vmatpush1.bf16.msra.mxu1 %v9292_v7  ;;  %v3292_v7 = vld [vmem:[#allocation13 + $0xf98] sm:$0xff]  ;;  %v3559_v1 = vld [vmem:[#allocation13 + $0x17f0] sm:$0xff] }
 0x678   :  { %8564 = vmatpush1.bf16.msra.mxu0 %v9298_v9  ;;  %8442 = vmatprep.subr.bf16.mxu1 %v9341_v10  ;;  %v3316_v9 = vld [vmem:[#allocation13 + $0x1058] sm:$0xff] }
 0x679   :  { %v8138_v28 = vpop.f32.mrb[28].mxu1  ;;  %8565 = vmatprep.subr.bf16.mxu0 %v9347_v11  ;;  %v3295_v11 = vld [vmem:[#allocation13 + $0xfb0] sm:$0xff]  ;;  %v9581_v16 = vcombine.high %v3292_v7, %v3316_v9 }
 0x67a   :  { %v8139_v32 = vadd.f32 %v8138_v28, %v3664_v14  ;;  %v8261_v33 = vpop.f32.mrb[32].mxu0  ;;  %v8140_v34 = vpop.f32.mrb[29].mxu1  ;;  %v9580_v28 = vcombine.low %v3292_v7, %v3316_v9  ;;  %v2838_v7 = vld [vmem:[#allocation13 + $0x168] sm:$0xff] }
 0x67b   :  { %v8262_v37 = vadd.f32 %v8261_v33, %v3688_v22  ;;  %v8141_v38 = vadd.f32 %v8140_v34, %v3668_v19  ;;  %v8263_v39 = vpop.f32.mrb[33].mxu0  ;;  %v8142_v40 = vpop.f32.mrb[30].mxu1  ;;  %8443 = vmatpush1.bf16.msra.mxu1 %v9340_v53  ;;  %v9587_v19 = vcombine.high %v3295_v11, %v3319_v6  ;;  %v3340_v53 = vld [vmem:[#allocation13 + $0x1118] sm:$0xff]  ;;  %v3391_v34 = vld [vmem:[#allocation13 + $0x12b0] sm:$0xff] }
 0x67c   :  { %10414 = vtanh.f32 %v8139_v32  ;;  %v8264_v18 = vadd.f32 %v8263_v39, %v3692_v46  ;;  %v8265_v42 = vpop.f32.mrb[34].mxu0  ;;  %8566 = vmatpush1.bf16.msra.mxu0 %v9346_v44  ;;  %v8143_v20 = vpop.f32.mrb[31].mxu1  ;;  %8444 = vmatprep.subr.bf16.mxu1 %v9389_v27  ;;  %v3364_v46 = vld [vmem:[#allocation13 + $0x11d8] sm:$0xff]  ;;  %v3343_v44 = vld [vmem:[#allocation13 + $0x1130] sm:$0xff]  ;;  %v9683_v39 = vcombine.high %v3391_v34, %v3415_v35 }
 0x67d   :  { %10416 = vtanh.f32 %v8262_v37  ;;  %v8266_v50 = vpop.f32.mrb[35].mxu0  ;;  %8567 = vmatprep.subr.bf16.mxu0 %v9395_v29  ;;  %v3367_v27 = vld [vmem:[#allocation13 + $0x11f0] sm:$0xff]  ;;  %v9586_v29 = vcombine.low %v3295_v11, %v3319_v6  ;;  %v9629_v30 = vcombine.high %v3340_v53, %v3364_v46  ;;  %v3388_v32 = vld [vmem:[#allocation13 + $0x1298] sm:$0xff]  ;;  %v9628_v36 = vcombine.low %v3340_v53, %v3364_v46  ;;  %v2862_v6 = vld [vmem:[#allocation13 + $0x228] sm:$0xff] }
 0x67e   :  { %10418 = vtanh.f32 %v8141_v38  ;;  %v9635_v31 = vcombine.high %v3343_v44, %v3367_v27  ;;  %v3412_v33 = vld [vmem:[#allocation13 + $0x1358] sm:$0xff]  ;;  %v9634_v37 = vcombine.low %v3343_v44, %v3367_v27  ;;  %v3463_v42 = vld [vmem:[#allocation13 + $0x14f0] sm:$0xff]  ;;  %v2958_v53 = vld [vmem:[#allocation13 + $0x528] sm:$0xff] }
 0x67f   :  { %10420 = vtanh.f32 %v8264_v18  ;;  %8445 = vmatpush1.bf16.msra.mxu1 %v9388_v41  ;;  %v9677_v38 = vcombine.high %v3388_v32, %v3412_v33  ;;  %v3436_v40 = vld [vmem:[#allocation13 + $0x1418] sm:$0xff]  ;;  %v3439_v18 = vld [vmem:[#allocation13 + $0x1430] sm:$0xff]  ;;  %v9676_v20 = vcombine.low %v3388_v32, %v3412_v33  ;;  %v2982_v46 = vld [vmem:[#allocation13 + $0x5e8] sm:$0xff] }
 0x680   :  { %8568 = vmatpush1.bf16.msra.mxu0 %v9394_v43  ;;  %8446 = vmatprep.subr.bf16.mxu1 %v9437_v17  ;;  %v3460_v41 = vld [vmem:[#allocation13 + $0x14d8] sm:$0xff]  ;;  %v9682_v43 = vcombine.low %v3391_v34, %v3415_v35  ;;  %v9731_v50 = vcombine.high %v3439_v18, %v3463_v42  ;;  %v9249_v27 = vcombine.high %v2958_v53, %v2982_v46  ;;  %v3054_v32 = vld [vmem:[#allocation13 + $0x828] sm:$0xff]  ;;  %v11156_v35 = vld [vmem:[#allocation15 + $0x20] sm:$0xff] }
 0x681   :  { %8569 = vmatprep.subr.bf16.mxu0 %v9443_v54  ;;  %v9725_v17 = vcombine.high %v3436_v40, %v3460_v41  ;;  %v3484_v54 = vld [vmem:[#allocation13 + $0x1598] sm:$0xff]  ;;  %v9724_v57 = vcombine.low %v3436_v40, %v3460_v41  ;;  %v3078_v33 = vld [vmem:[#allocation13 + $0x8e8] sm:$0xff]  ;;  %v3704_v40 = vrot.slane %v11156_v35, %v10894_v24  ;;  %v3684_v41 = vrot.slane %v11109_v49, %v10891_v23 }
 0x682   :  { %v9772_v2 = vcombine.low %v3484_v54, %v3508_v47 }
 0x683   :  { %8447 = vmatpush1.bf16.msra.mxu1 %v9436_v58  ;;  %v9730_v58 = vcombine.low %v3439_v18, %v3463_v42  ;;  %v9344_v18 = vcombine.low %v3054_v32, %v3078_v33  ;;  %v3708_v42 = vrot.slane %v11156_v35, %v10897_v25 }
 0x684   :  { %8570 = vmatpush1.bf16.msra.mxu0 %v9442_v59  ;;  %8448 = vmatprep.subr.bf16.mxu1 %v9485_v61  ;;  %v9773_v59 = vcombine.high %v3484_v54, %v3508_v47  ;;  %v9779_v61 = vcombine.high %v3487_v51, %v3511_v55 }
 0x685   :  { %8571 = vmatprep.subr.bf16.mxu0 %v9491_v62  ;;  %v3532_v62 = vld [vmem:[#allocation13 + $0x1718] sm:$0xff] }
 0x686   :  { %v10415_v10 = vpop.eup %10414  ;;  %v9820_v9 = vcombine.low %v3532_v62, %v3556_v63 }
 0x687   :  { %v10417_v12 = vpop.eup %10416  ;;  %8707 = vst [vmem:[%s11270_s9 + $0xb0] sm:$0xff] %v10415_v10  ;;  %8449 = vmatpush1.bf16.msra.mxu1 %v9484_v48  ;;  %v9778_v48 = vcombine.low %v3487_v51, %v3511_v55  ;;  %v9826_v10 = vcombine.low %v3535_v0, %v3559_v1 }
 0x688   :  { %v10419_v14 = vpop.eup %10418  ;;  %8713 = vst [vmem:[%s11270_s9 + $0xe0] sm:$0xff] %v10417_v12  ;;  %8572 = vmatpush1.bf16.msra.mxu0 %v9490_v4  ;;  %8450 = vmatprep.subr.bf16.mxu1 %v9533_v8  ;;  %v9821_v4 = vcombine.high %v3532_v62, %v3556_v63  ;;  %v9827_v8 = vcombine.high %v3535_v0, %v3559_v1  ;;  %v2886_v12 = vld [vmem:[#allocation13 + $0x2e8] sm:$0xff] }
 0x689   :  { %v10421_v22 = vpop.eup %10420  ;;  %8708 = vst [vmem:[%s11270_s9 + $0xb8] sm:$0xff] %v10419_v14  ;;  %8573 = vmatprep.subr.bf16.mxu0 %v9539_v5  ;;  %v2814_v5 = vld [vmem:[#allocation13 + $0xa8] sm:$0xff]  ;;  %v9153_v14 = vcombine.high %v2862_v6, %v2886_v12 }
 0x68a   :  { %8714 = vst [vmem:[%s11270_s9 + $0xe8] sm:$0xff] %v10421_v22  ;;  %v9105_v11 = vcombine.high %v2814_v5, %v2838_v7  ;;  %v9152_v22 = vcombine.low %v2862_v6, %v2886_v12  ;;  %v3318_v6 = vld [vmem:[#allocation13 + $0x1068] sm:$0xff] }
 0x68b   :  { %8451 = vmatpush1.bf16.msra.mxu1 %v9532_v13  ;;  %v9104_v13 = vcombine.low %v2814_v5, %v2838_v7  ;;  %v3246_v5 = vld [vmem:[#allocation13 + $0xe28] sm:$0xff] }
 0x68c   :  { %8574 = vmatpush1.bf16.msra.mxu0 %v9538_v15  ;;  %8452 = vmatprep.subr.bf16.mxu1 %v9581_v16  ;;  %v2910_v15 = vld [vmem:[#allocation13 + $0x3a8] sm:$0xff] }
 0x68d   :  { %8575 = vmatprep.subr.bf16.mxu0 %v9587_v19  ;;  %v2934_v16 = vld [vmem:[#allocation13 + $0x468] sm:$0xff] }
 0x68e   :  { %v9201_v19 = vcombine.high %v2910_v15, %v2934_v16  ;;  %v9200_v44 = vcombine.low %v2910_v15, %v2934_v16  ;;  %v3270_v7 = vld [vmem:[#allocation13 + $0xee8] sm:$0xff] }
 0x68f   :  { %8453 = vmatpush1.bf16.msra.mxu1 %v9580_v28  ;;  %v3006_v28 = vld [vmem:[#allocation13 + $0x6a8] sm:$0xff] }
 0x690   :  { %8576 = vmatpush1.bf16.msra.mxu0 %v9586_v29  ;;  %8454 = vmatprep.subr.bf16.mxu1 %v9629_v30  ;;  %v3030_v29 = vld [vmem:[#allocation13 + $0x768] sm:$0xff]  ;;  %v9248_v30 = vcombine.low %v2958_v53, %v2982_v46 }
 0x691   :  { %8577 = vmatprep.subr.bf16.mxu0 %v9635_v31  ;;  %v9297_v31 = vcombine.high %v3006_v28, %v3030_v29  ;;  %v9296_v34 = vcombine.low %v3006_v28, %v3030_v29  ;;  %v3366_v53 = vld [vmem:[#allocation13 + $0x11e8] sm:$0xff] }
 0x692   :  { %v3414_v28 = vld [vmem:[#allocation13 + $0x1368] sm:$0xff] }
 0x693   :  { %8455 = vmatpush1.bf16.msra.mxu1 %v9628_v36  ;;  %v9345_v36 = vcombine.high %v3054_v32, %v3078_v33  ;;  %v3462_v32 = vld [vmem:[#allocation13 + $0x14e8] sm:$0xff] }
 0x694   :  { %8578 = vmatpush1.bf16.msra.mxu0 %v9634_v37  ;;  %8456 = vmatprep.subr.bf16.mxu1 %v9677_v38  ;;  %v3102_v37 = vld [vmem:[#allocation13 + $0x9a8] sm:$0xff] }
 0x695   :  { %8579 = vmatprep.subr.bf16.mxu0 %v9683_v39  ;;  %v3126_v38 = vld [vmem:[#allocation13 + $0xa68] sm:$0xff]  ;;  %v3680_v39 = vrot.slane %v11109_v49, %v10887_v21 }
 0x697   :  { %8457 = vmatpush1.bf16.msra.mxu1 %v9676_v20  ;;  %v9393_v20 = vcombine.high %v3102_v37, %v3126_v38 }
 0x698   :  { %8580 = vmatpush1.bf16.msra.mxu0 %v9682_v43  ;;  %8458 = vmatprep.subr.bf16.mxu1 %v9725_v17  ;;  %v3150_v17 = vld [vmem:[#allocation13 + $0xb28] sm:$0xff] }
 0x699   :  { %8581 = vmatprep.subr.bf16.mxu0 %v9731_v50  ;;  %v3174_v50 = vld [vmem:[#allocation13 + $0xbe8] sm:$0xff] }
 0x69a   :  { %v9441_v0 = vcombine.high %v3150_v17, %v3174_v50 }
 0x69b   :  { %8459 = vmatpush1.bf16.msra.mxu1 %v9724_v57 }
 0x69c   :  { %8582 = vmatpush1.bf16.msra.mxu0 %v9730_v58  ;;  %8460 = vmatprep.subr.bf16.mxu1 %v9773_v59 }
 0x69d   :  { %8583 = vmatprep.subr.bf16.mxu0 %v9779_v61  ;;  %v9392_v61 = vcombine.low %v3102_v37, %v3126_v38  ;;  %v3510_v37 = vld [vmem:[#allocation13 + $0x1668] sm:$0xff] }
 0x69f   :  { %8461 = vmatpush1.bf16.msra.mxu1 %v9772_v2  ;;  %v3198_v2 = vld [vmem:[#allocation13 + $0xca8] sm:$0xff] }
 0x6a0   :  { %8584 = vmatpush1.bf16.msra.mxu0 %v9778_v48  ;;  %8462 = vmatprep.subr.bf16.mxu1 %v9821_v4  ;;  %v3222_v48 = vld [vmem:[#allocation13 + $0xd68] sm:$0xff]  ;;  %v9440_v4 = vcombine.low %v3150_v17, %v3174_v50 }
 0x6a1   :  { %8585 = vmatprep.subr.bf16.mxu0 %v9827_v8  ;;  %v9489_v8 = vcombine.high %v3198_v2, %v3222_v48 }
 0x6a3   :  { %8463 = vmatpush1.bf16.msra.mxu1 %v9820_v9  ;;  %v9488_v9 = vcombine.low %v3198_v2, %v3222_v48  ;;  %v3032_v2 = vld [vmem:[#allocation13 + $0x778] sm:$0xff] }
 0x6a4   :  { %8586 = vmatpush1.bf16.msra.mxu0 %v9826_v10  ;;  %8514 = vmatprep.subr.bf16.mxu1 %v9105_v11  ;;  %v9537_v10 = vcombine.high %v3246_v5, %v3270_v7  ;;  %v3294_v11 = vld [vmem:[#allocation13 + $0xfa8] sm:$0xff] }
 0x6a5   :  { %v9585_v16 = vcombine.high %v3294_v11, %v3318_v6  ;;  %v9584_v46 = vcombine.low %v3294_v11, %v3318_v6  ;;  %v10464_v11 = vld [vmem:[#allocation15 + $0x18] sm:$0xff] }
 0x6a6   :  { %8465 = vmatmul.mubr.bf16.vlgmr.msra.gmra.mrb[44].mxu1 %v10945_v52  ;;  %v3696_v6 = vrot.slane %v10464_v11, %v11032_v56 }
 0x6a7   :  { %8588 = vmatmul.mubr.bf16.vlgmr.msra.gmra.mrb[48].mxu0 %v10945_v52  ;;  %8515 = vmatpush1.bf16.msra.mxu1 %v9104_v13 }
 0x6a8   :  { %8546 = vmatprep.mubr.bf16.mxu1 %v10947_v3  ;;  %8516 = vmatprep.subr.bf16.mxu1 %v9153_v14  ;;  %v9536_v14 = vcombine.low %v3246_v5, %v3270_v7  ;;  %v3080_v5 = vld [vmem:[#allocation13 + $0x8f8] sm:$0xff] }
 0x6ab   :  { %8517 = vmatpush1.bf16.msra.mxu1 %v9152_v22 }
 0x6ac   :  { %8518 = vmatprep.subr.bf16.mxu1 %v9201_v19  ;;  %v3342_v19 = vld [vmem:[#allocation13 + $0x1128] sm:$0xff] }
 0x6ad   :  { %v9632_v29 = vcombine.low %v3342_v19, %v3366_v53 }
 0x6af   :  { %8519 = vmatpush1.bf16.msra.mxu1 %v9200_v44  ;;  %v9633_v44 = vcombine.high %v3342_v19, %v3366_v53  ;;  %v3152_v19 = vld [vmem:[#allocation13 + $0xb38] sm:$0xff] }
 0x6b0   :  { %8520 = vmatprep.subr.bf16.mxu1 %v9249_v27  ;;  %v3390_v27 = vld [vmem:[#allocation13 + $0x12a8] sm:$0xff]  ;;  %v3176_v53 = vld [vmem:[#allocation13 + $0xbf8] sm:$0xff] }
 0x6b1   :  { %v9680_v33 = vcombine.low %v3390_v27, %v3414_v28 }
 0x6b3   :  { %8521 = vmatpush1.bf16.msra.mxu1 %v9248_v30  ;;  %v9681_v30 = vcombine.high %v3390_v27, %v3414_v28 }
 0x6b4   :  { %8522 = vmatprep.subr.bf16.mxu1 %v9297_v31  ;;  %v3438_v31 = vld [vmem:[#allocation13 + $0x1428] sm:$0xff] }
 0x6b5   :  { %v9728_v38 = vcombine.low %v3438_v31, %v3462_v32 }
 0x6b7   :  { %8523 = vmatpush1.bf16.msra.mxu1 %v9296_v34  ;;  %v9729_v34 = vcombine.high %v3438_v31, %v3462_v32 }
 0x6b8   :  { %8524 = vmatprep.subr.bf16.mxu1 %v9345_v36  ;;  %v3486_v36 = vld [vmem:[#allocation13 + $0x15a8] sm:$0xff] }
 0x6b9   :  { %v8220_v43 = vpop.f32.mrb[32].mxu1 }
 0x6ba   :  { %v8221_v54 = vadd.f32 %v8220_v43, %v3680_v39  ;;  %v8343_v47 = vpop.f32.mrb[36].mxu0  ;;  %v8222_v51 = vpop.f32.mrb[33].mxu1  ;;  %v9777_v39 = vcombine.high %v3486_v36, %v3510_v37  ;;  %v2840_v43 = vld [vmem:[#allocation13 + $0x178] sm:$0xff] }
 0x6bb   :  { %v8344_v55 = vadd.f32 %v8343_v47, %v3704_v40  ;;  %v8223_v57 = vadd.f32 %v8222_v51, %v3684_v41  ;;  %v8345_v58 = vpop.f32.mrb[37].mxu0  ;;  %v8224_v59 = vpop.f32.mrb[34].mxu1  ;;  %8525 = vmatpush1.bf16.msra.mxu1 %v9344_v18  ;;  %v3534_v40 = vld [vmem:[#allocation13 + $0x1728] sm:$0xff]  ;;  %v9776_v18 = vcombine.low %v3486_v36, %v3510_v37  ;;  %v2888_v47 = vld [vmem:[#allocation13 + $0x2f8] sm:$0xff]  ;;  %v9445_v37 = vcombine.high %v3152_v19, %v3176_v53 }
 0x6bc   :  { %10422 = vtanh.f32 %v8221_v54  ;;  %v8346_v49 = vadd.f32 %v8345_v58, %v3708_v42  ;;  %v8347_v62 = vpop.f32.mrb[38].mxu0  ;;  %v8225_v63 = vpop.f32.mrb[35].mxu1  ;;  %8526 = vmatprep.subr.bf16.mxu1 %v9393_v20  ;;  %v3558_v41 = vld [vmem:[#allocation13 + $0x17e8] sm:$0xff]  ;;  %v2816_v20 = vld [vmem:[#allocation13 + $0xb8] sm:$0xff] }
 0x6bd   :  { %10424 = vtanh.f32 %v8344_v55  ;;  %v8348_v1 = vpop.f32.mrb[39].mxu0  ;;  %v9825_v42 = vcombine.high %v3534_v40, %v3558_v41  ;;  %v9824_v17 = vcombine.low %v3534_v40, %v3558_v41  ;;  %v9109_v50 = vcombine.high %v2816_v20, %v2840_v43  ;;  %v2864_v54 = vld [vmem:[#allocation13 + $0x238] sm:$0xff] }
 0x6be   :  { %10426 = vtanh.f32 %v8223_v57  ;;  %v9108_v51 = vcombine.low %v2816_v20, %v2840_v43  ;;  %v9157_v55 = vcombine.high %v2864_v54, %v2888_v47  ;;  %v2912_v57 = vld [vmem:[#allocation13 + $0x3b8] sm:$0xff]  ;;  %v9156_v59 = vcombine.low %v2864_v54, %v2888_v47 }
 0x6bf   :  { %10428 = vtanh.f32 %v8346_v49  ;;  %8527 = vmatpush1.bf16.msra.mxu1 %v9392_v61  ;;  %v2936_v58 = vld [vmem:[#allocation13 + $0x478] sm:$0xff]  ;;  %v9444_v41 = vcombine.low %v3152_v19, %v3176_v53  ;;  %v3716_v53 = vrot.slane %v11156_v35, %v10891_v23 }
 0x6c0   :  { %8528 = vmatprep.subr.bf16.mxu1 %v9441_v0  ;;  %v9205_v61 = vcombine.high %v2912_v57, %v2936_v58  ;;  %v2960_v49 = vld [vmem:[#allocation13 + $0x538] sm:$0xff]  ;;  %v9204_v63 = vcombine.low %v2912_v57, %v2936_v58 }
 0x6c1   :  { %v2984_v62 = vld [vmem:[#allocation13 + $0x5f8] sm:$0xff] }
 0x6c2   :  { %v9253_v0 = vcombine.high %v2960_v49, %v2984_v62  ;;  %v3008_v1 = vld [vmem:[#allocation13 + $0x6b8] sm:$0xff]  ;;  %v9252_v48 = vcombine.low %v2960_v49, %v2984_v62 }
 0x6c3   :  { %8529 = vmatpush1.bf16.msra.mxu1 %v9440_v4  ;;  %v9301_v4 = vcombine.high %v3008_v1, %v3032_v2  ;;  %v9300_v7 = vcombine.low %v3008_v1, %v3032_v2  ;;  %v3224_v40 = vld [vmem:[#allocation13 + $0xd78] sm:$0xff] }
 0x6c4   :  { %8530 = vmatprep.subr.bf16.mxu1 %v9489_v8  ;;  %v3056_v8 = vld [vmem:[#allocation13 + $0x838] sm:$0xff] }
 0x6c5   :  { %v3272_v20 = vld [vmem:[#allocation13 + $0xef8] sm:$0xff] }
 0x6c6   :  { %v10423_v12 = vpop.eup %10422  ;;  %v3320_v54 = vld [vmem:[#allocation13 + $0x1078] sm:$0xff] }
 0x6c7   :  { %v10425_v13 = vpop.eup %10424  ;;  %8711 = vst [vmem:[%s11270_s9 + $0xd0] sm:$0xff] %v10423_v12  ;;  %8531 = vmatpush1.bf16.msra.mxu1 %v9488_v9  ;;  %v3104_v9 = vld [vmem:[#allocation13 + $0x9b8] sm:$0xff]  ;;  %v3720_v12 = vrot.slane %v11156_v35, %v10974_v26 }
 0x6c8   :  { %v10427_v15 = vpop.eup %10426  ;;  %8717 = vst [vmem:[%s11270_s9 + $0x100] sm:$0xff] %v10425_v13  ;;  %8532 = vmatprep.subr.bf16.mxu1 %v9537_v10  ;;  %v3128_v10 = vld [vmem:[#allocation13 + $0xa78] sm:$0xff]  ;;  %v3700_v13 = vrot.slane %v10464_v11, %v11035_v60 }
 0x6c9   :  { %v10429_v22 = vpop.eup %10428  ;;  %8712 = vst [vmem:[%s11270_s9 + $0xd8] sm:$0xff] %v10427_v15  ;;  %v3724_v15 = vrot.slane %v11156_v35, %v10979_v45  ;;  %v9396_v32 = vcombine.low %v3104_v9, %v3128_v10  ;;  %v3368_v49 = vld [vmem:[#allocation13 + $0x11f8] sm:$0xff] }
 0x6ca   :  { %8718 = vst [vmem:[%s11270_s9 + $0x108] sm:$0xff] %v10429_v22  ;;  %v3416_v1 = vld [vmem:[#allocation13 + $0x1378] sm:$0xff] }
 0x6cb   :  { %8533 = vmatpush1.bf16.msra.mxu1 %v9536_v14  ;;  %v9348_v14 = vcombine.low %v3056_v8, %v3080_v5 }
 0x6cc   :  { %8534 = vmatprep.subr.bf16.mxu1 %v9585_v16  ;;  %v9397_v16 = vcombine.high %v3104_v9, %v3128_v10  ;;  %v3512_v9 = vld [vmem:[#allocation13 + $0x1678] sm:$0xff] }
 0x6cf   :  { %8535 = vmatpush1.bf16.msra.mxu1 %v9584_v46 }
 0x6d0   :  { %8536 = vmatprep.subr.bf16.mxu1 %v9633_v44 }
 0x6d3   :  { %8537 = vmatpush1.bf16.msra.mxu1 %v9632_v29 }
 0x6d4   :  { %8538 = vmatprep.subr.bf16.mxu1 %v9681_v30 }
 0x6d7   :  { %8539 = vmatpush1.bf16.msra.mxu1 %v9680_v33 }
 0x6d8   :  { %8540 = vmatprep.subr.bf16.mxu1 %v9729_v34 }
 0x6db   :  { %8541 = vmatpush1.bf16.msra.mxu1 %v9728_v38 }
 0x6dc   :  { %8542 = vmatprep.subr.bf16.mxu1 %v9777_v39  ;;  %v3200_v39 = vld [vmem:[#allocation13 + $0xcb8] sm:$0xff] }
 0x6dd   :  { %v9492_v43 = vcombine.low %v3200_v39, %v3224_v40 }
 0x6df   :  { %8543 = vmatpush1.bf16.msra.mxu1 %v9776_v18  ;;  %v9493_v18 = vcombine.high %v3200_v39, %v3224_v40  ;;  %v3728_v40 = vrot.slane %v11156_v35, %v11032_v56 }
 0x6e0   :  { %8544 = vmatprep.subr.bf16.mxu1 %v9825_v42  ;;  %v3248_v42 = vld [vmem:[#allocation13 + $0xe38] sm:$0xff] }
 0x6e3   :  { %8545 = vmatpush1.bf16.msra.mxu1 %v9824_v17  ;;  %v9541_v17 = vcombine.high %v3248_v42, %v3272_v20 }
 0x6e4   :  { %8596 = vmatprep.subr.bf16.mxu1 %v9109_v50  ;;  %v3296_v50 = vld [vmem:[#allocation13 + $0xfb8] sm:$0xff] }
 0x6e5   :  { %v9589_v58 = vcombine.high %v3296_v50, %v3320_v54  ;;  %v9588_v62 = vcombine.low %v3296_v50, %v3320_v54 }
 0x6e6   :  { %8547 = vmatmul.mubr.bf16.vlgmr.msra.gmra.mrb[48].mxu1 %v10945_v52 }
 0x6e7   :  { %8597 = vmatpush1.bf16.msra.mxu1 %v9108_v51  ;;  %8628 = vmatprep.mubr.bf16.mxu1 %v10947_v3  ;;  %v9349_v3 = vcombine.high %v3056_v8, %v3080_v5  ;;  %v3464_v8 = vld [vmem:[#allocation13 + $0x14f8] sm:$0xff] }
 0x6e8   :  { %8598 = vmatprep.subr.bf16.mxu1 %v9157_v55  ;;  %v9540_v55 = vcombine.low %v3248_v42, %v3272_v20 }
 0x6eb   :  { %8599 = vmatpush1.bf16.msra.mxu1 %v9156_v59 }
 0x6ec   :  { %8600 = vmatprep.subr.bf16.mxu1 %v9205_v61  ;;  %v3344_v61 = vld [vmem:[#allocation13 + $0x1138] sm:$0xff] }
 0x6ed   :  { %v9636_v2 = vcombine.low %v3344_v61, %v3368_v49 }
 0x6ef   :  { %8601 = vmatpush1.bf16.msra.mxu1 %v9204_v63  ;;  %v9637_v63 = vcombine.high %v3344_v61, %v3368_v49 }
 0x6f0   :  { %8602 = vmatprep.subr.bf16.mxu1 %v9253_v0  ;;  %v3392_v0 = vld [vmem:[#allocation13 + $0x12b8] sm:$0xff] }
 0x6f1   :  { %v9684_v5 = vcombine.low %v3392_v0, %v3416_v1 }
 0x6f3   :  { %8603 = vmatpush1.bf16.msra.mxu1 %v9252_v48  ;;  %v9685_v48 = vcombine.high %v3392_v0, %v3416_v1 }
 0x6f4   :  { %8604 = vmatprep.subr.bf16.mxu1 %v9301_v4  ;;  %v3440_v4 = vld [vmem:[#allocation13 + $0x1438] sm:$0xff] }
 0x6f5   :  { %v9732_v10 = vcombine.low %v3440_v4, %v3464_v8 }
 0x6f7   :  { %8605 = vmatpush1.bf16.msra.mxu1 %v9300_v7  ;;  %v9733_v7 = vcombine.high %v3440_v4, %v3464_v8 }
 0x6f8   :  { %8606 = vmatprep.subr.bf16.mxu1 %v9349_v3  ;;  %v3488_v3 = vld [vmem:[#allocation13 + $0x15b8] sm:$0xff] }
 0x6f9   :  { %v8302_v22 = vpop.f32.mrb[36].mxu1  ;;  %v9781_v11 = vcombine.high %v3488_v3, %v3512_v9 }
 0x6fa   :  { %v8303_v46 = vadd.f32 %v8302_v22, %v3696_v6  ;;  %v8425_v44 = vpop.f32.mrb[40].mxu0  ;;  %v8304_v27 = vpop.f32.mrb[37].mxu1  ;;  %v3536_v6 = vld [vmem:[#allocation13 + $0x1738] sm:$0xff]  ;;  %v3712_v22 = vrot.slane %v11156_v35, %v10887_v21 }
 0x6fb   :  { %v8426_v28 = vadd.f32 %v8425_v44, %v3720_v12  ;;  %v8305_v29 = vadd.f32 %v8304_v27, %v3700_v13  ;;  %v8427_v30 = vpop.f32.mrb[41].mxu0  ;;  %v8306_v31 = vpop.f32.mrb[38].mxu1  ;;  %8607 = vmatpush1.bf16.msra.mxu1 %v9348_v14  ;;  %v3560_v12 = vld [vmem:[#allocation13 + $0x17f8] sm:$0xff]  ;;  %v9780_v13 = vcombine.low %v3488_v3, %v3512_v9 }
 0x6fc   :  { %10430 = vtanh.f32 %v8303_v46  ;;  %v8428_v33 = vadd.f32 %v8427_v30, %v3724_v15  ;;  %v8429_v34 = vpop.f32.mrb[42].mxu0  ;;  %v8307_v36 = vpop.f32.mrb[39].mxu1  ;;  %8608 = vmatprep.subr.bf16.mxu1 %v9397_v16  ;;  %v9829_v14 = vcombine.high %v3536_v6, %v3560_v12  ;;  %v9828_v15 = vcombine.low %v3536_v6, %v3560_v12  ;;  %v11199_v16 = vld [vmem:[#allocation15 + $0x28] sm:$0xff] }
 0x6fd   :  { %10432 = vtanh.f32 %v8426_v28  ;;  %v8430_v38 = vpop.f32.mrb[43].mxu0  ;;  %v3736_v19 = vrot.slane %v11199_v16, %v10894_v24  ;;  %v3740_v46 = vrot.slane %v11199_v16, %v10897_v25  ;;  %v3756_v42 = vrot.slane %v11199_v16, %v10979_v45 }
 0x6fe   :  { %10434 = vtanh.f32 %v8305_v29 }
 0x6ff   :  { %10436 = vtanh.f32 %v8428_v33  ;;  %8609 = vmatpush1.bf16.msra.mxu1 %v9396_v32 }
 0x700   :  { %8610 = vmatprep.subr.bf16.mxu1 %v9445_v37 }
 0x703   :  { %8611 = vmatpush1.bf16.msra.mxu1 %v9444_v41  ;;  %v3752_v41 = vrot.slane %v11199_v16, %v10974_v26 }
 0x704   :  { %8612 = vmatprep.subr.bf16.mxu1 %v9493_v18  ;;  %v3732_v18 = vrot.slane %v11156_v35, %v11035_v60 }
 0x706   :  { %v10431_v47 = vpop.eup %10430 }
 0x707   :  { %v10433_v51 = vpop.eup %10432  ;;  %8715 = vst [vmem:[%s11270_s9 + $0xf0] sm:$0xff] %v10431_v47  ;;  %8613 = vmatpush1.bf16.msra.mxu1 %v9492_v43 }
 0x708   :  { %v10435_v57 = vpop.eup %10434  ;;  %8721 = vst [vmem:[%s11270_s9 + $0x120] sm:$0xff] %v10433_v51  ;;  %8614 = vmatprep.subr.bf16.mxu1 %v9541_v17 }
 0x709   :  { %v10437_v59 = vpop.eup %10436  ;;  %8716 = vst [vmem:[%s11270_s9 + $0xf8] sm:$0xff] %v10435_v57 }
 0x70a   :  { %8722 = vst [vmem:[%s11270_s9 + $0x128] sm:$0xff] %v10437_v59 }
 0x70b   :  { %8615 = vmatpush1.bf16.msra.mxu1 %v9540_v55 }
 0x70c   :  { %8616 = vmatprep.subr.bf16.mxu1 %v9589_v58 }
 0x70f   :  { %8617 = vmatpush1.bf16.msra.mxu1 %v9588_v62  ;;  %v3744_v62 = vrot.slane %v11199_v16, %v10887_v21  ;;  %v3760_v21 = vrot.slane %v11199_v16, %v11032_v56 }
 0x710   :  { %8618 = vmatprep.subr.bf16.mxu1 %v9637_v63  ;;  %v3748_v63 = vrot.slane %v11199_v16, %v10891_v23  ;;  %v3764_v23 = vrot.slane %v11199_v16, %v11035_v60 }
 0x713   :  { %8619 = vmatpush1.bf16.msra.mxu1 %v9636_v2 }
 0x714   :  { %8620 = vmatprep.subr.bf16.mxu1 %v9685_v48 }
 0x717   :  { %8621 = vmatpush1.bf16.msra.mxu1 %v9684_v5 }
 0x718   :  { %8622 = vmatprep.subr.bf16.mxu1 %v9733_v7 }
 0x71b   :  { %8623 = vmatpush1.bf16.msra.mxu1 %v9732_v10 }
 0x71c   :  { %8624 = vmatprep.subr.bf16.mxu1 %v9781_v11 }
 0x71f   :  { %8625 = vmatpush1.bf16.msra.mxu1 %v9780_v13 }
 0x720   :  { %8626 = vmatprep.subr.bf16.mxu1 %v9829_v14 }
 0x723   :  { %8627 = vmatpush1.bf16.msra.mxu1 %v9828_v15 }
 0x726   :  { %8629 = vmatmul.mubr.bf16.vlgmr.msra.gmra.mrb[52].mxu1 %v10945_v52 }
 0x739   :  { %v8384_v44 = vpop.f32.mrb[40].mxu1 }
 0x73a   :  { %v8385_v27 = vadd.f32 %v8384_v44, %v3712_v22  ;;  %v8507_v28 = vpop.f32.mrb[44].mxu0  ;;  %v8386_v29 = vpop.f32.mrb[41].mxu1 }
 0x73b   :  { %v8508_v30 = vadd.f32 %v8507_v28, %v3736_v19  ;;  %v8387_v52 = vadd.f32 %v8386_v29, %v3716_v53  ;;  %v8509_v31 = vpop.f32.mrb[45].mxu0  ;;  %v8388_v32 = vpop.f32.mrb[42].mxu1 }
 0x73c   :  { %10438 = vtanh.f32 %v8385_v27  ;;  %v8510_v33 = vadd.f32 %v8509_v31, %v3740_v46  ;;  %v8511_v34 = vpop.f32.mrb[46].mxu0  ;;  %v8389_v36 = vpop.f32.mrb[43].mxu1 }
 0x73d   :  { %10440 = vtanh.f32 %v8508_v30  ;;  %v8512_v24 = vpop.f32.mrb[47].mxu0 }
 0x73e   :  { %10442 = vtanh.f32 %v8387_v52 }
 0x73f   :  { %10444 = vtanh.f32 %v8510_v33 }
 0x746   :  { %v10439_v37 = vpop.eup %10438 }
 0x747   :  { %v10441_v38 = vpop.eup %10440  ;;  %8719 = vst [vmem:[%s11270_s9 + $0x110] sm:$0xff] %v10439_v37 }
 0x748   :  { %v10443_v25 = vpop.eup %10442  ;;  %8725 = vst [vmem:[%s11270_s9 + $0x140] sm:$0xff] %v10441_v38 }
 0x749   :  { %v10445_v39 = vpop.eup %10444  ;;  %8720 = vst [vmem:[%s11270_s9 + $0x118] sm:$0xff] %v10443_v25 }
 0x74a   :  { %8726 = vst [vmem:[%s11270_s9 + $0x148] sm:$0xff] %v10445_v39 }
 0x779   :  { %v8466_v20 = vpop.f32.mrb[44].mxu1 }
 0x77a   :  { %v8467_v43 = vadd.f32 %v8466_v20, %v3728_v40  ;;  %v8589_v17 = vpop.f32.mrb[48].mxu0  ;;  %v8468_v50 = vpop.f32.mrb[45].mxu1 }
 0x77b   :  { %v8590_v54 = vadd.f32 %v8589_v17, %v3752_v41  ;;  %v8469_v47 = vadd.f32 %v8468_v50, %v3732_v18  ;;  %v8591_v51 = vpop.f32.mrb[49].mxu0  ;;  %v8470_v55 = vpop.f32.mrb[46].mxu1 }
 0x77c   :  { %10446 = vtanh.f32 %v8467_v43  ;;  %v8592_v57 = vadd.f32 %v8591_v51, %v3756_v42  ;;  %v8593_v58 = vpop.f32.mrb[50].mxu0  ;;  %v8471_v59 = vpop.f32.mrb[47].mxu1 }
 0x77d   :  { %10448 = vtanh.f32 %v8590_v54  ;;  %v8594_v26 = vpop.f32.mrb[51].mxu0 }
 0x77e   :  { %10450 = vtanh.f32 %v8469_v47 }
 0x77f   :  { %10452 = vtanh.f32 %v8592_v57 }
 0x786   :  { %v10447_v35 = vpop.eup %10446 }
 0x787   :  { %v10449_v61 = vpop.eup %10448  ;;  %8723 = vst [vmem:[%s11270_s9 + $0x130] sm:$0xff] %v10447_v35 }
 0x788   :  { %v10451_v45 = vpop.eup %10450  ;;  %8729 = vst [vmem:[%s11270_s9 + $0x160] sm:$0xff] %v10449_v61 }
 0x789   :  { %v10453_v49 = vpop.eup %10452  ;;  %8724 = vst [vmem:[%s11270_s9 + $0x138] sm:$0xff] %v10451_v45 }
 0x78a   :  { %8730 = vst [vmem:[%s11270_s9 + $0x168] sm:$0xff] %v10453_v49 }
 0x7b9   :  { %v8548_v0 = vpop.f32.mrb[48].mxu1 }
 0x7ba   :  { %v8549_v1 = vadd.f32 %v8548_v0, %v3744_v62  ;;  %v8550_v2 = vpop.f32.mrb[49].mxu1 }
 0x7bb   :  { %v8551_v48 = vadd.f32 %v8550_v2, %v3748_v63  ;;  %v8552_v4 = vpop.f32.mrb[50].mxu1 }
 0x7bc   :  { %10454 = vtanh.f32 %v8549_v1  ;;  %v8553_v8 = vpop.f32.mrb[51].mxu1 }
 0x7bd   :  { %10456 = vtanh.f32 %v8551_v48 }
 0x7c6   :  { %v10455_v5 = vpop.eup %10454 }
 0x7c7   :  { %v10457_v7 = vpop.eup %10456  ;;  %8727 = vst [vmem:[%s11270_s9 + $0x150] sm:$0xff] %v10455_v5 }
 0x7c8   :  { %8728 = vst [vmem:[%s11270_s9 + $0x158] sm:$0xff] %v10457_v7 }
 0x7f9   :  { %v8630_v3 = vpop.f32.mrb[52].mxu1 }
 0x7fa   :  { %v8631_v9 = vadd.f32 %v8630_v3, %v3760_v21  ;;  %v8632_v10 = vpop.f32.mrb[53].mxu1 }
 0x7fb   :  { %v8633_v11 = vadd.f32 %v8632_v10, %v3764_v23  ;;  %v8634_v6 = vpop.f32.mrb[54].mxu1 }
 0x7fc   :  { %10458 = vtanh.f32 %v8631_v9  ;;  %v8635_v12 = vpop.f32.mrb[55].mxu1 }
 0x7fd   :  { %10460 = vtanh.f32 %v8633_v11 }
 0x806   :  { %v10459_v13 = vpop.eup %10458 }
 0x807   :  { %v10461_v14 = vpop.eup %10460  ;;  %8731 = vst [vmem:[%s11270_s9 + $0x170] sm:$0xff] %v10459_v13 }
 0x808   :  { %8732 = vst [vmem:[%s11270_s9 + $0x178] sm:$0xff] %v10461_v14 }
 0x809   :  { %8737 = vsyncpa [#allocation3], 1 }
 0x80a   :  { %8738 = vsyncpa [#allocation5], 1 }
 0x80b   :  { %8739 = vsyncpa [#allocation8], 1 }
 0x80c   :  { %8740 = vsyncpa [#allocation11], 1 }
 0x80d   :  { %8741 = vsyncpa [#allocation14], 1 }

</bundles_post_ra>
